<compile_context>
chip_gen: v5e
topology: v5e:2x2
jax: 0.10.0
libtpu: 0.0.40
codegen_flags: <defaults>
</compile_context>

<pallas_src>
import functools
import math

import jax
import jax.numpy as jnp
from jax import lax
from jax.experimental import pallas as pl
from jax.experimental.pallas import tpu as pltpu


_BLUR_1D = (1.0, 3.0, 3.0, 1.0)


# ----------------------------------------------------------------------------- conv + SiLU kernel
def _conv_silu_kernel(x_ref, w_ref, o_ref, *, kernel_size, stride, h_out, w_out):
    """x_ref: [s*s, Hh, Wh, C_in] (space-to-depth phases of the padded image)
       w_ref: [K, K, C_in, C_out]
       o_ref: [h_out, w_out, C_out]"""
    K, s = kernel_size, stride
    c_in = x_ref.shape[-1]
    c_out = w_ref.shape[-1]

    # Hoist phase loads out of the tap loop (VMEM -> vreg once per phase).
    phases = [x_ref[p] for p in range(s * s)]

    acc = jnp.zeros((h_out * w_out, c_out), jnp.float32)
    for dh in range(K):
        for dw in range(K):
            p = (dh % s) * s + (dw % s)
            oh, ow = dh // s, dw // s
            win = phases[p][oh:oh + h_out, ow:ow + w_out, :]          # [h_out, w_out, C_in]
            win = win.reshape(h_out * w_out, c_in)                    # lane dim = C_in
            # Direct contraction over C_in — no transposes; f32 MXU accumulation.
            acc = acc + lax.dot_general(
                win, w_ref[dh, dw],
                dimension_numbers=(((1,), (0,)), ((), ())),
                preferred_element_type=jnp.float32)

    # SiLU in f32: x * sigmoid(x) = x / (1 + exp(-x))
    y = acc / (1.0 + jnp.exp(-acc))
    o_ref[...] = y.reshape(h_out, w_out, c_out).astype(o_ref.dtype)


def _conv_silu(x_nhwc, w_taps, *, stride, pad_h, pad_w):
    """x_nhwc: [N, H, W, C_in]; w_taps: [K, K, C_in, C_out] (already scaled/composed).
       pad_h / pad_w are (before, after) paddings on H / W."""
    n, h, w, c_in = x_nhwc.shape
    k = w_taps.shape[0]
    c_out = w_taps.shape[-1]
    s = stride

    # Zero-pad spatially, pad up to a multiple of the stride, then space-to-depth into s*s
    # phases so the kernel only ever needs contiguous stride-1 slices.
    xp = jnp.pad(x_nhwc, ((0, 0), pad_h, pad_w, (0, 0)))
    hp, wp = xp.shape[1], xp.shape[2]
    h_out = (hp - k) // s + 1
    w_out = (wp - k) // s + 1
    hh = -(-hp // s)
    wh = -(-wp // s)
    xp = jnp.pad(xp, ((0, 0), (0, hh * s - hp), (0, wh * s - wp), (0, 0)))
    xph = xp.reshape(n, hh, s, wh, s, c_in)
    xph = jnp.transpose(xph, (0, 2, 4, 1, 3, 5)).reshape(n, s * s, hh, wh, c_in)

    kernel = functools.partial(_conv_silu_kernel, kernel_size=k, stride=s,
                               h_out=h_out, w_out=w_out)
    return pl.pallas_call(
        kernel,
        out_shape=jax.ShapeDtypeStruct((n, h_out, w_out, c_out), x_nhwc.dtype),
        grid=(n,),
        in_specs=[
            pl.BlockSpec((None, s * s, hh, wh, c_in), lambda b: (b, 0, 0, 0, 0)),
            pl.BlockSpec((k, k, c_in, c_out), lambda b: (0, 0, 0, 0)),
        ],
        out_specs=pl.BlockSpec((None, h_out, w_out, c_out), lambda b: (b, 0, 0, 0)),
        compiler_params=pltpu.CompilerParams(dimension_semantics=("parallel",)),
    )(xph, w_taps)


# ----------------------------------------------------------------------------- blur folding
def _compose_blur_into_weight(wgt):
    """Fold the depthwise normalized [1,3,3,1]x[1,3,3,1] blur (stride 1) into the conv weight.
       wgt: [C_out, C_in, K, K] -> [C_out, C_in, K+3, K+3] such that
       conv(blur(x), wgt, stride=2) == conv(x, composed, stride=2) for the same spatial pad."""
    b = jnp.asarray(_BLUR_1D, jnp.float32)
    b2 = b[:, None] * b[None, :]
    b2 = b2 / b2.sum()
    co, ci, k, _ = wgt.shape
    img = wgt.reshape(co * ci, 1, k, k).astype(jnp.float32)
    kern = b2[None, None]                      # [1,1,4,4]
    dn = lax.conv_dimension_numbers(img.shape, kern.shape, ("NCHW", "OIHW", "NCHW"))
    # The blur kernel is symmetric, so full correlation == full convolution.
    out = lax.conv_general_dilated(img, kern, (1, 1), ((3, 3), (3, 3)),
                                   dimension_numbers=dn,
                                   precision=lax.Precision.HIGHEST)
    return out.reshape(co, ci, k + 3, k + 3)


# ----------------------------------------------------------------------------- module wrapper
def generator_encoder_block(x, weight, *, kernel_size, downsample=False):
    """x: [N, C_in, H, W] (NCHW, like PyTorch); weight: [1, C_out, C_in, K, K].
       Returns [N, C_out, H', W']."""
    n, c_in, h, w = x.shape
    k = kernel_size
    scale = 1.0 / math.sqrt(c_in * k * k)

    x_nhwc = jnp.transpose(x, (0, 2, 3, 1))
    wgt = (weight[0] * scale).astype(jnp.float32)          # [C_out, C_in, K, K]

    if downsample:
        wgt = _compose_blur_into_weight(wgt)               # [C_out, C_in, K+3, K+3]
        # F.pad order is (W_left, W_right, H_top, H_bottom)
        pad = (2, 2, 2, 2) if k == 3 else (2, 3, 2, 3)
        w_taps = jnp.transpose(wgt, (2, 3, 1, 0)).astype(x.dtype)   # [K+3, K+3, C_in, C_out]
        out = _conv_silu(x_nhwc, w_taps, stride=2,
                         pad_h=(pad[2], pad[3]), pad_w=(pad[0], pad[1]))
    else:
        p = (k - 1) // 2
        w_taps = jnp.transpose(wgt, (2, 3, 1, 0)).astype(x.dtype)   # [K, K, C_in, C_out]
        out = _conv_silu(x_nhwc, w_taps, stride=1, pad_h=(p, p), pad_w=(p, p))
    return jnp.transpose(out, (0, 3, 1, 2))


# ----------------------------------------------------------------------------- pure-JAX reference
def _reference(x, weight, kernel_size, downsample):
    n, c_in, h, w = x.shape
    k = kernel_size
    scale = 1.0 / math.sqrt(c_in * k * k)
    wgt = weight[0] * scale  # [C_out, C_in, K, K]
    dn = lax.conv_dimension_numbers(x.shape, wgt.shape, ("NCHW", "OIHW", "NCHW"))
    if downsample:
        bk = jnp.array(_BLUR_1D, jnp.float32)
        bk2 = bk[:, None] * bk[None, :]
        bk2 = bk2 / bk2.sum()
        bkern = jnp.tile(bk2[None, None], (c_in, 1, 1, 1))  # depthwise [C_in,1,4,4]
        pad = (2, 2, 2, 2) if k == 3 else (2, 3, 2, 3)
        xb = jnp.pad(x, ((0, 0), (0, 0), (pad[2], pad[3]), (pad[0], pad[1])))
        dnb = lax.conv_dimension_numbers(xb.shape, bkern.shape, ("NCHW", "OIHW", "NCHW"))
        xb = lax.conv_general_dilated(xb, bkern, (1, 1), "VALID", dimension_numbers=dnb,
                                      feature_group_count=c_in,
                                      precision=lax.Precision.HIGHEST)
        out = lax.conv_general_dilated(xb, wgt, (2, 2), "VALID", dimension_numbers=dn,
                                       precision=lax.Precision.HIGHEST)
    else:
        p = (k - 1) // 2
        out = lax.conv_general_dilated(x, wgt, (1, 1), ((p, p), (p, p)),
                                       dimension_numbers=dn,
                                       precision=lax.Precision.HIGHEST)
    return out * jax.nn.sigmoid(out)


if __name__ == "__main__":
    key = jax.random.PRNGKey(0)
    k1, k2 = jax.random.split(key)
    N, C_IN, C_OUT, H, W, K = 2, 4, 8, 16, 16, 3
    x = jax.random.normal(k1, (N, C_IN, H, W), dtype=jnp.float32)
    weight = jax.random.normal(k2, (1, C_OUT, C_IN, K, K), dtype=jnp.float32)

    # default path (downsample=False)
    out = generator_encoder_block(x, weight, kernel_size=K, downsample=False)
    out = jax.block_until_ready(out)
    ref = _reference(x, weight, K, False)
    assert out.shape == (N, C_OUT, H, W)
    assert jnp.allclose(out, ref, atol=1e-4, rtol=1e-4), float(jnp.max(jnp.abs(out - ref)))

    # downsample path (blur folded into a single stride-2 conv + SiLU)
    out_ds = generator_encoder_block(x, weight, kernel_size=K, downsample=True)
    out_ds = jax.block_until_ready(out_ds)
    ref_ds = _reference(x, weight, K, True)
    assert out_ds.shape == ref_ds.shape == (N, C_OUT, H // 2, W // 2)
    assert jnp.allclose(out_ds, ref_ds, atol=1e-4, rtol=1e-4), float(jnp.max(jnp.abs(out_ds - ref_ds)))

    print("KERNEL_OK")
</pallas_src>

<mosaic_0001>
module attributes {stable_mosaic.version = 11 : i64} {
  func.func @_conv_silu_kernel(%arg0: i32, %arg1: memref<1x1x18x18x4xf32, #tpu.memory_space<vmem>>, %arg2: memref<3x3x4x8xf32, #tpu.memory_space<vmem>>, %arg3: memref<1x16x16x8xf32, #tpu.memory_space<vmem>>) attributes {dimension_semantics = [#tpu.dimension_semantics<parallel>], iteration_bounds = array<i64: 2>, scalar_prefetch = 0 : i64, scratch_operands = 0 : i64, tpu.core_type = #tpu.core_type<tc>, window_params = [{transform_indices = @transform_0, window_bounds = array<i64: 1, 1, 18, 18, 4>}, {pipeline_mode = #tpu.pipeline_mode<synchronous>, transform_indices = @transform_1, window_bounds = array<i64: 3, 3, 4, 8>}, {transform_indices = @transform_2, window_bounds = array<i64: 1, 16, 16, 8>}]} {
    %c0 = arith.constant 0 : index
    %c0_0 = arith.constant 0 : index
    %c0_1 = arith.constant 0 : index
    %c0_2 = arith.constant 0 : index
    %c0_3 = arith.constant 0 : index
    %0 = vector.load %arg1[%c0, %c0_0, %c0_1, %c0_2, %c0_3] : memref<1x1x18x18x4xf32, #tpu.memory_space<vmem>>, vector<1x1x18x18x4xf32>
    %1 = vector.shape_cast %0 : vector<1x1x18x18x4xf32> to vector<18x18x4xf32>
    %cst = arith.constant 0.000000e+00 : f32
    %2 = vector.broadcast %cst : f32 to vector<256x8xf32>
    %3 = vector.extract_strided_slice %1 {offsets = [0, 0, 0], sizes = [16, 16, 4], strides = [1, 1, 1]} : vector<18x18x4xf32> to vector<16x16x4xf32>
    %4 = vector.shape_cast %3 : vector<16x16x4xf32> to vector<256x4xf32>
    %c0_4 = arith.constant 0 : index
    %c0_5 = arith.constant 0 : index
    %c0_6 = arith.constant 0 : index
    %c0_7 = arith.constant 0 : index
    %5 = vector.load %arg2[%c0_4, %c0_5, %c0_6, %c0_7] : memref<3x3x4x8xf32, #tpu.memory_space<vmem>>, vector<1x1x4x8xf32>
    %6 = vector.shape_cast %5 : vector<1x1x4x8xf32> to vector<4x8xf32>
    %cst_8 = arith.constant dense<0.000000e+00> : vector<256x8xf32>
    %7 = tpu.matmul %4, %6, %cst_8 {dimension_numbers = #tpu.dot_dimension_numbers<[1], [0], [0], [1], [0, 0, 1, 1], [], []>} : vector<256x4xf32>, vector<4x8xf32>, vector<256x8xf32> -> vector<256x8xf32>
    %8 = arith.addf %2, %7 : vector<256x8xf32>
    %9 = vector.extract_strided_slice %1 {offsets = [0, 1, 0], sizes = [16, 16, 4], strides = [1, 1, 1]} : vector<18x18x4xf32> to vector<16x16x4xf32>
    %10 = vector.shape_cast %9 : vector<16x16x4xf32> to vector<256x4xf32>
    %c0_9 = arith.constant 0 : index
    %c1 = arith.constant 1 : index
    %c0_10 = arith.constant 0 : index
    %c0_11 = arith.constant 0 : index
    %11 = vector.load %arg2[%c0_9, %c1, %c0_10, %c0_11] : memref<3x3x4x8xf32, #tpu.memory_space<vmem>>, vector<1x1x4x8xf32>
    %12 = vector.shape_cast %11 : vector<1x1x4x8xf32> to vector<4x8xf32>
    %cst_12 = arith.constant dense<0.000000e+00> : vector<256x8xf32>
    %13 = tpu.matmul %10, %12, %cst_12 {dimension_numbers = #tpu.dot_dimension_numbers<[1], [0], [0], [1], [0, 0, 1, 1], [], []>} : vector<256x4xf32>, vector<4x8xf32>, vector<256x8xf32> -> vector<256x8xf32>
    %14 = arith.addf %8, %13 : vector<256x8xf32>
    %15 = vector.extract_strided_slice %1 {offsets = [0, 2, 0], sizes = [16, 16, 4], strides = [1, 1, 1]} : vector<18x18x4xf32> to vector<16x16x4xf32>
    %16 = vector.shape_cast %15 : vector<16x16x4xf32> to vector<256x4xf32>
    %c0_13 = arith.constant 0 : index
    %c2 = arith.constant 2 : index
    %c0_14 = arith.constant 0 : index
    %c0_15 = arith.constant 0 : index
    %17 = vector.load %arg2[%c0_13, %c2, %c0_14, %c0_15] : memref<3x3x4x8xf32, #tpu.memory_space<vmem>>, vector<1x1x4x8xf32>
    %18 = vector.shape_cast %17 : vector<1x1x4x8xf32> to vector<4x8xf32>
    %cst_16 = arith.constant dense<0.000000e+00> : vector<256x8xf32>
    %19 = tpu.matmul %16, %18, %cst_16 {dimension_numbers = #tpu.dot_dimension_numbers<[1], [0], [0], [1], [0, 0, 1, 1], [], []>} : vector<256x4xf32>, vector<4x8xf32>, vector<256x8xf32> -> vector<256x8xf32>
    %20 = arith.addf %14, %19 : vector<256x8xf32>
    %21 = vector.extract_strided_slice %1 {offsets = [1, 0, 0], sizes = [16, 16, 4], strides = [1, 1, 1]} : vector<18x18x4xf32> to vector<16x16x4xf32>
    %22 = vector.shape_cast %21 : vector<16x16x4xf32> to vector<256x4xf32>
    %c1_17 = arith.constant 1 : index
    %c0_18 = arith.constant 0 : index
    %c0_19 = arith.constant 0 : index
    %c0_20 = arith.constant 0 : index
    %23 = vector.load %arg2[%c1_17, %c0_18, %c0_19, %c0_20] : memref<3x3x4x8xf32, #tpu.memory_space<vmem>>, vector<1x1x4x8xf32>
    %24 = vector.shape_cast %23 : vector<1x1x4x8xf32> to vector<4x8xf32>
    %cst_21 = arith.constant dense<0.000000e+00> : vector<256x8xf32>
    %25 = tpu.matmul %22, %24, %cst_21 {dimension_numbers = #tpu.dot_dimension_numbers<[1], [0], [0], [1], [0, 0, 1, 1], [], []>} : vector<256x4xf32>, vector<4x8xf32>, vector<256x8xf32> -> vector<256x8xf32>
    %26 = arith.addf %20, %25 : vector<256x8xf32>
    %27 = vector.extract_strided_slice %1 {offsets = [1, 1, 0], sizes = [16, 16, 4], strides = [1, 1, 1]} : vector<18x18x4xf32> to vector<16x16x4xf32>
    %28 = vector.shape_cast %27 : vector<16x16x4xf32> to vector<256x4xf32>
    %c1_22 = arith.constant 1 : index
    %c1_23 = arith.constant 1 : index
    %c0_24 = arith.constant 0 : index
    %c0_25 = arith.constant 0 : index
    %29 = vector.load %arg2[%c1_22, %c1_23, %c0_24, %c0_25] : memref<3x3x4x8xf32, #tpu.memory_space<vmem>>, vector<1x1x4x8xf32>
    %30 = vector.shape_cast %29 : vector<1x1x4x8xf32> to vector<4x8xf32>
    %cst_26 = arith.constant dense<0.000000e+00> : vector<256x8xf32>
    %31 = tpu.matmul %28, %30, %cst_26 {dimension_numbers = #tpu.dot_dimension_numbers<[1], [0], [0], [1], [0, 0, 1, 1], [], []>} : vector<256x4xf32>, vector<4x8xf32>, vector<256x8xf32> -> vector<256x8xf32>
    %32 = arith.addf %26, %31 : vector<256x8xf32>
    %33 = vector.extract_strided_slice %1 {offsets = [1, 2, 0], sizes = [16, 16, 4], strides = [1, 1, 1]} : vector<18x18x4xf32> to vector<16x16x4xf32>
    %34 = vector.shape_cast %33 : vector<16x16x4xf32> to vector<256x4xf32>
    %c1_27 = arith.constant 1 : index
    %c2_28 = arith.constant 2 : index
    %c0_29 = arith.constant 0 : index
    %c0_30 = arith.constant 0 : index
    %35 = vector.load %arg2[%c1_27, %c2_28, %c0_29, %c0_30] : memref<3x3x4x8xf32, #tpu.memory_space<vmem>>, vector<1x1x4x8xf32>
    %36 = vector.shape_cast %35 : vector<1x1x4x8xf32> to vector<4x8xf32>
    %cst_31 = arith.constant dense<0.000000e+00> : vector<256x8xf32>
    %37 = tpu.matmul %34, %36, %cst_31 {dimension_numbers = #tpu.dot_dimension_numbers<[1], [0], [0], [1], [0, 0, 1, 1], [], []>} : vector<256x4xf32>, vector<4x8xf32>, vector<256x8xf32> -> vector<256x8xf32>
    %38 = arith.addf %32, %37 : vector<256x8xf32>
    %39 = vector.extract_strided_slice %1 {offsets = [2, 0, 0], sizes = [16, 16, 4], strides = [1, 1, 1]} : vector<18x18x4xf32> to vector<16x16x4xf32>
    %40 = vector.shape_cast %39 : vector<16x16x4xf32> to vector<256x4xf32>
    %c2_32 = arith.constant 2 : index
    %c0_33 = arith.constant 0 : index
    %c0_34 = arith.constant 0 : index
    %c0_35 = arith.constant 0 : index
    %41 = vector.load %arg2[%c2_32, %c0_33, %c0_34, %c0_35] : memref<3x3x4x8xf32, #tpu.memory_space<vmem>>, vector<1x1x4x8xf32>
    %42 = vector.shape_cast %41 : vector<1x1x4x8xf32> to vector<4x8xf32>
    %cst_36 = arith.constant dense<0.000000e+00> : vector<256x8xf32>
    %43 = tpu.matmul %40, %42, %cst_36 {dimension_numbers = #tpu.dot_dimension_numbers<[1], [0], [0], [1], [0, 0, 1, 1], [], []>} : vector<256x4xf32>, vector<4x8xf32>, vector<256x8xf32> -> vector<256x8xf32>
    %44 = arith.addf %38, %43 : vector<256x8xf32>
    %45 = vector.extract_strided_slice %1 {offsets = [2, 1, 0], sizes = [16, 16, 4], strides = [1, 1, 1]} : vector<18x18x4xf32> to vector<16x16x4xf32>
    %46 = vector.shape_cast %45 : vector<16x16x4xf32> to vector<256x4xf32>
    %c2_37 = arith.constant 2 : index
    %c1_38 = arith.constant 1 : index
    %c0_39 = arith.constant 0 : index
    %c0_40 = arith.constant 0 : index
    %47 = vector.load %arg2[%c2_37, %c1_38, %c0_39, %c0_40] : memref<3x3x4x8xf32, #tpu.memory_space<vmem>>, vector<1x1x4x8xf32>
    %48 = vector.shape_cast %47 : vector<1x1x4x8xf32> to vector<4x8xf32>
    %cst_41 = arith.constant dense<0.000000e+00> : vector<256x8xf32>
    %49 = tpu.matmul %46, %48, %cst_41 {dimension_numbers = #tpu.dot_dimension_numbers<[1], [0], [0], [1], [0, 0, 1, 1], [], []>} : vector<256x4xf32>, vector<4x8xf32>, vector<256x8xf32> -> vector<256x8xf32>
    %50 = arith.addf %44, %49 : vector<256x8xf32>
    %51 = vector.extract_strided_slice %1 {offsets = [2, 2, 0], sizes = [16, 16, 4], strides = [1, 1, 1]} : vector<18x18x4xf32> to vector<16x16x4xf32>
    %52 = vector.shape_cast %51 : vector<16x16x4xf32> to vector<256x4xf32>
    %c2_42 = arith.constant 2 : index
    %c2_43 = arith.constant 2 : index
    %c0_44 = arith.constant 0 : index
    %c0_45 = arith.constant 0 : index
    %53 = vector.load %arg2[%c2_42, %c2_43, %c0_44, %c0_45] : memref<3x3x4x8xf32, #tpu.memory_space<vmem>>, vector<1x1x4x8xf32>
    %54 = vector.shape_cast %53 : vector<1x1x4x8xf32> to vector<4x8xf32>
    %cst_46 = arith.constant dense<0.000000e+00> : vector<256x8xf32>
    %55 = tpu.matmul %52, %54, %cst_46 {dimension_numbers = #tpu.dot_dimension_numbers<[1], [0], [0], [1], [0, 0, 1, 1], [], []>} : vector<256x4xf32>, vector<4x8xf32>, vector<256x8xf32> -> vector<256x8xf32>
    %56 = arith.addf %50, %55 : vector<256x8xf32>
    %cst_47 = arith.constant 0.000000e+00 : f32
    %57 = vector.broadcast %cst_47 : f32 to vector<256x8xf32>
    %58 = arith.subf %57, %56 : vector<256x8xf32>
    %59 = math.exp %58 : vector<256x8xf32>
    %cst_48 = arith.constant 1.000000e+00 : f32
    %60 = vector.broadcast %cst_48 : f32 to vector<256x8xf32>
    %61 = arith.addf %60, %59 : vector<256x8xf32>
    %62 = arith.divf %56, %61 : vector<256x8xf32>
    %63 = vector.shape_cast %62 : vector<256x8xf32> to vector<16x16x8xf32>
    %c0_49 = arith.constant 0 : index
    %c0_50 = arith.constant 0 : index
    %c0_51 = arith.constant 0 : index
    %c0_52 = arith.constant 0 : index
    %64 = vector.load %arg3[%c0_49, %c0_50, %c0_51, %c0_52] : memref<1x16x16x8xf32, #tpu.memory_space<vmem>>, vector<1x16x16x8xf32>
    %65 = vector.shape_cast %64 : vector<1x16x16x8xf32> to vector<16x16x8xf32>
    %66 = vector.shape_cast %63 : vector<16x16x8xf32> to vector<1x16x16x8xf32>
    tpu.vector_store %arg3[%c0_49, %c0_50, %c0_51, %c0_52], %66 {strides = array<i32>} : memref<1x16x16x8xf32, #tpu.memory_space<vmem>>, vector<1x16x16x8xf32>,
    return
  }
  func.func @transform_0(%arg0: i32) -> (i32, i32, i32, i32, i32) {
    %c0_i32 = arith.constant 0 : i32
    %c0_i32_0 = arith.constant 0 : i32
    %c0_i32_1 = arith.constant 0 : i32
    %c0_i32_2 = arith.constant 0 : i32
    %c0_i32_3 = arith.constant 0 : i32
    return %arg0, %c0_i32, %c0_i32_0, %c0_i32_1, %c0_i32_2 : i32, i32, i32, i32, i32
  }
  func.func @transform_1(%arg0: i32) -> (i32, i32, i32, i32) {
    %c0_i32 = arith.constant 0 : i32
    %c0_i32_0 = arith.constant 0 : i32
    %c0_i32_1 = arith.constant 0 : i32
    %c0_i32_2 = arith.constant 0 : i32
    %c0_i32_3 = arith.constant 0 : i32
    return %c0_i32, %c0_i32_0, %c0_i32_1, %c0_i32_2 : i32, i32, i32, i32
  }
  func.func @transform_2(%arg0: i32) -> (i32, i32, i32, i32) {
    %c0_i32 = arith.constant 0 : i32
    %c0_i32_0 = arith.constant 0 : i32
    %c0_i32_1 = arith.constant 0 : i32
    %c0_i32_2 = arith.constant 0 : i32
    return %arg0, %c0_i32, %c0_i32_0, %c0_i32_1 : i32, i32, i32, i32
  }
}

</mosaic_0001>

<bundles_post_ra>
// kernel: tpu_custom_call.1
= control target key start
LH: loop header
LB: loop body
LE: loop exit
PB: predicated region body
PF: predicated region fallthrough
CT: control target
= control target key end

     0   :  { %s3139_s9 = smov 0   ;;  %s4755_s0 = inlined_call_operand.vmem [shape: f32[2,1,18,18,4], index: 0, kind: input, shape index: {}]   ;;  %s4756_s1 = inlined_call_operand.vmem [shape: f32[3,3,4,8], index: 1, kind: input, shape index: {}]   ;;  %s4757_s2 = inlined_call_operand.vmem [shape: f32[2,16,16,8], index: 2, kind: output, shape index: {}]  }
   0x1 LB: > { %s2633_s10 = sadd.s32 4294967295, %s3122_s9   ;;  %p2637_p0 = scmp.ge.s32.totalorder %s3122_s9, 1  ;;  %s3122_s9 = sphi %s3139_s9, %s12_s9  }
   0x2   : > { %p112_p1 = scmp.lt.s32.totalorder %s3122_s9, 3 }
   0x4   : > { %p113_p2 = pnand %p2637_p0, %p112_p1 }
   0x6   : > { %116 = sbr.rel (%p113_p2) target bundleno = 761 (0x2f9), region = 28 }
   0xb   : > { %v2641_v0 = vld [vmem:[%s4756_s1 + $0x4] sm:$0xf]  ;;  %vm395_vm0 = vcmask 1043456   ;;  %p134_p3 = scmp.lt.s32.totalorder %s2633_s10, 1  ;;  %v2708_v1 = vld [vmem:[%s4756_s1 + $0x8] sm:$0xf] }
   0xc   : > { %2949 = vmatpush.msk.msra.mxu1 %vm395_vm0, %v2641_v0  ;;  %2950 = vmatpush.msk.msra.mxu2 %vm395_vm0, %v2641_v0  ;;  %v2742_v2 = vld [vmem:[%s4756_s1 + $0xc] sm:$0xf]  ;;  %v198_v3 = vld [vmem:[%s4756_s1] sm:$0xf]  ;;  %v2776_v4 = vld [vmem:[%s4756_s1 + $0x10] sm:$0xf] }
   0xd   : > { %s4970_s10 = smov (!%p134_p3, %s2633_s10), 1  ;;  %2951 = vmatpush.msk.msra.mxu3 %vm395_vm0, %v2641_v0  ;;  %2642 = vmatpush.msk.msra.mxu0 %vm395_vm0, %v2641_v0  ;;  %vm247_vm1 = vcmask 1046528   ;;  %vm330_vm2 = vcmask 31744   ;;  %vm692_vm3 = vcmask 1045504   ;;  %vm2545_vm8 = vcmask 64512  }
   0xe   : > { %2709 = vmatpush.msk.msrb.mxu2 %vm395_vm0, %v2708_v1  ;;  %2675 = vmatpush.msk.msrb.mxu1 %vm395_vm0, %v198_v3  ;;  %s2952_s21 = smul.u32 432, %s4970_s10  ;;  %s2948_s5 = sshll.u32 %s4970_s10, 8 }
   0xf   : > { %2743 = vmatpush.msk.msrb.mxu3 %vm395_vm0, %v2742_v2  ;;  %2777 = vmatpush.msk.msrb.mxu0 %vm395_vm0, %v2776_v4  ;;  %s4296_s8 = scalar_lea.vmem %s4757_s2, %s2948_s5 }
  0x10   : > { %s3176_s24 = scalar_lea.vmem %s4755_s0, %s2952_s21 }
  0x11   : > { %v3179_v5 = vld [vmem:[%s3176_s24 + $0x60] sm:$0xff]  ;;  %v3182_v6 = vld [vmem:[%s3176_s24 + $0x68] sm:$0xff]  ;;  %v3203_v17 = vld [vmem:[%s3176_s24 + $0x70] sm:$0x3] }
  0x12   : > { %v3185_v7 = vld [vmem:[%s3176_s24 + $0xc0] sm:$0xff]  ;;  %v268_v8 = vrot.slane %v3179_v5, 1  ;;  %v269_v9 = vrot.slane %v3182_v6, 1  ;;  %v3190_v10 = vld [vmem:[%s3176_s24 + $0xc8] sm:$0xff]  ;;  %v3212_v20 = vld [vmem:[%s3176_s24 + $0xd0] sm:$0x3] }
  0x13   : > { %v288_v11 = vrot.slane %v3185_v7, 1  ;;  %v3194_v12 = vld [vmem:[%s3176_s24 + $0x120] sm:$0xff]  ;;  %v3197_v13 = vld [vmem:[%s3176_s24 + $0x128] sm:$0xff]  ;;  %v289_v14 = vrot.slane %v3190_v10, 1  ;;  %v3228_v26 = vld [vmem:[%s3176_s24 + $0x130] sm:$0x3] }
  0x14   : > { %4833 = vst [vmem:[#allocation2_spill] sm:$0xff] %v3194_v12  ;;  %v308_v15 = vrot.slane %v3194_v12, 1  ;;  %v309_v16 = vrot.slane %v3197_v13, 1  ;;  %v3206_v18 = vld [vmem:[%s3176_s24] sm:$0xff]  ;;  %v3209_v19 = vsel %vm247_vm1, %v268_v8, %v269_v9  ;;  %v3215_v21 = vld [vmem:[%s3176_s24 + $0x8] sm:$0xff]  ;;  %v271_v27 = vrot.slane %v3203_v17, 1 }
  0x15   : > { %4834 = vst [vmem:[#allocation3_spill] sm:$0xff] %v3197_v13  ;;  %v248_v22 = vrot.slane %v3206_v18, 1  ;;  %2651 = vmatmul.msk.f32.vlgmr.msra.gmra.mxu1 %vm330_vm2, %v3209_v19  ;;  %v3221_v23 = vsel %vm247_vm1, %v288_v11, %v289_v14  ;;  %v249_v25 = vrot.slane %v3215_v21, 1  ;;  %v3236_v28 = vld [vmem:[%s3176_s24 + $0x10] sm:$0x3]  ;;  %v291_v29 = vrot.slane %v3212_v20, 1 }
  0x16   : > { %4835 = vst [vmem:[#allocation4_spill] sm:$0xff] %v3221_v23  ;;  %v3224_v24 = vsel %vm247_vm1, %v308_v15, %v309_v16  ;;  %2659 = vmatmul.msk.f32.vlgmr.msra.gmra.mxu2 %vm330_vm2, %v3221_v23  ;;  %v311_v31 = vrot.slane %v3228_v26, 1  ;;  %v251_v32 = vrot.slane %v3236_v28, 1  ;;  %v3244_v33 = vsel %vm247_vm1, %v269_v9, %v271_v27  ;;  %v3253_v36 = vld [vmem:[%s3176_s24 + $0x78] sm:$0xff]  ;;  %v3256_v37 = vld [vmem:[%s3176_s24 + $0x80] sm:$0xff]  ;;  %v3338_v4 = vld [vmem:[%s3176_s24 + $0x90] sm:$0xff] }
  0x17   : > { %4836 = vst [vmem:[#allocation5_spill] sm:$0xff] %v3224_v24  ;;  %2667 = vmatmul.msk.f32.vlgmr.msra.gmra.mxu3 %vm330_vm2, %v3224_v24  ;;  %v250_v30 = vsel %vm247_vm1, %v248_v22, %v249_v25  ;;  %v3247_v34 = vsel %vm247_vm1, %v289_v14, %v291_v29  ;;  %v3259_v38 = vld [vmem:[%s3176_s24 + $0xd8] sm:$0xff]  ;;  %v3262_v39 = vld [vmem:[%s3176_s24 + $0xe0] sm:$0xff]  ;;  %v273_v43 = vrot.slane %v3253_v36, 1  ;;  %v274_v44 = vrot.slane %v3256_v37, 1  ;;  %v3344_v9 = vld [vmem:[%s3176_s24 + $0xf0] sm:$0xff] }
  0x18   : > { %4837 = vst [vmem:[#allocation6_spill] sm:$0xff] %v3228_v26  ;;  %2643 = vmatmul.msk.f32.vlgmr.msra.gmra.mxu0 %vm330_vm2, %v250_v30  ;;  %v3250_v35 = vsel %vm247_vm1, %v309_v16, %v311_v31  ;;  %v3265_v40 = vld [vmem:[%s3176_s24 + $0x138] sm:$0xff]  ;;  %v3268_v41 = vld [vmem:[%s3176_s24 + $0x140] sm:$0xff]  ;;  %v252_v42 = vsel %vm247_vm1, %v249_v25, %v251_v32  ;;  %v293_v47 = vrot.slane %v3259_v38, 1  ;;  %v294_v48 = vrot.slane %v3262_v39, 1  ;;  %v3350_v14 = vld [vmem:[%s3176_s24 + $0x150] sm:$0xff] }
  0x19   : > { %4838 = vst [vmem:[#allocation7_spill] sm:$0xff] %v3244_v33  ;;  %v3280_v45 = vld [vmem:[%s3176_s24 + $0x18] sm:$0xff]  ;;  %v3283_v46 = vld [vmem:[%s3176_s24 + $0x20] sm:$0xff]  ;;  %v313_v49 = vrot.slane %v3265_v40, 1  ;;  %v314_v50 = vrot.slane %v3268_v41, 1  ;;  %v3293_v53 = vsel %vm247_vm1, %v273_v43, %v274_v44  ;;  %v278_v22 = vrot.slane %v3338_v4, 1 }
  0x1a   : > { %4839 = vst [vmem:[#allocation8_spill] sm:$0xff] %v3247_v34  ;;  %v253_v51 = vrot.slane %v3280_v45, 1  ;;  %v254_v52 = vrot.slane %v3283_v46, 1  ;;  %v3296_v54 = vsel %vm247_vm1, %v293_v47, %v294_v48  ;;  %v3302_v56 = vld [vmem:[%s3176_s24 + $0x88] sm:$0x3]  ;;  %v3341_v8 = vld [vmem:[%s3176_s24 + $0x98] sm:$0xff] }
  0x1b   : > { %4840 = vst [vmem:[#allocation9_spill] sm:$0xff] %v3250_v35  ;;  %v3299_v55 = vsel %vm247_vm1, %v313_v49, %v314_v50  ;;  %v3305_v57 = vld [vmem:[%s3176_s24 + $0xe8] sm:$0x3]  ;;  %v276_v60 = vrot.slane %v3302_v56, 1  ;;  %v3347_v11 = vld [vmem:[%s3176_s24 + $0xf8] sm:$0xff]  ;;  %v279_v25 = vrot.slane %v3341_v8, 1 }
  0x1c   : > { %4841 = vst [vmem:[#allocation10_spill] sm:$0xff] %v3265_v40  ;;  %v3308_v58 = vld [vmem:[%s3176_s24 + $0x148] sm:$0x3]  ;;  %v3313_v59 = vsel %vm247_vm1, %v253_v51, %v254_v52  ;;  %v296_v62 = vrot.slane %v3305_v57, 1  ;;  %v3353_v15 = vld [vmem:[%s3176_s24 + $0x158] sm:$0xff]  ;;  %v3367_v27 = vld [vmem:[%s3176_s24 + $0x30] sm:$0xff] }
  0x1d   : > { %4842 = vst [vmem:[#allocation11_spill] sm:$0xff] %v3268_v41  ;;  %2652 = vmatmul.msk.f32.gmra.mxu1 %vm330_vm2, %v3244_v33  ;;  %v3321_v61 = vld [vmem:[%s3176_s24 + $0x28] sm:$0x3]  ;;  %v316_v63 = vrot.slane %v3308_v58, 1  ;;  %v3329_v1 = vsel %vm247_vm1, %v274_v44, %v276_v60  ;;  %v3370_v29 = vld [vmem:[%s3176_s24 + $0x38] sm:$0xff]  ;;  %v298_v30 = vrot.slane %v3344_v9, 1  ;;  %v3381_v47 = vsel %vm247_vm1, %v278_v22, %v279_v25 }
  0x1e   : > { %2660 = vmatmul.msk.f32.gmra.mxu2 %vm330_vm2, %v3247_v34  ;;  %4843 = vst [vmem:[#allocation12_spill] sm:$0xff] %v3293_v53  ;;  %v256_v0 = vrot.slane %v3321_v61, 1  ;;  %v3332_v2 = vsel %vm247_vm1, %v294_v48, %v296_v62  ;;  %v299_v31 = vrot.slane %v3347_v11, 1  ;;  %v318_v32 = vrot.slane %v3350_v14, 1  ;;  %v3384_v48 = vld [vmem:[%s3176_s24 + $0xa0] sm:$0x3] }
  0x1f   : > { %2668 = vmatmul.msk.f32.gmra.mxu3 %vm330_vm2, %v3250_v35  ;;  %4844 = vst [vmem:[#allocation13_spill] sm:$0xff] %v3299_v55  ;;  %v3335_v3 = vsel %vm247_vm1, %v314_v50, %v316_v63  ;;  %v258_v43 = vrot.slane %v3367_v27, 1  ;;  %v259_v44 = vrot.slane %v3370_v29, 1  ;;  %v3393_v51 = vld [vmem:[%s3176_s24 + $0x100] sm:$0x3]  ;;  %v281_v60 = vrot.slane %v3384_v48, 1 }
  0x20   : > { %2644 = vmatmul.msk.f32.gmra.mxu0 %vm330_vm2, %v252_v42  ;;  %4845 = vst [vmem:[#allocation14_spill] sm:$0xff] %v3308_v58  ;;  %v3358_v16 = vsel %vm247_vm1, %v254_v52, %v256_v0  ;;  %v319_v42 = vrot.slane %v3353_v15, 1  ;;  %v3387_v49 = vsel %vm247_vm1, %v298_v30, %v299_v31  ;;  %v3396_v52 = vld [vmem:[%s3176_s24 + $0x160] sm:$0x3]  ;;  %v2844_v0 = vld [vmem:[%s4756_s1 + $0x18] sm:$0xf] }
  0x21   : > { %4846 = vst [vmem:[#allocation15_spill] sm:$0xff] %v3329_v1  ;;  %v3402_v62 = vsel %vm247_vm1, %v258_v43, %v259_v44  ;;  %v3405_v63 = vld [vmem:[%s3176_s24 + $0x40] sm:$0x3]  ;;  %v2878_v22 = vld [vmem:[%s4756_s1 + $0x1c] sm:$0xf]  ;;  %v321_v43 = vrot.slane %v3396_v52, 1  ;;  %2845 = vmatpush.msk.msra.mxu2 %vm395_vm0, %v2844_v0 }
  0x22   : > { %4847 = vst [vmem:[#allocation16_spill] sm:$0xff] %v3335_v3  ;;  %v3390_v50 = vsel %vm247_vm1, %v318_v32, %v319_v42  ;;  %v2810_v30 = vld [vmem:[%s4756_s1 + $0x14] sm:$0xf]  ;;  %v301_v32 = vrot.slane %v3393_v51, 1  ;;  %2879 = vmatpush.msk.msra.mxu3 %vm395_vm0, %v2878_v22  ;;  %v3438_v0 = vld [vmem:[%s3176_s24 + $0xa8] sm:$0xff] }
  0x23   : > { %4848 = vst [vmem:[#allocation17_spill] sm:$0xff] %v3350_v14  ;;  %2811 = vmatpush.msk.msra.mxu1 %vm395_vm0, %v2810_v30  ;;  %v3441_v22 = vld [vmem:[%s3176_s24 + $0xb0] sm:$0xff]  ;;  %v3444_v14 = vld [vmem:[%s3176_s24 + $0x108] sm:$0xff]  ;;  %v3497_v24 = vld [vmem:[%s3176_s24 + $0x118] sm:$0x3] }
  0x24   : > { %4849 = vst [vmem:[#allocation18_spill] sm:$0xff] %v3353_v15  ;;  %v261_v15 = vrot.slane %v3405_v63, 1  ;;  %v3432_v58 = vsel %vm247_vm1, %v299_v31, %v301_v32  ;;  %v3447_v30 = vld [vmem:[%s3176_s24 + $0x110] sm:$0xff]  ;;  %v283_v31 = vrot.slane %v3438_v0, 1 }
  0x25   : > { %2653 = vmatmul.msk.f32.gmra.mxu1 %vm330_vm2, %v3293_v53  ;;  %4850 = vst [vmem:[#allocation19_spill] sm:$0xff] %v3381_v47  ;;  %v3453_v41 = vld [vmem:[%s3176_s24 + $0x170] sm:$0xff] }
  0x26   : > { %2661 = vmatmul.msk.f32.gmra.mxu2 %vm330_vm2, %v3296_v54  ;;  %4851 = vst [vmem:[#allocation20_spill] sm:$0xff] %v3390_v50  ;;  %v3470_v32 = vld [vmem:[%s3176_s24 + $0x50] sm:$0xff] }
  0x27   : > { %2669 = vmatmul.msk.f32.gmra.mxu3 %vm330_vm2, %v3299_v55  ;;  %4852 = vst [vmem:[#allocation21_spill] sm:$0xff] %v3393_v51  ;;  %v324_v55 = vrot.slane %v3453_v41, 1  ;;  %v264_v40 = vrot.slane %v3470_v32, 1 }
  0x28   : > { %2645 = vmatmul.msk.f32.gmra.mxu0 %vm330_vm2, %v3313_v59  ;;  %4853 = vst [vmem:[#allocation22_spill] sm:$0xff] %v3396_v52  ;;  %v3435_v52 = vsel %vm247_vm1, %v319_v42, %v321_v43  ;;  %v284_v42 = vrot.slane %v3441_v22, 1  ;;  %v304_v43 = vrot.slane %v3447_v30, 1 }
  0x29   : > { %4855 = vst [vmem:[#allocation24_spill] sm:$0xff] %v3435_v52 }
  0x2a   : > { %4856 = vst [vmem:[#allocation25_spill] sm:$0xff] %v3447_v30  ;;  %v3485_v35 = vsel %vm247_vm1, %v283_v31, %v284_v42  ;;  %v3513_v31 = vld [vmem:[%s3176_s24 + $0x58] sm:$0x3] }
  0x2b   : > { %4858 = vst [vmem:[#allocation27_spill] sm:$0xff] %v3453_v41  ;;  %v3494_v41 = vld [vmem:[%s3176_s24 + $0xb8] sm:$0x3] }
  0x2c   : > { %4859 = vst [vmem:[#allocation28_spill] sm:$0xff] %v3485_v35 }
  0x2d   : > { %2654 = vmatmul.msk.f32.gmra.mxu1 %vm330_vm2, %v3329_v1  ;;  %4862 = vst [vmem:[#allocation31_spill] sm:$0xff] %v3497_v24 }
  0x2e   : > { %2662 = vmatmul.msk.f32.gmra.mxu2 %vm330_vm2, %v3332_v2 }
  0x2f   : > { %2670 = vmatmul.msk.f32.gmra.mxu3 %vm330_vm2, %v3335_v3  ;;  %v3450_v3 = vld [vmem:[%s3176_s24 + $0x168] sm:$0xff] }
  0x30   : > { %2646 = vmatmul.msk.f32.gmra.mxu0 %vm330_vm2, %v3358_v16  ;;  %4857 = vst [vmem:[#allocation26_spill] sm:$0xff] %v3450_v3 }
  0x35   : > { %2655 = vmatmul.msk.f32.gmra.mxu1 %vm330_vm2, %v3381_v47 }
  0x36   : > { %2663 = vmatmul.msk.f32.gmra.mxu2 %vm330_vm2, %v3387_v49 }
  0x37   : > { %2671 = vmatmul.msk.f32.gmra.mxu3 %vm330_vm2, %v3390_v50  ;;  %v3429_v50 = vsel %vm247_vm1, %v279_v25, %v281_v60  ;;  %v3458_v25 = vsel %vm247_vm1, %v259_v44, %v261_v15  ;;  %v3467_v60 = vld [vmem:[%s3176_s24 + $0x48] sm:$0xff]  ;;  %v2912_v15 = vld [vmem:[%s4756_s1 + $0x20] sm:$0xf]  ;;  %v303_v44 = vrot.slane %v3444_v14, 1 }
  0x38   : > { %2647 = vmatmul.msk.f32.gmra.mxu0 %vm330_vm2, %v3402_v62  ;;  %4854 = vst [vmem:[#allocation23_spill] sm:$0xff] %v3429_v50  ;;  %v263_v26 = vrot.slane %v3467_v60, 1 }
  0x39   : > { %2913 = vmatpush.msk.msra.mxu0 %vm395_vm0, %v2912_v15  ;;  %v3488_v13 = vsel %vm247_vm1, %v303_v44, %v304_v43  ;;  %v3500_v15 = vld [vmem:[%s3176_s24 + $0x178] sm:$0x3]  ;;  %v306_v44 = vrot.slane %v3497_v24, 1 }
  0x3a   : > { %4860 = vst [vmem:[#allocation29_spill] sm:$0xff] %v3488_v13  ;;  %v3505_v12 = vsel %vm247_vm1, %v263_v26, %v264_v40  ;;  %v326_v30 = vrot.slane %v3500_v15, 1  ;;  %v266_v26 = vrot.slane %v3513_v31, 1 }
  0x3c   : > { %v3532_v24 = vsel %vm247_vm1, %v264_v40, %v266_v26  ;;  %v696_v40 = vrot.slane %v3236_v28, 2  ;;  %v708_v26 = vrot.slane %v3467_v60, 2 }
  0x3d   : > { %2656 = vmatmul.msk.f32.gmra.mxu1 %vm330_vm2, %v3429_v50 }
  0x3e   : > { %2664 = vmatmul.msk.f32.gmra.mxu2 %vm330_vm2, %v3432_v58 }
  0x3f   : > { %2672 = vmatmul.msk.f32.gmra.mxu3 %vm330_vm2, %v3435_v52  ;;  %v323_v52 = vrot.slane %v3450_v3, 1 }
  0x40   : > { %2648 = vmatmul.msk.f32.gmra.mxu0 %vm330_vm2, %v3458_v25 }
  0x41   : > { %v3491_v3 = vsel %vm247_vm1, %v323_v52, %v324_v55  ;;  %v286_v52 = vrot.slane %v3494_v41, 1 }
  0x42   : > { %4861 = vst [vmem:[#allocation30_spill] sm:$0xff] %v3491_v3 }
  0x43   : > { %v3521_v51 = vsel %vm247_vm1, %v284_v42, %v286_v52  ;;  %v693_v42 = vrot.slane %v3206_v18, 2  ;;  %v699_v52 = vrot.slane %v3283_v46, 2 }
  0x44   : > { %4863 = vst [vmem:[#allocation32_spill] sm:$0xff] %v3521_v51 }
  0x45   : > { %2657 = vmatmul.msk.f32.gmra.mxu1 %vm330_vm2, %v3485_v35 }
  0x46   : > { %2665 = vmatmul.msk.f32.gmra.mxu2 %vm330_vm2, %v3488_v13  ;;  %v3524_v13 = vsel %vm247_vm1, %v304_v43, %v306_v44  ;;  %v694_v43 = vrot.slane %v3215_v21, 2 }
  0x47   : > { %2673 = vmatmul.msk.f32.gmra.mxu3 %vm330_vm2, %v3491_v3  ;;  %v3527_v3 = vsel %vm247_vm1, %v324_v55, %v326_v30 }
  0x48   : > { %2649 = vmatmul.msk.f32.gmra.mxu0 %vm330_vm2, %v3505_v12  ;;  %4864 = vst [vmem:[#allocation33_spill] sm:$0xff] %v3527_v3  ;;  %v695_v55 = vsel %vm692_vm3, %v693_v42, %v694_v43  ;;  %v697_v30 = vsel %vm692_vm3, %v694_v43, %v696_v40  ;;  %v709_v42 = vrot.slane %v3470_v32, 2  ;;  %v711_v43 = vrot.slane %v3513_v31, 2 }
  0x49   : > { %v713_v40 = vrot.slane %v3179_v5, 2 }
  0x4d   : > { %2658 = vmatmul.msk.f32.gmra.mxu1 %vm330_vm2, %v3521_v51 }
  0x4e   : > { %2666 = vmatmul.msk.f32.gmra.mxu2 %vm330_vm2, %v3524_v13 }
  0x4f   : > { %2674 = vmatmul.msk.f32.gmra.mxu3 %vm330_vm2, %v3527_v3 }
  0x50   : > { %2650 = vmatmul.msk.f32.gmra.mxu0 %vm330_vm2, %v3532_v24 }
  0x55   : > { %2676 = vmatmul.msk.f32.vlgmr.msrb.gmra.mxu1 %vm330_vm2, %v3206_v18  ;;  %v698_v18 = vrot.slane %v3280_v45, 2 }
  0x56   : > { %2710 = vmatmul.msk.f32.vlgmr.msrb.gmra.mxu2 %vm330_vm2, %v695_v55  ;;  %v3624_v55 = vsel %vm692_vm3, %v709_v42, %v711_v43 }
  0x57   : > { %2744 = vmatmul.msk.f32.vlgmr.msrb.gmra.mxu3 %vm330_vm2, %v3280_v45  ;;  %v3562_v28 = vsel %vm692_vm3, %v698_v18, %v699_v52 }
  0x58   : > { %2778 = vmatmul.msk.f32.vlgmr.msrb.gmra.mxu0 %vm330_vm2, %v3313_v59 }
  0x5d   : > { %2677 = vmatmul.msk.f32.gmra.mxu1 %vm330_vm2, %v3215_v21  ;;  %v701_v21 = vrot.slane %v3321_v61, 2 }
  0x5e   : > { %2711 = vmatmul.msk.f32.gmra.mxu2 %vm330_vm2, %v697_v30  ;;  %v714_v30 = vrot.slane %v3182_v6, 2 }
  0x5f   : > { %2745 = vmatmul.msk.f32.gmra.mxu3 %vm330_vm2, %v3283_v46  ;;  %v3574_v59 = vsel %vm692_vm3, %v699_v52, %v701_v21  ;;  %v716_v21 = vrot.slane %v3203_v17, 2  ;;  %v718_v17 = vrot.slane %v3253_v36, 2 }
  0x60   : > { %2779 = vmatmul.msk.f32.gmra.mxu0 %vm330_vm2, %v3358_v16  ;;  %v704_v16 = vrot.slane %v3370_v29, 2  ;;  %v3639_v18 = vsel %vm692_vm3, %v713_v40, %v714_v30 }
  0x61   : > { %4865 = vst [vmem:[#allocation34_spill] sm:$0xff] %v3639_v18 }
  0x65   : > { %2678 = vmatmul.msk.f32.gmra.mxu1 %vm330_vm2, %v3280_v45  ;;  %v703_v45 = vrot.slane %v3367_v27, 2 }
  0x66   : > { %2712 = vmatmul.msk.f32.gmra.mxu2 %vm330_vm2, %v3562_v28 }
  0x67   : > { %2746 = vmatmul.msk.f32.gmra.mxu3 %vm330_vm2, %v3367_v27  ;;  %v3587_v61 = vsel %vm692_vm3, %v703_v45, %v704_v16 }
  0x68   : > { %2780 = vmatmul.msk.f32.gmra.mxu0 %vm330_vm2, %v3402_v62 }
  0x6d   : > { %2679 = vmatmul.msk.f32.gmra.mxu1 %vm330_vm2, %v3283_v46  ;;  %v706_v46 = vrot.slane %v3405_v63, 2  ;;  %v3612_v63 = vsel %vm692_vm3, %v708_v26, %v709_v42  ;;  %v719_v42 = vrot.slane %v3256_v37, 2 }
  0x6e   : > { %2713 = vmatmul.msk.f32.gmra.mxu2 %vm330_vm2, %v3574_v59 }
  0x6f   : > { %2747 = vmatmul.msk.f32.gmra.mxu3 %vm330_vm2, %v3370_v29  ;;  %v3599_v44 = vsel %vm692_vm3, %v704_v16, %v706_v46 }
  0x70   : > { %2781 = vmatmul.msk.f32.gmra.mxu0 %vm330_vm2, %v3458_v25 }
  0x75   : > { %2680 = vmatmul.msk.f32.gmra.mxu1 %vm330_vm2, %v3367_v27 }
  0x76   : > { %2714 = vmatmul.msk.f32.gmra.mxu2 %vm330_vm2, %v3587_v61 }
  0x77   : > { %2748 = vmatmul.msk.f32.gmra.mxu3 %vm330_vm2, %v3467_v60 }
  0x78   : > { %2782 = vmatmul.msk.f32.gmra.mxu0 %vm330_vm2, %v3505_v12 }
  0x7d   : > { %2681 = vmatmul.msk.f32.gmra.mxu1 %vm330_vm2, %v3370_v29 }
  0x7e   : > { %2715 = vmatmul.msk.f32.gmra.mxu2 %vm330_vm2, %v3599_v44 }
  0x7f   : > { %2749 = vmatmul.msk.f32.gmra.mxu3 %vm330_vm2, %v3470_v32 }
  0x80   : > { %2783 = vmatmul.msk.f32.gmra.mxu0 %vm330_vm2, %v3532_v24 }
  0x85   : > { %2682 = vmatmul.msk.f32.gmra.mxu1 %vm330_vm2, %v3467_v60 }
  0x86   : > { %2716 = vmatmul.msk.f32.gmra.mxu2 %vm330_vm2, %v3612_v63 }
  0x87   : > { %2750 = vmatmul.msk.f32.gmra.mxu3 %vm330_vm2, %v3179_v5 }
  0x88   : > { %2784 = vmatmul.msk.f32.gmra.mxu0 %vm330_vm2, %v3209_v19 }
  0x8d   : > { %2683 = vmatmul.msk.f32.gmra.mxu1 %vm330_vm2, %v3470_v32 }
  0x8e   : > { %2717 = vmatmul.msk.f32.gmra.mxu2 %vm330_vm2, %v3624_v55 }
  0x8f   : > { %2751 = vmatmul.msk.f32.gmra.mxu3 %vm330_vm2, %v3182_v6 }
  0x90   : > { %2785 = vmatmul.msk.f32.gmra.mxu0 %vm330_vm2, %v3244_v33 }
  0x92   : > { %v3636_v31 = vpop.f32.mrf.mxu1 }
  0x95   : > { %2684 = vmatmul.msk.f32.gmra.mxu1 %vm330_vm2, %v3179_v5  ;;  %v3643_v52 = vpop.f32.mrf.mxu0  ;;  %v3659_v5 = vsel %vm692_vm3, %v714_v30, %v716_v21  ;;  %v3680_v30 = vsel %vm692_vm3, %v718_v17, %v719_v42 }
  0x96   : > { %2718 = vmatmul.msk.f32.gmra.mxu2 %vm330_vm2, %v3639_v18  ;;  %4867 = vst [vmem:[#allocation36_spill] sm:$0xff] %v3659_v5 }
  0x97   : > { %2752 = vmatmul.msk.f32.gmra.mxu3 %vm330_vm2, %v3253_v36  ;;  %4869 = vst [vmem:[#allocation38_spill] sm:$0xff] %v3680_v30 }
  0x98   : > { %2786 = vmatmul.msk.f32.gmra.mxu0 %vm330_vm2, %v3293_v53 }
  0x99   : > { %v3652_v45 = vpop.f32.mrf.mxu2 }
  0x9a   : > { %v3654_v16 = vpop.f32.mrf.mxu3  ;;  %v3656_v46 = vpop.f32.mrf.mxu1 }
  0x9b   : > { %4866 = vst [vmem:[#allocation35_spill] sm:$0xff] %v3654_v16  ;;  %v721_v16 = vrot.slane %v3302_v56, 2  ;;  %v723_v56 = vrot.slane %v3338_v4, 2 }
  0x9d   : > { %2685 = vmatmul.msk.f32.gmra.mxu1 %vm330_vm2, %v3182_v6  ;;  %v3663_v26 = vpop.f32.mrf.mxu0 }
  0x9e   : > { %2719 = vmatmul.msk.f32.gmra.mxu2 %vm330_vm2, %v3659_v5 }
  0x9f   : > { %2753 = vmatmul.msk.f32.gmra.mxu3 %vm330_vm2, %v3256_v37 }
  0xa0   : > { %2787 = vmatmul.msk.f32.gmra.mxu0 %vm330_vm2, %v3329_v1 }
  0xa1   : > { %v3673_v43 = vpop.f32.mrf.mxu2 }
  0xa2   : > { %v3675_v40 = vpop.f32.mrf.mxu3  ;;  %v3677_v6 = vpop.f32.mrf.mxu1 }
  0xa3   : > { %4868 = vst [vmem:[#allocation37_spill] sm:$0xff] %v3675_v40 }
  0xa5   : > { %2686 = vmatmul.msk.f32.gmra.mxu1 %vm330_vm2, %v3253_v36  ;;  %v3684_v21 = vpop.f32.mrf.mxu0  ;;  %v3700_v36 = vsel %vm692_vm3, %v719_v42, %v721_v16 }
  0xa6   : > { %2720 = vmatmul.msk.f32.gmra.mxu2 %vm330_vm2, %v3680_v30  ;;  %4871 = vst [vmem:[#allocation40_spill] sm:$0xff] %v3700_v36 }
  0xa7   : > { %2754 = vmatmul.msk.f32.gmra.mxu3 %vm330_vm2, %v3338_v4 }
  0xa8   : > { %2788 = vmatmul.msk.f32.gmra.mxu0 %vm330_vm2, %v3381_v47 }
  0xa9   : > { %v3693_v40 = vpop.f32.mrf.mxu2 }
  0xaa   : > { %v3695_v17 = vpop.f32.mrf.mxu3  ;;  %v3697_v1 = vpop.f32.mrf.mxu1 }
  0xab   : > { %4870 = vst [vmem:[#allocation39_spill] sm:$0xff] %v3695_v17  ;;  %v724_v17 = vrot.slane %v3341_v8, 2 }
  0xad   : > { %2687 = vmatmul.msk.f32.gmra.mxu1 %vm330_vm2, %v3256_v37  ;;  %v3704_v30 = vpop.f32.mrf.mxu0  ;;  %v3721_v47 = vsel %vm692_vm3, %v723_v56, %v724_v17 }
  0xae   : > { %2721 = vmatmul.msk.f32.gmra.mxu2 %vm330_vm2, %v3700_v36  ;;  %4873 = vst [vmem:[#allocation42_spill] sm:$0xff] %v3721_v47 }
  0xaf   : > { %2755 = vmatmul.msk.f32.gmra.mxu3 %vm330_vm2, %v3341_v8 }
  0xb0   : > { %2789 = vmatmul.msk.f32.gmra.mxu0 %vm330_vm2, %v3429_v50  ;;  %v726_v50 = vrot.slane %v3384_v48, 2  ;;  %v728_v48 = vrot.slane %v3438_v0, 2 }
  0xb1   : > { %v3714_v16 = vpop.f32.mrf.mxu2 }
  0xb2   : > { %v3716_v42 = vpop.f32.mrf.mxu3  ;;  %v3718_v37 = vpop.f32.mrf.mxu1 }
  0xb3   : > { %4872 = vst [vmem:[#allocation41_spill] sm:$0xff] %v3716_v42 }
  0xb5   : > { %2688 = vmatmul.msk.f32.gmra.mxu1 %vm330_vm2, %v3338_v4  ;;  %v3725_v36 = vpop.f32.mrf.mxu0  ;;  %v3741_v4 = vsel %vm692_vm3, %v724_v17, %v726_v50 }
  0xb6   : > { %2722 = vmatmul.msk.f32.gmra.mxu2 %vm330_vm2, %v3721_v47  ;;  %4875 = vst [vmem:[#allocation44_spill] sm:$0xff] %v3741_v4 }
  0xb7   : > { %2756 = vmatmul.msk.f32.gmra.mxu3 %vm330_vm2, %v3438_v0 }
  0xb8   : > { %2790 = vmatmul.msk.f32.gmra.mxu0 %vm330_vm2, %v3485_v35 }
  0xb9   : > { %v3734_v42 = vpop.f32.mrf.mxu2 }
  0xba   : > { %v3736_v56 = vpop.f32.mrf.mxu3  ;;  %v3738_v53 = vpop.f32.mrf.mxu1 }
  0xbb   : > { %4874 = vst [vmem:[#allocation43_spill] sm:$0xff] %v3736_v56  ;;  %v729_v56 = vrot.slane %v3441_v22, 2 }
  0xbd   : > { %2689 = vmatmul.msk.f32.gmra.mxu1 %vm330_vm2, %v3341_v8  ;;  %v3745_v47 = vpop.f32.mrf.mxu0  ;;  %v3762_v35 = vsel %vm692_vm3, %v728_v48, %v729_v56 }
  0xbe   : > { %2723 = vmatmul.msk.f32.gmra.mxu2 %vm330_vm2, %v3741_v4  ;;  %4878 = vst [vmem:[#allocation47_spill] sm:$0xff] %v3762_v35 }
  0xbf   : > { %2757 = vmatmul.msk.f32.gmra.mxu3 %vm330_vm2, %v3441_v22 }
  0xc0   : > { %2791 = vmatmul.msk.f32.gmra.mxu0 %vm330_vm2, %v3521_v51  ;;  %v731_v51 = vrot.slane %v3494_v41, 2  ;;  %v733_v41 = vrot.slane %v3185_v7, 2 }
  0xc1   : > { %v3755_v50 = vpop.f32.mrf.mxu2 }
  0xc2   : > { %4876 = vst [vmem:[#allocation45_spill] sm:$0xff] %v3755_v50  ;;  %v3757_v17 = vpop.f32.mrf.mxu3  ;;  %v3759_v8 = vpop.f32.mrf.mxu1 }
  0xc3   : > { %4877 = vst [vmem:[#allocation46_spill] sm:$0xff] %v3757_v17 }
  0xc5   : > { %2690 = vmatmul.msk.f32.gmra.mxu1 %vm330_vm2, %v3438_v0  ;;  %v3766_v4 = vpop.f32.mrf.mxu0  ;;  %v3782_v0 = vsel %vm692_vm3, %v729_v56, %v731_v51 }
  0xc6   : > { %2724 = vmatmul.msk.f32.gmra.mxu2 %vm330_vm2, %v3762_v35  ;;  %4881 = vst [vmem:[#allocation50_spill] sm:$0xff] %v3782_v0 }
  0xc7   : > { %2758 = vmatmul.msk.f32.gmra.mxu3 %vm330_vm2, %v3185_v7 }
  0xc8   : > { %2792 = vmatmul.msk.f32.gmra.mxu0 %vm330_vm2, %v3221_v23 }
  0xc9   : > { %v3775_v17 = vpop.f32.mrf.mxu2 }
  0xca   : > { %4879 = vst [vmem:[#allocation48_spill] sm:$0xff] %v3775_v17  ;;  %v3777_v48 = vpop.f32.mrf.mxu3  ;;  %v3779_v5 = vpop.f32.mrf.mxu1 }
  0xcb   : > { %4880 = vst [vmem:[#allocation49_spill] sm:$0xff] %v3777_v48  ;;  %v734_v48 = vrot.slane %v3190_v10, 2 }
  0xcd   : > { %2691 = vmatmul.msk.f32.gmra.mxu1 %vm330_vm2, %v3441_v22  ;;  %v3786_v35 = vpop.f32.mrf.mxu0  ;;  %v3801_v23 = vsel %vm692_vm3, %v733_v41, %v734_v48 }
  0xce   : > { %2725 = vmatmul.msk.f32.gmra.mxu2 %vm330_vm2, %v3782_v0  ;;  %4884 = vst [vmem:[#allocation53_spill] sm:$0xff] %v3801_v23 }
  0xcf   : > { %2759 = vmatmul.msk.f32.gmra.mxu3 %vm330_vm2, %v3190_v10 }
  0xd0   : > { %2793 = vmatmul.msk.f32.gmra.mxu0 %vm330_vm2, %v3247_v34  ;;  %v736_v34 = vrot.slane %v3212_v20, 2  ;;  %v738_v20 = vrot.slane %v3259_v38, 2 }
  0xd1   : > { %v3796_v51 = vpop.f32.mrf.mxu2 }
  0xd2   : > { %4882 = vst [vmem:[#allocation51_spill] sm:$0xff] %v3796_v51  ;;  %v3798_v56 = vpop.f32.mrf.mxu3  ;;  %v596_v22 = vpop.f32.mrf.mxu1 }
  0xd3   : > { %4883 = vst [vmem:[#allocation52_spill] sm:$0xff] %v3798_v56  ;;  %v597_v51 = vadd.f32 %v596_v22, %v3643_v52  ;;  %v739_v52 = vrot.slane %v3262_v39, 2 }
  0xd5   : > { %2692 = vmatmul.msk.f32.gmra.mxu1 %vm330_vm2, %v3185_v7  ;;  %v1175_v0 = vpop.f32.mrf.mxu0  ;;  %v3814_v7 = vsel %vm692_vm3, %v734_v48, %v736_v34 }
  0xd6   : > { %2726 = vmatmul.msk.f32.gmra.mxu2 %vm330_vm2, %v3801_v23 }
  0xd7   : > { %2760 = vmatmul.msk.f32.gmra.mxu3 %vm330_vm2, %v3259_v38 }
  0xd8   : > { %2794 = vmatmul.msk.f32.gmra.mxu0 %vm330_vm2, %v3296_v54 }
  0xd9   : > { %v859_v56 = vpop.f32.mrf.mxu2 }
  0xda   : > { %v1015_v41 = vpop.f32.mrf.mxu3  ;;  %v955_v17 = vadd.f32 %v859_v56, %v597_v51  ;;  %v599_v50 = vpop.f32.mrf.mxu1 }
  0xdb   : > { %v600_v34 = vadd.f32 %v599_v50, %v3663_v26  ;;  %v741_v26 = vrot.slane %v3305_v57, 2  ;;  %v743_v57 = vrot.slane %v3344_v9, 2 }
  0xdc   : > { %v1111_v33 = vadd.f32 %v1015_v41, %v955_v17 }
  0xdd   : > { %2693 = vmatmul.msk.f32.gmra.mxu1 %vm330_vm2, %v3190_v10  ;;  %v1178_v23 = vpop.f32.mrf.mxu0 }
  0xde   : > { %v3818_v18 = vadd.f32 %v1175_v0, %v1111_v33  ;;  %2727 = vmatmul.msk.f32.gmra.mxu2 %vm330_vm2, %v3814_v7  ;;  %v3830_v0 = vsel %vm692_vm3, %v738_v20, %v739_v52 }
  0xdf   : > { %2761 = vmatmul.msk.f32.gmra.mxu3 %vm330_vm2, %v3262_v39 }
  0xe0   : > { %2795 = vmatmul.msk.f32.gmra.mxu0 %vm330_vm2, %v3332_v2 }
  0xe1   : > { %v862_v17 = vpop.f32.mrf.mxu2 }
  0xe2   : > { %v1018_v10 = vpop.f32.mrf.mxu3  ;;  %v956_v48 = vadd.f32 %v862_v17, %v600_v34  ;;  %v602_v33 = vpop.f32.mrf.mxu1 }
  0xe3   : > { %v603_v50 = vadd.f32 %v602_v33, %v3684_v21  ;;  %v744_v21 = vrot.slane %v3347_v11, 2 }
  0xe4   : > { %v1112_v51 = vadd.f32 %v1018_v10, %v956_v48 }
  0xe5   : > { %2694 = vmatmul.msk.f32.gmra.mxu1 %vm330_vm2, %v3259_v38  ;;  %v1181_v56 = vpop.f32.mrf.mxu0 }
  0xe6   : > { %v3834_v22 = vadd.f32 %v1178_v23, %v1112_v51  ;;  %2728 = vmatmul.msk.f32.gmra.mxu2 %vm330_vm2, %v3830_v0  ;;  %v3845_v23 = vsel %vm692_vm3, %v739_v52, %v741_v26  ;;  %v3861_v26 = vsel %vm692_vm3, %v743_v57, %v744_v21 }
  0xe7   : > { %2762 = vmatmul.msk.f32.gmra.mxu3 %vm330_vm2, %v3344_v9 }
  0xe8   : > { %2796 = vmatmul.msk.f32.gmra.mxu0 %vm330_vm2, %v3387_v49 }
  0xe9   : > { %v865_v41 = vpop.f32.mrf.mxu2 }
  0xea   : > { %v1021_v20 = vpop.f32.mrf.mxu3  ;;  %v957_v34 = vadd.f32 %v865_v41, %v603_v50  ;;  %v605_v38 = vpop.f32.mrf.mxu1 }
  0xeb   : > { %v606_v52 = vadd.f32 %v605_v38, %v3704_v30  ;;  %v4886_v30 = vld [vmem:[#allocation21_spill] sm:$0xff] }
  0xec   : > { %v1113_v17 = vadd.f32 %v1021_v20, %v957_v34  ;;  %v746_v34 = vrot.slane %v4886_v30, 2 }
  0xed   : > { %2695 = vmatmul.msk.f32.gmra.mxu1 %vm330_vm2, %v3262_v39  ;;  %v1184_v10 = vpop.f32.mrf.mxu0 }
  0xee   : > { %v3849_v48 = vadd.f32 %v1181_v56, %v1113_v17  ;;  %2729 = vmatmul.msk.f32.gmra.mxu2 %vm330_vm2, %v3845_v23  ;;  %v4887_v17 = vld [vmem:[#allocation29_spill] sm:$0xff] }
  0xef   : > { %2763 = vmatmul.msk.f32.gmra.mxu3 %vm330_vm2, %v3347_v11 }
  0xf0   : > { %2797 = vmatmul.msk.f32.gmra.mxu0 %vm330_vm2, %v3432_v58 }
  0xf1   : > { %v868_v33 = vpop.f32.mrf.mxu2 }
  0xf2   : > { %v1024_v39 = vpop.f32.mrf.mxu3  ;;  %v958_v51 = vadd.f32 %v868_v33, %v606_v52  ;;  %v608_v56 = vpop.f32.mrf.mxu1 }
  0xf3   : > { %v609_v38 = vadd.f32 %v608_v56, %v3725_v36  ;;  %v4889_v36 = vld [vmem:[#allocation25_spill] sm:$0xff]  ;;  %v748_v56 = vrot.slane %v3444_v14, 2 }
  0xf4   : > { %v1114_v50 = vadd.f32 %v1024_v39, %v958_v51  ;;  %v749_v30 = vrot.slane %v4889_v36, 2 }
  0xf5   : > { %2696 = vmatmul.msk.f32.gmra.mxu1 %vm330_vm2, %v3344_v9  ;;  %v1187_v41 = vpop.f32.mrf.mxu0 }
  0xf6   : > { %v3865_v20 = vadd.f32 %v1184_v10, %v1114_v50  ;;  %2730 = vmatmul.msk.f32.gmra.mxu2 %vm330_vm2, %v3861_v26  ;;  %v3876_v10 = vsel %vm692_vm3, %v744_v21, %v746_v34 }
  0xf7   : > { %2764 = vmatmul.msk.f32.gmra.mxu3 %vm330_vm2, %v3444_v14 }
  0xf8   : > { %4885 = vst [vmem:[#allocation54_spill] sm:$0xff] %v3865_v20  ;;  %2798 = vmatmul.msk.f32.gmra.mxu0 %vm330_vm2, %v4887_v17 }
  0xf9   : > { %v871_v57 = vpop.f32.mrf.mxu2 }
  0xfa   : > { %v1027_v52 = vpop.f32.mrf.mxu3  ;;  %v959_v33 = vadd.f32 %v871_v57, %v609_v38  ;;  %v611_v9 = vpop.f32.mrf.mxu1  ;;  %v3892_v57 = vsel %vm692_vm3, %v748_v56, %v749_v30 }
  0xfb   : > { %v612_v21 = vadd.f32 %v611_v9, %v3745_v47  ;;  %v4891_v47 = vld [vmem:[#allocation2_spill] sm:$0xff]  ;;  %v4892_v9 = vld [vmem:[#allocation31_spill] sm:$0xff] }
  0xfc   : > { %v1115_v39 = vadd.f32 %v1027_v52, %v959_v33 }
  0xfd   : > { %2697 = vmatmul.msk.f32.gmra.mxu1 %vm330_vm2, %v3347_v11  ;;  %v1190_v51 = vpop.f32.mrf.mxu0 }
  0xfe   : > { %v3880_v50 = vadd.f32 %v1187_v41, %v1115_v39  ;;  %2731 = vmatmul.msk.f32.gmra.mxu2 %vm330_vm2, %v3876_v10 }
  0xff   : > { %2765 = vmatmul.msk.f32.gmra.mxu3 %vm330_vm2, %v4889_v36 }
 0x100   : > { %4888 = vst [vmem:[#allocation21_spill] sm:$0xff] %v3880_v50  ;;  %2799 = vmatmul.msk.f32.gmra.mxu0 %vm330_vm2, %v3524_v13  ;;  %v751_v50 = vrot.slane %v4892_v9, 2 }
 0x101   : > { %v874_v34 = vpop.f32.mrf.mxu2 }
 0x102   : > { %v1030_v11 = vpop.f32.mrf.mxu3  ;;  %v960_v38 = vadd.f32 %v874_v34, %v612_v21  ;;  %v614_v41 = vpop.f32.mrf.mxu1  ;;  %v4893_v34 = vld [vmem:[#allocation5_spill] sm:$0xff] }
 0x103   : > { %v615_v21 = vadd.f32 %v614_v41, %v3766_v4  ;;  %v4895_v4 = vld [vmem:[#allocation3_spill] sm:$0xff]  ;;  %v753_v41 = vrot.slane %v4891_v47, 2 }
 0x104   : > { %v1116_v52 = vadd.f32 %v1030_v11, %v960_v38  ;;  %v754_v9 = vrot.slane %v4895_v4, 2 }
 0x105   : > { %2698 = vmatmul.msk.f32.gmra.mxu1 %vm330_vm2, %v3444_v14  ;;  %v1193_v33 = vpop.f32.mrf.mxu0 }
 0x106   : > { %v3896_v39 = vadd.f32 %v1190_v51, %v1116_v52  ;;  %2732 = vmatmul.msk.f32.gmra.mxu2 %vm330_vm2, %v3892_v57  ;;  %v3907_v51 = vsel %vm692_vm3, %v749_v30, %v751_v50  ;;  %v4896_v30 = vld [vmem:[#allocation9_spill] sm:$0xff] }
 0x107   : > { %2766 = vmatmul.msk.f32.gmra.mxu3 %vm330_vm2, %v4891_v47 }
 0x108   : > { %4890 = vst [vmem:[#allocation29_spill] sm:$0xff] %v3896_v39  ;;  %2800 = vmatmul.msk.f32.gmra.mxu0 %vm330_vm2, %v4893_v34 }
 0x109   : > { %v877_v56 = vpop.f32.mrf.mxu2 }
 0x10a   : > { %v1033_v11 = vpop.f32.mrf.mxu3  ;;  %v961_v38 = vadd.f32 %v877_v56, %v615_v21  ;;  %v617_v14 = vpop.f32.mrf.mxu1 }
 0x10b   : > { %v618_v50 = vadd.f32 %v617_v14, %v3786_v35  ;;  %v4899_v35 = vld [vmem:[#allocation10_spill] sm:$0xff] }
 0x10c   : > { %v1117_v52 = vadd.f32 %v1033_v11, %v961_v38  ;;  %v3923_v11 = vsel %vm692_vm3, %v753_v41, %v754_v9  ;;  %v4900_v14 = vld [vmem:[#allocation6_spill] sm:$0xff] }
 0x10d   : > { %2699 = vmatmul.msk.f32.gmra.mxu1 %vm330_vm2, %v4889_v36  ;;  %v1196_v39 = vpop.f32.mrf.mxu0  ;;  %4897 = vst [vmem:[#allocation2_spill] sm:$0xff] %v3923_v11 }
 0x10e   : > { %v3911_v20 = vadd.f32 %v1193_v33, %v1117_v52  ;;  %2733 = vmatmul.msk.f32.gmra.mxu2 %vm330_vm2, %v3907_v51 }
 0x10f   : > { %2767 = vmatmul.msk.f32.gmra.mxu3 %vm330_vm2, %v4895_v4 }
 0x110   : > { %4894 = vst [vmem:[#allocation25_spill] sm:$0xff] %v3911_v20  ;;  %2801 = vmatmul.msk.f32.gmra.mxu0 %vm330_vm2, %v4896_v30  ;;  %v756_v30 = vrot.slane %v4900_v14, 2 }
 0x111   : > { %v880_v21 = vpop.f32.mrf.mxu2 }
 0x112   : > { %v1036_v36 = vpop.f32.mrf.mxu3  ;;  %v962_v56 = vadd.f32 %v880_v21, %v618_v50  ;;  %v620_v33 = vpop.f32.mrf.mxu1  ;;  %v4901_v21 = vld [vmem:[#allocation13_spill] sm:$0xff] }
 0x113   : > { %v621_v50 = vadd.f32 %v620_v33, %v3636_v31  ;;  %v4903_v31 = vld [vmem:[#allocation11_spill] sm:$0xff]  ;;  %v758_v33 = vrot.slane %v4899_v35, 2 }
 0x114   : > { %v1118_v38 = vadd.f32 %v1036_v36, %v962_v56  ;;  %v759_v14 = vrot.slane %v4903_v31, 2 }
 0x115   : > { %2700 = vmatmul.msk.f32.gmra.mxu1 %vm330_vm2, %v4891_v47  ;;  %v1199_v52 = vpop.f32.mrf.mxu0 }
 0x116   : > { %v3927_v20 = vadd.f32 %v1196_v39, %v1118_v38  ;;  %2734 = vmatmul.msk.f32.gmra.mxu2 %vm330_vm2, %v3923_v11  ;;  %v3938_v39 = vsel %vm692_vm3, %v754_v9, %v756_v30  ;;  %v4904_v30 = vld [vmem:[#allocation16_spill] sm:$0xff] }
 0x117   : > { %2768 = vmatmul.msk.f32.gmra.mxu3 %vm330_vm2, %v4899_v35 }
 0x118   : > { %4898 = vst [vmem:[#allocation31_spill] sm:$0xff] %v3927_v20  ;;  %2802 = vmatmul.msk.f32.gmra.mxu0 %vm330_vm2, %v4901_v21 }
 0x119   : > { %v883_v41 = vpop.f32.mrf.mxu2 }
 0x11a   : > { %v1039_v36 = vpop.f32.mrf.mxu3  ;;  %v963_v56 = vadd.f32 %v883_v41, %v621_v50  ;;  %v623_v47 = vpop.f32.mrf.mxu1 }
 0x11b   : > { %v624_v9 = vadd.f32 %v623_v47, %v3656_v46  ;;  %v4907_v46 = vld [vmem:[#allocation17_spill] sm:$0xff]  ;;  %v4908_v47 = vld [vmem:[#allocation14_spill] sm:$0xff] }
 0x11c   : > { %v1119_v38 = vadd.f32 %v1039_v36, %v963_v56  ;;  %v3954_v36 = vsel %vm692_vm3, %v758_v33, %v759_v14 }
 0x11d   : > { %2701 = vmatmul.msk.f32.gmra.mxu1 %vm330_vm2, %v4895_v4  ;;  %v1202_v20 = vpop.f32.mrf.mxu0  ;;  %4905 = vst [vmem:[#allocation3_spill] sm:$0xff] %v3954_v36 }
 0x11e   : > { %v3942_v11 = vadd.f32 %v1199_v52, %v1119_v38  ;;  %2735 = vmatmul.msk.f32.gmra.mxu2 %vm330_vm2, %v3938_v39 }
 0x11f   : > { %2769 = vmatmul.msk.f32.gmra.mxu3 %vm330_vm2, %v4903_v31 }
 0x120   : > { %4902 = vst [vmem:[#allocation5_spill] sm:$0xff] %v3942_v11  ;;  %2803 = vmatmul.msk.f32.gmra.mxu0 %vm330_vm2, %v4904_v30  ;;  %v761_v30 = vrot.slane %v4908_v47, 2 }
 0x121   : > { %v886_v50 = vpop.f32.mrf.mxu2 }
 0x122   : > { %v1042_v4 = vpop.f32.mrf.mxu3  ;;  %v964_v41 = vadd.f32 %v886_v50, %v624_v9  ;;  %v626_v52 = vpop.f32.mrf.mxu1  ;;  %v4909_v50 = vld [vmem:[#allocation20_spill] sm:$0xff] }
 0x123   : > { %v627_v9 = vadd.f32 %v626_v52, %v3677_v6  ;;  %v4911_v6 = vld [vmem:[#allocation18_spill] sm:$0xff]  ;;  %v763_v52 = vrot.slane %v4907_v46, 2 }
 0x124   : > { %v1120_v56 = vadd.f32 %v1042_v4, %v964_v41  ;;  %v764_v47 = vrot.slane %v4911_v6, 2 }
 0x125   : > { %2702 = vmatmul.msk.f32.gmra.mxu1 %vm330_vm2, %v4899_v35  ;;  %v1205_v38 = vpop.f32.mrf.mxu0 }
 0x126   : > { %v3958_v11 = vadd.f32 %v1202_v20, %v1120_v56  ;;  %2736 = vmatmul.msk.f32.gmra.mxu2 %vm330_vm2, %v3954_v36  ;;  %v3969_v20 = vsel %vm692_vm3, %v759_v14, %v761_v30  ;;  %v4912_v30 = vld [vmem:[#allocation24_spill] sm:$0xff] }
 0x127   : > { %2770 = vmatmul.msk.f32.gmra.mxu3 %vm330_vm2, %v4907_v46 }
 0x128   : > { %4906 = vst [vmem:[#allocation10_spill] sm:$0xff] %v3958_v11  ;;  %2804 = vmatmul.msk.f32.gmra.mxu0 %vm330_vm2, %v4909_v50 }
 0x129   : > { %v889_v33 = vpop.f32.mrf.mxu2 }
 0x12a   : > { %v1045_v4 = vpop.f32.mrf.mxu3  ;;  %v965_v41 = vadd.f32 %v889_v33, %v627_v9  ;;  %v629_v35 = vpop.f32.mrf.mxu1 }
 0x12b   : > { %v630_v14 = vadd.f32 %v629_v35, %v3697_v1  ;;  %v4915_v1 = vld [vmem:[#allocation26_spill] sm:$0xff] }
 0x12c   : > { %v1121_v56 = vadd.f32 %v1045_v4, %v965_v41  ;;  %v3985_v4 = vsel %vm692_vm3, %v763_v52, %v764_v47  ;;  %v4916_v35 = vld [vmem:[#allocation22_spill] sm:$0xff] }
 0x12d   : > { %2703 = vmatmul.msk.f32.gmra.mxu1 %vm330_vm2, %v4903_v31  ;;  %v1208_v11 = vpop.f32.mrf.mxu0  ;;  %4913 = vst [vmem:[#allocation13_spill] sm:$0xff] %v3985_v4  ;;  %v4917_v52 = vld [vmem:[#allocation30_spill] sm:$0xff] }
 0x12e   : > { %v3973_v36 = vadd.f32 %v1205_v38, %v1121_v56  ;;  %2737 = vmatmul.msk.f32.gmra.mxu2 %vm330_vm2, %v3969_v20 }
 0x12f   : > { %2771 = vmatmul.msk.f32.gmra.mxu3 %vm330_vm2, %v4911_v6 }
 0x130   : > { %4910 = vst [vmem:[#allocation6_spill] sm:$0xff] %v3973_v36  ;;  %2805 = vmatmul.msk.f32.gmra.mxu0 %vm330_vm2, %v4912_v30 }
 0x131   : > { %v892_v9 = vpop.f32.mrf.mxu2 }
 0x132   : > { %v1048_v31 = vpop.f32.mrf.mxu3  ;;  %v966_v33 = vadd.f32 %v892_v9, %v630_v14  ;;  %v632_v38 = vpop.f32.mrf.mxu1  ;;  %v766_v14 = vrot.slane %v4916_v35, 2  ;;  %v768_v35 = vrot.slane %v4915_v1, 2 }
 0x133   : > { %v633_v9 = vadd.f32 %v632_v38, %v3718_v37  ;;  %v4920_v37 = vld [vmem:[#allocation27_spill] sm:$0xff] }
 0x134   : > { %v1122_v41 = vadd.f32 %v1048_v31, %v966_v33  ;;  %v193_v38 = vld [vmem:[%s3176_s24 + $0x188] sm:$0xff] }
 0x135   : > { %2704 = vmatmul.msk.f32.gmra.mxu1 %vm330_vm2, %v4907_v46  ;;  %v1211_v56 = vpop.f32.mrf.mxu0 }
 0x136   : > { %v3989_v36 = vadd.f32 %v1208_v11, %v1122_v41  ;;  %2738 = vmatmul.msk.f32.gmra.mxu2 %vm330_vm2, %v3985_v4  ;;  %v4000_v41 = vsel %vm692_vm3, %v764_v47, %v766_v14  ;;  %v192_v14 = vld [vmem:[%s3176_s24 + $0x180] sm:$0xff] }
 0x137   : > { %2772 = vmatmul.msk.f32.gmra.mxu3 %vm330_vm2, %v4915_v1  ;;  %4918 = vst [vmem:[#allocation17_spill] sm:$0xff] %v4000_v41 }
 0x138   : > { %4914 = vst [vmem:[#allocation11_spill] sm:$0xff] %v3989_v36  ;;  %2806 = vmatmul.msk.f32.gmra.mxu0 %vm330_vm2, %v4917_v52 }
 0x139   : > { %v895_v31 = vpop.f32.mrf.mxu2 }
 0x13a   : > { %v1051_v46 = vpop.f32.mrf.mxu3  ;;  %v967_v33 = vadd.f32 %v895_v31, %v633_v9  ;;  %v635_v11 = vpop.f32.mrf.mxu1  ;;  %v769_v9 = vrot.slane %v4920_v37, 2  ;;  %v1145_v31 = vrot.slane %v193_v38, 1 }
 0x13b   : > { %v636_v47 = vadd.f32 %v635_v11, %v3738_v53 }
 0x13c   : > { %v1123_v36 = vadd.f32 %v1051_v46, %v967_v33 }
 0x13d   : > { %2705 = vmatmul.msk.f32.gmra.mxu1 %vm330_vm2, %v4911_v6  ;;  %v1214_v30 = vpop.f32.mrf.mxu0 }
 0x13e   : > { %v4004_v4 = vadd.f32 %v1211_v56, %v1123_v36  ;;  %2739 = vmatmul.msk.f32.gmra.mxu2 %vm330_vm2, %v4000_v41  ;;  %v1144_v56 = vrot.slane %v192_v14, 1 }
 0x13f   : > { %2773 = vmatmul.msk.f32.gmra.mxu3 %vm330_vm2, %v4920_v37 }
 0x140   : > { %4919 = vst [vmem:[#allocation14_spill] sm:$0xff] %v4004_v4  ;;  %2807 = vmatmul.msk.f32.gmra.mxu0 %vm330_vm2, %v3527_v3  ;;  %v4018_v4 = vsel %vm692_vm3, %v768_v35, %v769_v9  ;;  %v4023_v53 = vsel %vm247_vm1, %v1144_v56, %v1145_v31 }
 0x141   : > { %v898_v36 = vpop.f32.mrf.mxu2 }
 0x142   : > { %v1054_v6 = vpop.f32.mrf.mxu3  ;;  %v968_v46 = vadd.f32 %v898_v36, %v636_v47  ;;  %v638_v33 = vpop.f32.mrf.mxu1  ;;  %v194_v47 = vld [vmem:[%s3176_s24 + $0x190] sm:$0x3]  ;;  %v771_v36 = vrot.slane %v3500_v15, 2 }
 0x143   : > { %v639_v35 = vadd.f32 %v638_v33, %v3759_v8 }
 0x144   : > { %v1124_v52 = vadd.f32 %v1054_v6, %v968_v46  ;;  %v1147_v46 = vrot.slane %v194_v47, 1 }
 0x145   : > { %2706 = vmatmul.msk.f32.gmra.mxu1 %vm330_vm2, %v4915_v1  ;;  %v1217_v41 = vpop.f32.mrf.mxu0 }
 0x146   : > { %v4025_v11 = vadd.f32 %v1214_v30, %v1124_v52  ;;  %2740 = vmatmul.msk.f32.gmra.mxu2 %vm330_vm2, %v4018_v4  ;;  %v4036_v30 = vsel %vm692_vm3, %v769_v9, %v771_v36  ;;  %v4041_v15 = vsel %vm247_vm1, %v1145_v31, %v1147_v46 }
 0x147   : > { %2774 = vmatmul.msk.f32.gmra.mxu3 %vm330_vm2, %v192_v14 }
 0x148   : > { %2808 = vmatmul.msk.f32.gmra.mxu0 %vm330_vm2, %v4023_v53 }
 0x149   : > { %v901_v1 = vpop.f32.mrf.mxu2 }
 0x14a   : > { %v1057_v6 = vpop.f32.mrf.mxu3  ;;  %v969_v56 = vadd.f32 %v901_v1, %v639_v35  ;;  %v641_v3 = vpop.f32.mrf.mxu1 }
 0x14b   : > { %v642_v33 = vadd.f32 %v641_v3, %v3779_v5 }
 0x14c   : > { %v1125_v52 = vadd.f32 %v1057_v6, %v969_v56 }
 0x14d   : > { %2707 = vmatmul.msk.f32.gmra.mxu1 %vm330_vm2, %v4920_v37  ;;  %v1220_v14 = vpop.f32.mrf.mxu0 }
 0x14e   : > { %v4043_v8 = vadd.f32 %v1217_v41, %v1125_v52  ;;  %2741 = vmatmul.msk.f32.gmra.mxu2 %vm330_vm2, %v4036_v30 }
 0x14f   : > { %2775 = vmatmul.msk.f32.gmra.mxu3 %vm330_vm2, %v193_v38 }
 0x150   : > { %2809 = vmatmul.msk.f32.gmra.mxu0 %vm330_vm2, %v4041_v15 }
 0x151   : > { %v904_v9 = vpop.f32.mrf.mxu2 }
 0x152   : > { %v1060_v47 = vpop.f32.mrf.mxu3  ;;  %v970_v36 = vadd.f32 %v904_v9, %v642_v33  ;;  %v644_v37 = vpop.f32.mrf.mxu1 }
 0x153   : > { %v645_v3 = vadd.f32 %v644_v37, %v3652_v45 }
 0x154   : > { %v1126_v35 = vadd.f32 %v1060_v47, %v970_v36 }
 0x155   : > { %2812 = vmatmul.msk.f32.vlgmr.msra.gmra.mxu1 %vm330_vm2, %v3562_v28  ;;  %v1223_v41 = vpop.f32.mrf.mxu0 }
 0x156   : > { %v4053_v31 = vadd.f32 %v1220_v14, %v1126_v35  ;;  %2846 = vmatmul.msk.f32.vlgmr.msra.gmra.mxu2 %vm330_vm2, %v3367_v27 }
 0x157   : > { %2880 = vmatmul.msk.f32.vlgmr.msra.gmra.mxu3 %vm330_vm2, %v3402_v62 }
 0x158   : > { %2914 = vmatmul.msk.f32.vlgmr.msra.gmra.mxu0 %vm330_vm2, %v3587_v61 }
 0x159   : > { %v907_v5 = vpop.f32.mrf.mxu2 }
 0x15a   : > { %v1063_v38 = vpop.f32.mrf.mxu3  ;;  %v971_v1 = vadd.f32 %v907_v5, %v645_v3  ;;  %v647_v6 = vpop.f32.mrf.mxu1 }
 0x15b   : > { %v648_v27 = vadd.f32 %v647_v6, %v3673_v43 }
 0x15c   : > { %v1127_v46 = vadd.f32 %v1063_v38, %v971_v1 }
 0x15d   : > { %2813 = vmatmul.msk.f32.gmra.mxu1 %vm330_vm2, %v3574_v59  ;;  %v1226_v28 = vpop.f32.mrf.mxu0 }
 0x15e   : > { %v4064_v56 = vadd.f32 %v1223_v41, %v1127_v46  ;;  %2847 = vmatmul.msk.f32.gmra.mxu2 %vm330_vm2, %v3370_v29 }
 0x15f   : > { %2881 = vmatmul.msk.f32.gmra.mxu3 %vm330_vm2, %v3458_v25 }
 0x160   : > { %2915 = vmatmul.msk.f32.gmra.mxu0 %vm330_vm2, %v3599_v44 }
 0x161   : > { %v910_v62 = vpop.f32.mrf.mxu2 }
 0x162   : > { %v1066_v45 = vpop.f32.mrf.mxu3  ;;  %v972_v52 = vadd.f32 %v910_v62, %v648_v27  ;;  %v650_v14 = vpop.f32.mrf.mxu1 }
 0x163   : > { %v651_v29 = vadd.f32 %v650_v14, %v3693_v40  ;;  %v4924_v14 = vld [vmem:[#allocation36_spill] sm:$0xff] }
 0x164   : > { %v1128_v33 = vadd.f32 %v1066_v45, %v972_v52  ;;  %v3090_v45 = vld [vmem:[%s3176_s24 + $0x68] sm:$0xff] }
 0x165   : > { %2814 = vmatmul.msk.f32.gmra.mxu1 %vm330_vm2, %v3587_v61  ;;  %v1229_v59 = vpop.f32.mrf.mxu0 }
 0x166   : > { %v4075_v9 = vadd.f32 %v1226_v28, %v1128_v33  ;;  %2848 = vmatmul.msk.f32.gmra.mxu2 %vm330_vm2, %v3467_v60 }
 0x167   : > { %2882 = vmatmul.msk.f32.gmra.mxu3 %vm330_vm2, %v3505_v12 }
 0x168   : > { %2916 = vmatmul.msk.f32.gmra.mxu0 %vm330_vm2, %v3612_v63 }
 0x169   : > { %v913_v25 = vpop.f32.mrf.mxu2 }
 0x16a   : > { %v1069_v43 = vpop.f32.mrf.mxu3  ;;  %v973_v47 = vadd.f32 %v913_v25, %v651_v29  ;;  %v653_v36 = vpop.f32.mrf.mxu1 }
 0x16b   : > { %v654_v12 = vadd.f32 %v653_v36, %v3714_v16  ;;  %v4921_v16 = vld [vmem:[#allocation34_spill] sm:$0xff]  ;;  %v3091_v36 = vld [vmem:[%s3176_s24 + $0x78] sm:$0xff] }
 0x16c   : > { %v1129_v37 = vadd.f32 %v1069_v43, %v973_v47 }
 0x16d   : > { %2815 = vmatmul.msk.f32.gmra.mxu1 %vm330_vm2, %v3599_v44  ;;  %v1232_v61 = vpop.f32.mrf.mxu0 }
 0x16e   : > { %v4086_v35 = vadd.f32 %v1229_v59, %v1129_v37  ;;  %2849 = vmatmul.msk.f32.gmra.mxu2 %vm330_vm2, %v3470_v32  ;;  %v3089_v32 = vld [vmem:[%s3176_s24 + $0x60] sm:$0xff]  ;;  %v4925_v37 = vld [vmem:[#allocation12_spill] sm:$0xff] }
 0x16f   : > { %2883 = vmatmul.msk.f32.gmra.mxu3 %vm330_vm2, %v3532_v24 }
 0x170   : > { %2917 = vmatmul.msk.f32.gmra.mxu0 %vm330_vm2, %v3624_v55 }
 0x171   : > { %v916_v60 = vpop.f32.mrf.mxu2 }
 0x172   : > { %v1072_v40 = vpop.f32.mrf.mxu3  ;;  %v974_v41 = vadd.f32 %v916_v60, %v654_v12  ;;  %v656_v3 = vpop.f32.mrf.mxu1  ;;  %v4927_v60 = vld [vmem:[#allocation38_spill] sm:$0xff] }
 0x173   : > { %v657_v24 = vadd.f32 %v656_v3, %v3734_v42  ;;  %v4923_v42 = vld [vmem:[#allocation45_spill] sm:$0xff] }
 0x174   : > { %v1130_v5 = vadd.f32 %v1072_v40, %v974_v41 }
 0x175   : > { %2816 = vmatmul.msk.f32.gmra.mxu1 %vm330_vm2, %v3612_v63  ;;  %v1235_v44 = vpop.f32.mrf.mxu0 }
 0x176   : > { %v4097_v38 = vadd.f32 %v1232_v61, %v1130_v5  ;;  %2850 = vmatmul.msk.f32.gmra.mxu2 %vm330_vm2, %v3089_v32  ;;  %v4926_v61 = vld [vmem:[#allocation48_spill] sm:$0xff] }
 0x177   : > { %2884 = vmatmul.msk.f32.gmra.mxu3 %vm330_vm2, %v3209_v19  ;;  %v4922_v19 = vld [vmem:[#allocation7_spill] sm:$0xff] }
 0x178   : > { %2918 = vmatmul.msk.f32.gmra.mxu0 %vm330_vm2, %v4921_v16 }
 0x179   : > { %v919_v1 = vpop.f32.mrf.mxu2 }
 0x17a   : > { %v1075_v6 = vpop.f32.mrf.mxu3  ;;  %v975_v46 = vadd.f32 %v919_v1, %v657_v24  ;;  %v659_v28 = vpop.f32.mrf.mxu1  ;;  %v4928_v1 = vld [vmem:[#allocation15_spill] sm:$0xff] }
 0x17b   : > { %v660_v52 = vadd.f32 %v659_v28, %v4923_v42  ;;  %v4930_v28 = vld [vmem:[#allocation40_spill] sm:$0xff] }
 0x17c   : > { %v1131_v63 = vadd.f32 %v1075_v6, %v975_v46  ;;  %v4929_v6 = vld [vmem:[#allocation51_spill] sm:$0xff] }
 0x17d   : > { %2817 = vmatmul.msk.f32.gmra.mxu1 %vm330_vm2, %v3624_v55  ;;  %v1238_v27 = vpop.f32.mrf.mxu0 }
 0x17e   : > { %v4108_v62 = vadd.f32 %v1235_v44, %v1131_v63  ;;  %2851 = vmatmul.msk.f32.gmra.mxu2 %vm330_vm2, %v3090_v45 }
 0x17f   : > { %2885 = vmatmul.msk.f32.gmra.mxu3 %vm330_vm2, %v4922_v19 }
 0x180   : > { %2919 = vmatmul.msk.f32.gmra.mxu0 %vm330_vm2, %v4924_v14 }
 0x181   : > { %v922_v33 = vpop.f32.mrf.mxu2 }
 0x182   : > { %v1078_v59 = vpop.f32.mrf.mxu3  ;;  %v976_v29 = vadd.f32 %v922_v33, %v660_v52  ;;  %v662_v25 = vpop.f32.mrf.mxu1  ;;  %v3093_v33 = vld [vmem:[%s3176_s24 + $0x90] sm:$0xff] }
 0x183   : > { %v663_v12 = vadd.f32 %v662_v25, %v4926_v61 }
 0x184   : > { %v1132_v55 = vadd.f32 %v1078_v59, %v976_v29  ;;  %v4931_v59 = vld [vmem:[#allocation19_spill] sm:$0xff] }
 0x185   : > { %2818 = vmatmul.msk.f32.gmra.mxu1 %vm330_vm2, %v4921_v16  ;;  %v1241_v43 = vpop.f32.mrf.mxu0  ;;  %v3092_v16 = vld [vmem:[%s3176_s24 + $0x80] sm:$0xff]  ;;  %v4932_v29 = vld [vmem:[#allocation35_spill] sm:$0xff] }
 0x186   : > { %v4119_v47 = vadd.f32 %v1238_v27, %v1132_v55  ;;  %2852 = vmatmul.msk.f32.gmra.mxu2 %vm330_vm2, %v3091_v36  ;;  %v4933_v55 = vld [vmem:[#allocation42_spill] sm:$0xff] }
 0x187   : > { %2886 = vmatmul.msk.f32.gmra.mxu3 %vm330_vm2, %v4925_v37 }
 0x188   : > { %2920 = vmatmul.msk.f32.gmra.mxu0 %vm330_vm2, %v4927_v60 }
 0x189   : > { %v925_v40 = vpop.f32.mrf.mxu2 }
 0x18a   : > { %v1081_v41 = vpop.f32.mrf.mxu3  ;;  %v977_v3 = vadd.f32 %v925_v40, %v663_v12  ;;  %v665_v5 = vpop.f32.mrf.mxu1 }
 0x18b   : > { %v666_v46 = vadd.f32 %v665_v5, %v4929_v6  ;;  %v4935_v5 = vld [vmem:[#allocation37_spill] sm:$0xff] }
 0x18c   : > { %v1133_v44 = vadd.f32 %v1081_v41, %v977_v3  ;;  %v3094_v41 = vld [vmem:[%s3176_s24 + $0x98] sm:$0xff]  ;;  %v4934_v3 = vld [vmem:[#allocation23_spill] sm:$0xff] }
 0x18d   : > { %2819 = vmatmul.msk.f32.gmra.mxu1 %vm330_vm2, %v4924_v14  ;;  %v1244_v32 = vpop.f32.mrf.mxu0 }
 0x18e   : > { %v4130_v24 = vadd.f32 %v1241_v43, %v1133_v44  ;;  %2853 = vmatmul.msk.f32.gmra.mxu2 %vm330_vm2, %v3092_v16 }
 0x18f   : > { %2887 = vmatmul.msk.f32.gmra.mxu3 %vm330_vm2, %v4928_v1 }
 0x190   : > { %2921 = vmatmul.msk.f32.gmra.mxu0 %vm330_vm2, %v4930_v28 }
 0x191   : > { %v928_v63 = vpop.f32.mrf.mxu2 }
 0x192   : > { %v1084_v27 = vpop.f32.mrf.mxu3  ;;  %v978_v45 = vadd.f32 %v928_v63, %v666_v46  ;;  %v668_v19 = vpop.f32.mrf.mxu1 }
 0x193   : > { %v669_v25 = vadd.f32 %v668_v19, %v4932_v29  ;;  %v4937_v19 = vld [vmem:[#allocation28_spill] sm:$0xff] }
 0x194   : > { %v1134_v42 = vadd.f32 %v1084_v27, %v978_v45  ;;  %v3095_v45 = vld [vmem:[%s3176_s24 + $0xa8] sm:$0xff] }
 0x195   : > { %2820 = vmatmul.msk.f32.gmra.mxu1 %vm330_vm2, %v4927_v60  ;;  %v1247_v52 = vpop.f32.mrf.mxu0 }
 0x196   : > { %v4141_v14 = vadd.f32 %v1244_v32, %v1134_v42  ;;  %2854 = vmatmul.msk.f32.gmra.mxu2 %vm330_vm2, %v3093_v33  ;;  %v4936_v32 = vld [vmem:[#allocation44_spill] sm:$0xff]  ;;  %v4938_v42 = vld [vmem:[#allocation39_spill] sm:$0xff] }
 0x197   : > { %2888 = vmatmul.msk.f32.gmra.mxu3 %vm330_vm2, %v4931_v59  ;;  %v4939_v33 = vld [vmem:[#allocation47_spill] sm:$0xff] }
 0x198   : > { %2922 = vmatmul.msk.f32.gmra.mxu0 %vm330_vm2, %v4933_v55 }
 0x199   : > { %v931_v43 = vpop.f32.mrf.mxu2 }
 0x19a   : > { %v1087_v36 = vpop.f32.mrf.mxu3  ;;  %v979_v37 = vadd.f32 %v931_v43, %v669_v25  ;;  %v671_v61 = vpop.f32.mrf.mxu1 }
 0x19b   : > { %v672_v44 = vadd.f32 %v671_v61, %v4935_v5  ;;  %v3096_v61 = vld [vmem:[%s3176_s24 + $0xb0] sm:$0xff] }
 0x19c   : > { %v1135_v12 = vadd.f32 %v1087_v36, %v979_v37 }
 0x19d   : > { %2821 = vmatmul.msk.f32.gmra.mxu1 %vm330_vm2, %v4930_v28  ;;  %v1250_v60 = vpop.f32.mrf.mxu0 }
 0x19e   : > { %v4152_v40 = vadd.f32 %v1247_v52, %v1135_v12  ;;  %2855 = vmatmul.msk.f32.gmra.mxu2 %vm330_vm2, %v3094_v41  ;;  %v4940_v12 = vld [vmem:[#allocation32_spill] sm:$0xff] }
 0x19f   : > { %2889 = vmatmul.msk.f32.gmra.mxu3 %vm330_vm2, %v4934_v3  ;;  %v4942_v3 = vld [vmem:[#allocation50_spill] sm:$0xff] }
 0x1a0   : > { %2923 = vmatmul.msk.f32.gmra.mxu0 %vm330_vm2, %v4936_v32 }
 0x1a1   : > { %v934_v16 = vpop.f32.mrf.mxu2 }
 0x1a2   : > { %v1090_v1 = vpop.f32.mrf.mxu3  ;;  %v980_v6 = vadd.f32 %v934_v16, %v672_v44  ;;  %v674_v46 = vpop.f32.mrf.mxu1 }
 0x1a3   : > { %v675_v52 = vadd.f32 %v674_v46, %v4938_v42  ;;  %v4945_v42 = vld [vmem:[#allocation53_spill] sm:$0xff] }
 0x1a4   : > { %v1136_v28 = vadd.f32 %v1090_v1, %v980_v6 }
 0x1a5   : > { %2822 = vmatmul.msk.f32.gmra.mxu1 %vm330_vm2, %v4933_v55  ;;  %v1253_v63 = vpop.f32.mrf.mxu0 }
 0x1a6   : > { %v4163_v27 = vadd.f32 %v1250_v60, %v1136_v28  ;;  %2856 = vmatmul.msk.f32.gmra.mxu2 %vm330_vm2, %v3095_v45  ;;  %v4941_v60 = vld [vmem:[#allocation41_spill] sm:$0xff]  ;;  %v3097_v28 = vld [vmem:[%s3176_s24 + $0xc0] sm:$0xff]  ;;  %v4944_v45 = vld [vmem:[#allocation43_spill] sm:$0xff] }
 0x1a7   : > { %2890 = vmatmul.msk.f32.gmra.mxu3 %vm330_vm2, %v4937_v19 }
 0x1a8   : > { %2924 = vmatmul.msk.f32.gmra.mxu0 %vm330_vm2, %v4939_v33 }
 0x1a9   : > { %v937_v59 = vpop.f32.mrf.mxu2 }
 0x1aa   : > { %v1093_v29 = vpop.f32.mrf.mxu3  ;;  %v981_v25 = vadd.f32 %v937_v59, %v675_v52  ;;  %v677_v43 = vpop.f32.mrf.mxu1 }
 0x1ab   : > { %v678_v41 = vadd.f32 %v677_v43, %v4941_v60 }
 0x1ac   : > { %v1137_v55 = vadd.f32 %v1093_v29, %v981_v25 }
 0x1ad   : > { %2823 = vmatmul.msk.f32.gmra.mxu1 %vm330_vm2, %v4936_v32  ;;  %v1256_v36 = vpop.f32.mrf.mxu0 }
 0x1ae   : > { %v4174_v37 = vadd.f32 %v1253_v63, %v1137_v55  ;;  %2857 = vmatmul.msk.f32.gmra.mxu2 %vm330_vm2, %v3096_v61  ;;  %v4943_v63 = vld [vmem:[#allocation4_spill] sm:$0xff] }
 0x1af   : > { %2891 = vmatmul.msk.f32.gmra.mxu3 %vm330_vm2, %v4940_v12  ;;  %v4946_v61 = vld [vmem:[#allocation8_spill] sm:$0xff]  ;;  %v4947_v12 = vld [vmem:[#allocation46_spill] sm:$0xff] }
 0x1b0   : > { %2925 = vmatmul.msk.f32.gmra.mxu0 %vm330_vm2, %v4942_v3 }
 0x1b1   : > { %v940_v5 = vpop.f32.mrf.mxu2 }
 0x1b2   : > { %v1096_v44 = vpop.f32.mrf.mxu3  ;;  %v982_v16 = vadd.f32 %v940_v5, %v678_v41  ;;  %v680_v1 = vpop.f32.mrf.mxu1 }
 0x1b3   : > { %v681_v19 = vadd.f32 %v680_v1, %v4944_v45 }
 0x1b4   : > { %v1138_v32 = vadd.f32 %v1096_v44, %v982_v16 }
 0x1b5   : > { %2824 = vmatmul.msk.f32.gmra.mxu1 %vm330_vm2, %v4939_v33  ;;  %v1259_v6 = vpop.f32.mrf.mxu0 }
 0x1b6   : > { %v4185_v46 = vadd.f32 %v1256_v36, %v1138_v32  ;;  %2858 = vmatmul.msk.f32.gmra.mxu2 %vm330_vm2, %v3097_v28  ;;  %v3098_v36 = vld [vmem:[%s3176_s24 + $0xc8] sm:$0xff]  ;;  %v4948_v28 = vld [vmem:[#allocation49_spill] sm:$0xff] }
 0x1b7   : > { %2892 = vmatmul.msk.f32.gmra.mxu3 %vm330_vm2, %v4943_v63 }
 0x1b8   : > { %2926 = vmatmul.msk.f32.gmra.mxu0 %vm330_vm2, %v4945_v42 }
 0x1b9   : > { %v943_v52 = vpop.f32.mrf.mxu2 }
 0x1ba   : > { %v1099_v59 = vpop.f32.mrf.mxu3  ;;  %v983_v29 = vadd.f32 %v943_v52, %v681_v19  ;;  %v683_v25 = vpop.f32.mrf.mxu1 }
 0x1bb   : > { %v684_v60 = vadd.f32 %v683_v25, %v4947_v12 }
 0x1bc   : > { %v1139_v33 = vadd.f32 %v1099_v59, %v983_v29 }
 0x1bd   : > { %2825 = vmatmul.msk.f32.gmra.mxu1 %vm330_vm2, %v4942_v3  ;;  %v1262_v43 = vpop.f32.mrf.mxu0 }
 0x1be   : > { %v4196_v55 = vadd.f32 %v1259_v6, %v1139_v33  ;;  %2859 = vmatmul.msk.f32.gmra.mxu2 %vm330_vm2, %v3098_v36  ;;  %v3099_v6 = vld [vmem:[%s3176_s24 + $0xd8] sm:$0xff]  ;;  %v3100_v33 = vld [vmem:[%s3176_s24 + $0xe0] sm:$0xff] }
 0x1bf   : > { %2893 = vmatmul.msk.f32.gmra.mxu3 %vm330_vm2, %v4946_v61 }
 0x1c0   : > { %2927 = vmatmul.msk.f32.gmra.mxu0 %vm330_vm2, %v3814_v7 }
 0x1c1   : > { %v946_v41 = vpop.f32.mrf.mxu2 }
 0x1c2   : > { %v1102_v5 = vpop.f32.mrf.mxu3  ;;  %v984_v44 = vadd.f32 %v946_v41, %v684_v60  ;;  %v686_v16 = vpop.f32.mrf.mxu1 }
 0x1c3   : > { %v687_v63 = vadd.f32 %v686_v16, %v4948_v28 }
 0x1c4   : > { %v1140_v3 = vadd.f32 %v1102_v5, %v984_v44  ;;  %v3101_v44 = vld [vmem:[%s3176_s24 + $0xf0] sm:$0xff] }
 0x1c5   : > { %2826 = vmatmul.msk.f32.gmra.mxu1 %vm330_vm2, %v4945_v42  ;;  %v1265_v1 = vpop.f32.mrf.mxu0 }
 0x1c6   : > { %v4207_v32 = vadd.f32 %v1262_v43, %v1140_v3  ;;  %2860 = vmatmul.msk.f32.gmra.mxu2 %vm330_vm2, %v3099_v6 }
 0x1c7   : > { %2894 = vmatmul.msk.f32.gmra.mxu3 %vm330_vm2, %v3296_v54  ;;  %v4949_v54 = vld [vmem:[#allocation52_spill] sm:$0xff] }
 0x1c8   : > { %2928 = vmatmul.msk.f32.gmra.mxu0 %vm330_vm2, %v3830_v0 }
 0x1c9   : > { %v949_v45 = vpop.f32.mrf.mxu2 }
 0x1ca   : > { %v1105_v19 = vpop.f32.mrf.mxu3  ;;  %v985_v52 = vadd.f32 %v949_v45, %v687_v63  ;;  %v689_v59 = vpop.f32.mrf.mxu1  ;;  %v3102_v45 = vld [vmem:[%s3176_s24 + $0xf8] sm:$0xff] }
 0x1cb   : > { %v690_v43 = vadd.f32 %v689_v59, %v4949_v54 }
 0x1cc   : > { %v1141_v42 = vadd.f32 %v1105_v19, %v985_v52 }
 0x1cd   : > { %2827 = vmatmul.msk.f32.gmra.mxu1 %vm330_vm2, %v3814_v7  ;;  %v1268_v29 = vpop.f32.mrf.mxu0 }
 0x1ce   : > { %v4218_v25 = vadd.f32 %v1265_v1, %v1141_v42  ;;  %2861 = vmatmul.msk.f32.gmra.mxu2 %vm330_vm2, %v3100_v33 }
 0x1cf   : > { %2895 = vmatmul.msk.f32.gmra.mxu3 %vm330_vm2, %v3332_v2 }
 0x1d0   : > { %2929 = vmatmul.msk.f32.gmra.mxu0 %vm330_vm2, %v3845_v23 }
 0x1d1   : > { %v952_v36 = vpop.f32.mrf.mxu2 }
 0x1d2   : > { %v1108_v61 = vpop.f32.mrf.mxu3  ;;  %v986_v12 = vadd.f32 %v952_v36, %v690_v43  ;;  %v1334_v60 = vpop.f32.mrf.mxu1 }
 0x1d3   : > { %v1430_v2 = vadd.f32 %v1334_v60, %v3818_v18 }
 0x1d4   : > { %v1142_v7 = vadd.f32 %v1108_v61, %v986_v12 }
 0x1d5   : > { %2828 = vmatmul.msk.f32.gmra.mxu1 %vm330_vm2, %v3830_v0  ;;  %v1809_v41 = vpop.f32.mrf.mxu0 }
 0x1d6   : > { %v4229_v5 = vadd.f32 %v1268_v29, %v1142_v7  ;;  %2862 = vmatmul.msk.f32.gmra.mxu2 %vm330_vm2, %v3101_v44 }
 0x1d7   : > { %2896 = vmatmul.msk.f32.gmra.mxu3 %vm330_vm2, %v3387_v49 }
 0x1d8   : > { %2930 = vmatmul.msk.f32.gmra.mxu0 %vm330_vm2, %v3861_v26 }
 0x1d9   : > { %v1490_v16 = vpop.f32.mrf.mxu2 }
 0x1da   : > { %v1650_v3 = vpop.f32.mrf.mxu3  ;;  %v1586_v1 = vadd.f32 %v1490_v16, %v1430_v2  ;;  %v1337_v6 = vpop.f32.mrf.mxu1  ;;  %v3104_v2 = vld [vmem:[%s3176_s24 + $0x110] sm:$0xff]  ;;  %v4950_v16 = vld [vmem:[#allocation54_spill] sm:$0xff] }
 0x1db   : > { %v1431_v49 = vadd.f32 %v1337_v6, %v3834_v22 }
 0x1dc   : > { %v1746_v0 = vadd.f32 %v1650_v3, %v1586_v1 }
 0x1dd   : > { %2829 = vmatmul.msk.f32.gmra.mxu1 %vm330_vm2, %v3845_v23  ;;  %v1812_v28 = vpop.f32.mrf.mxu0 }
 0x1de   : > { %v4240_v63 = vadd.f32 %v1809_v41, %v1746_v0  ;;  %2863 = vmatmul.msk.f32.gmra.mxu2 %vm330_vm2, %v3102_v45 }
 0x1df   : > { %2897 = vmatmul.msk.f32.gmra.mxu3 %vm330_vm2, %v3432_v58  ;;  %v3103_v58 = vld [vmem:[%s3176_s24 + $0x108] sm:$0xff] }
 0x1e0   : > { %v1937_v18 = vsub.f32 0.0, %v4240_v63  ;;  %2931 = vmatmul.msk.f32.gmra.mxu0 %vm330_vm2, %v3876_v10 }
 0x1e1   : > { %v1493_v19 = vpop.f32.mrf.mxu2 }
 0x1e2   : > { %v1653_v52 = vpop.f32.mrf.mxu3  ;;  %v1969_v23 = vmul.f32 1.442695, %v1937_v18  ;;  %v1587_v59 = vadd.f32 %v1493_v19, %v1431_v49  ;;  %v1340_v42 = vpop.f32.mrf.mxu1 }
 0x1e3   : > { %v1432_v22 = vadd.f32 %v1340_v42, %v3849_v48 }
 0x1e4   : > { %2961 = vpow2.f32 %v1969_v23  ;;  %v1747_v29 = vadd.f32 %v1653_v52, %v1587_v59 }
 0x1e5   : > { %2830 = vmatmul.msk.f32.gmra.mxu1 %vm330_vm2, %v3861_v26  ;;  %v1815_v33 = vpop.f32.mrf.mxu0 }
 0x1e6   : > { %v4252_v54 = vadd.f32 %v1812_v28, %v1747_v29  ;;  %2864 = vmatmul.msk.f32.gmra.mxu2 %vm330_vm2, %v3103_v58  ;;  %v3105_v29 = vld [vmem:[%s3176_s24 + $0x120] sm:$0xff] }
 0x1e7   : > { %2898 = vmatmul.msk.f32.gmra.mxu3 %vm330_vm2, %v4887_v17 }
 0x1e8   : > { %v1938_v43 = vsub.f32 0.0, %v4252_v54  ;;  %2932 = vmatmul.msk.f32.gmra.mxu0 %vm330_vm2, %v3892_v57 }
 0x1e9   : > { %v1496_v36 = vpop.f32.mrf.mxu2 }
 0x1ea   : > { %v1656_v61 = vpop.f32.mrf.mxu3  ;;  %v2962_v26 = vpop.eup %2961  ;;  %v1971_v12 = vmul.f32 1.442695, %v1938_v43  ;;  %v1588_v60 = vadd.f32 %v1496_v36, %v1432_v22  ;;  %v4951_v43 = vld [vmem:[#allocation21_spill] sm:$0xff] }
 0x1eb   : > { %v1343_v7 = vpop.f32.mrf.mxu1  ;;  %v2033_v41 = vadd.f32 1.0, %v2962_v26 }
 0x1ec   : > { %2963 = vpow2.f32 %v1971_v12  ;;  %v1748_v44 = vadd.f32 %v1656_v61, %v1588_v60  ;;  %v1433_v3 = vadd.f32 %v1343_v7, %v4950_v16 }
 0x1ed   : > { %2965 = vrcp.f32 %v2033_v41  ;;  %2831 = vmatmul.msk.f32.gmra.mxu1 %vm330_vm2, %v3876_v10  ;;  %v1818_v48 = vpop.f32.mrf.mxu0  ;;  %v2076_v58 = vand.u32 2147483648, %v2033_v41  ;;  %vm2070_vm5 = vweird.f32 %v2033_v41 }
 0x1ee   : > { %v4264_v17 = vadd.f32 %v1815_v33, %v1748_v44  ;;  %2865 = vmatmul.msk.f32.gmra.mxu2 %vm330_vm2, %v3104_v2  ;;  %v2074_v33 = vand.u32 2147483647, %v2033_v41 }
 0x1ef   : > { %2899 = vmatmul.msk.f32.gmra.mxu3 %vm330_vm2, %v3524_v13  ;;  %v2077_v16 = vor.u32 1.1754944e-38, %v2076_v58 }
 0x1f0   : > { %v1939_v1 = vsub.f32 0.0, %v4264_v17  ;;  %2933 = vmatmul.msk.f32.gmra.mxu0 %vm330_vm2, %v3907_v51  ;;  %vm2075_vm7 = vcmp.eq.f32.partialorder %v2074_v33, 8.507059e+37 }
 0x1f1   : > { %v1499_v6 = vpop.f32.mrf.mxu2 }
 0x1f2   : > { %v1659_v0 = vpop.f32.mrf.mxu3  ;;  %v2964_v10 = vpop.eup %2963  ;;  %v1973_v28 = vmul.f32 1.442695, %v1939_v1  ;;  %v1589_v45 = vadd.f32 %v1499_v6, %v1433_v3 }
 0x1f3   : > { %v1346_v49 = vpop.f32.mrf.mxu1  ;;  %v2966_v18 = vpop.eup %2965  ;;  %v4274_v19 = vadd.f32 1.0, %v2964_v10 }
 0x1f4   : > { %v2066_v52 = vmul.f32 %v2966_v18, %v2033_v41  ;;  %2967 = vpow2.f32 %v1973_v28  ;;  %v1749_v13 = vadd.f32 %v1659_v0, %v1589_v45  ;;  %vm2071_vm4 = vweird.f32 %v2966_v18 }
 0x1f5   : > { %2969 = vrcp.f32 %v4274_v19  ;;  %2832 = vmatmul.msk.f32.gmra.mxu1 %vm330_vm2, %v3892_v57  ;;  %v1821_v23 = vpop.f32.mrf.mxu0  ;;  %v1434_v36 = vadd.f32 %v1346_v49, %v4951_v43  ;;  %v4952_v57 = vld [vmem:[#allocation2_spill] sm:$0xff]  ;;  %vm2072_vm6 = vmor %vm2070_vm5, %vm2071_vm4  ;;  %v3106_v49 = vld [vmem:[%s3176_s24 + $0x128] sm:$0xff]  ;;  %vm2085_vm10 = vweird.f32 %v4274_v19 }
 0x1f6   : > { %v2067_v59 = vsub.f32 1.0, %v2066_v52  ;;  %v4279_v42 = vadd.f32 %v1818_v48, %v1749_v13  ;;  %2866 = vmatmul.msk.f32.gmra.mxu2 %vm330_vm2, %v3105_v29  ;;  %v2091_v52 = vand.u32 2147483648, %v4274_v19 }
 0x1f7   : > { %2900 = vmatmul.msk.f32.gmra.mxu3 %vm330_vm2, %v4893_v34 }
 0x1f8   : > { %v2068_v22 = vmul.f32 %v2966_v18, %v2067_v59  ;;  %v1940_v61 = vsub.f32 0.0, %v4279_v42  ;;  %2934 = vmatmul.msk.f32.gmra.mxu0 %vm330_vm2, %v4952_v57  ;;  %v2089_v59 = vand.u32 2147483647, %v4274_v19 }
 0x1f9   : > { %v1502_v26 = vpop.f32.mrf.mxu2 }
 0x1fa   : > { %v1662_v12 = vpop.f32.mrf.mxu3  ;;  %v2968_v60 = vpop.eup %2967  ;;  %v2069_v7 = vadd.f32 %v2966_v18, %v2068_v22  ;;  %v1975_v44 = vmul.f32 1.442695, %v1940_v61  ;;  %v1590_v48 = vadd.f32 %v1502_v26, %v1434_v36  ;;  %vm2090_vm12 = vcmp.eq.f32.partialorder %v2089_v59, 8.507059e+37 }
 0x1fb   : > { %v1349_v34 = vpop.f32.mrf.mxu1  ;;  %v2970_v2 = vpop.eup %2969  ;;  %v4290_v3 = vadd.f32 1.0, %v2968_v60 }
 0x1fc   : > { %v2073_v1 = vsel %vm2072_vm6, %v2966_v18, %v2069_v7  ;;  %v2081_v6 = vmul.f32 %v2970_v2, %v4274_v19  ;;  %2971 = vpow2.f32 %v1975_v44  ;;  %v1750_v45 = vadd.f32 %v1662_v12, %v1590_v48  ;;  %v4953_v18 = vld [vmem:[#allocation9_spill] sm:$0xff] }
 0x1fd   : > { %v2078_v41 = vsel %vm2075_vm7, %v2077_v16, %v2073_v1  ;;  %2973 = vrcp.f32 %v4290_v3  ;;  %2833 = vmatmul.msk.f32.gmra.mxu1 %vm330_vm2, %v3907_v51  ;;  %v1824_v0 = vpop.f32.mrf.mxu0  ;;  %vm2086_vm9 = vweird.f32 %v2970_v2  ;;  %v2092_v12 = vor.u32 1.1754944e-38, %v2091_v52 }
 0x1fe   : > { %v2079_v10 = vmul.f32 %v2078_v41, %v4240_v63  ;;  %v2082_v28 = vsub.f32 1.0, %v2081_v6  ;;  %2867 = vmatmul.msk.f32.gmra.mxu2 %vm330_vm2, %v3106_v49  ;;  %v4310_v51 = vadd.f32 %v1821_v23, %v1750_v45  ;;  %v4954_v63 = vld [vmem:[#allocation29_spill] sm:$0xff]  ;;  %vm2087_vm11 = vmor %vm2085_vm10, %vm2086_vm9  ;;  %vm2100_vm14 = vweird.f32 %v4290_v3 }
 0x1ff   : > { %2901 = vmatmul.msk.f32.gmra.mxu3 %vm330_vm2, %v4953_v18  ;;  %v1435_v29 = vadd.f32 %v1349_v34, %v4954_v63  ;;  %v3107_v6 = vld [vmem:[%s3176_s24 + $0x138] sm:$0xff] }
 0x200   : > { %2546 = vst.msk [vmem:[%s4296_s8] sm:$0xff] %vm2545_vm8, %v2079_v10  ;;  %v2083_v13 = vmul.f32 %v2970_v2, %v2082_v28  ;;  %2935 = vmatmul.msk.f32.gmra.mxu0 %vm330_vm2, %v3938_v39  ;;  %v1941_v36 = vsub.f32 0.0, %v4310_v51  ;;  %v4955_v28 = vld [vmem:[#allocation25_spill] sm:$0xff] }
 0x201   : > { %v1505_v33 = vpop.f32.mrf.mxu2 }
 0x202   : > { %v1665_v58 = vpop.f32.mrf.mxu3  ;;  %v2972_v22 = vpop.eup %2971  ;;  %v2084_v43 = vadd.f32 %v2970_v2, %v2083_v13  ;;  %v1591_v60 = vadd.f32 %v1505_v33, %v1435_v29  ;;  %v1977_v48 = vmul.f32 1.442695, %v1941_v36 }
 0x203   : > { %v1352_v61 = vpop.f32.mrf.mxu1  ;;  %v2974_v26 = vpop.eup %2973  ;;  %v4317_v23 = vadd.f32 1.0, %v2972_v22 }
 0x204   : > { %v2088_v7 = vsel %vm2087_vm11, %v2970_v2, %v2084_v43  ;;  %v2096_v44 = vmul.f32 %v2974_v26, %v4290_v3  ;;  %v2106_v2 = vand.u32 2147483648, %v4290_v3  ;;  %v1751_v41 = vadd.f32 %v1665_v58, %v1591_v60 }
 0x205   : > { %v2093_v34 = vsel %vm2090_vm12, %v2092_v12, %v2088_v7  ;;  %2975 = vrcp.f32 %v4317_v23  ;;  %2834 = vmatmul.msk.f32.gmra.mxu1 %vm330_vm2, %v4952_v57  ;;  %v1827_v19 = vpop.f32.mrf.mxu0  ;;  %vm2101_vm13 = vweird.f32 %v2974_v26  ;;  %v2104_v57 = vand.u32 2147483647, %v4290_v3 }
 0x206   : > { %v2094_v16 = vmul.f32 %v2093_v34, %v4252_v54  ;;  %v2097_v1 = vsub.f32 1.0, %v2096_v44  ;;  %2977 = vpow2.f32 %v1977_v48  ;;  %2868 = vmatmul.msk.f32.gmra.mxu2 %vm330_vm2, %v3107_v6  ;;  %v1436_v45 = vadd.f32 %v1352_v61, %v4955_v28  ;;  %v4956_v54 = vld [vmem:[#allocation3_spill] sm:$0xff]  ;;  %vm2102_vm15 = vmor %vm2100_vm14, %vm2101_vm13  ;;  %v3108_v48 = vld [vmem:[%s3176_s24 + $0x140] sm:$0xff] }
 0x207   : > { %2902 = vmatmul.msk.f32.gmra.mxu3 %vm330_vm2, %v4901_v21  ;;  %v4335_v49 = vadd.f32 %v1824_v0, %v1751_v41  ;;  %v2107_v29 = vor.u32 1.1754944e-38, %v2106_v2  ;;  %vm2105_vm0 = vcmp.eq.f32.partialorder %v2104_v57, 8.507059e+37  ;;  %v2119_v34 = vand.u32 2147483647, %v4317_v23 }
 0x208   : > { %2547 = vst.msk [vmem:[%s4296_s8 + $0x8] sm:$0xff] %vm2545_vm8, %v2094_v16  ;;  %v2098_v10 = vmul.f32 %v2974_v26, %v2097_v1  ;;  %2936 = vmatmul.msk.f32.gmra.mxu0 %vm330_vm2, %v4956_v54  ;;  %v2121_v16 = vand.u32 2147483648, %v4317_v23  ;;  %v4958_v1 = vld [vmem:[#allocation31_spill] sm:$0xff]  ;;  %vm2115_vm5 = vweird.f32 %v4317_v23 }
 0x209   : > { %v1508_v18 = vpop.f32.mrf.mxu2  ;;  %v1942_v33 = vsub.f32 0.0, %v4335_v49  ;;  %vm2120_vm7 = vcmp.eq.f32.partialorder %v2119_v34, 8.507059e+37 }
 0x20a   : > { %v1668_v52 = vpop.f32.mrf.mxu3  ;;  %v2099_v13 = vadd.f32 %v2974_v26, %v2098_v10  ;;  %v1592_v21 = vadd.f32 %v1508_v18, %v1436_v45  ;;  %v2122_v45 = vor.u32 1.1754944e-38, %v2121_v16 }
 0x20b   : > { %v1355_v59 = vpop.f32.mrf.mxu1  ;;  %v2976_v63 = vpop.eup %2975  ;;  %v1979_v12 = vmul.f32 1.442695, %v1942_v33 }
 0x20c   : > { %v2978_v58 = vpop.eup %2977  ;;  %v2103_v22 = vsel %vm2102_vm15, %v2974_v26, %v2099_v13  ;;  %v2111_v43 = vmul.f32 %v2976_v63, %v4317_v23  ;;  %v1752_v0 = vadd.f32 %v1668_v52, %v1592_v21  ;;  %v4957_v26 = vld [vmem:[#allocation16_spill] sm:$0xff]  ;;  %vm2116_vm4 = vweird.f32 %v2976_v63 }
 0x20d   : > { %v2108_v36 = vsel %vm2105_vm0, %v2107_v29, %v2103_v22  ;;  %v4340_v61 = vadd.f32 1.0, %v2978_v58  ;;  %2835 = vmatmul.msk.f32.gmra.mxu1 %vm330_vm2, %v3938_v39  ;;  %v1830_v3 = vpop.f32.mrf.mxu0  ;;  %v1437_v39 = vadd.f32 %v1355_v59, %v4958_v1  ;;  %vm2117_vm6 = vmor %vm2115_vm5, %vm2116_vm4  ;;  %v3109_v22 = vld [vmem:[%s3176_s24 + $0x150] sm:$0xff] }
 0x20e   : > { %v2109_v60 = vmul.f32 %v2108_v36, %v4264_v17  ;;  %v2112_v7 = vsub.f32 1.0, %v2111_v43  ;;  %v4345_v44 = vadd.f32 %v1827_v19, %v1752_v0  ;;  %2869 = vmatmul.msk.f32.gmra.mxu2 %vm330_vm2, %v3108_v48 }
 0x20f   : > { %2903 = vmatmul.msk.f32.gmra.mxu3 %vm330_vm2, %v4957_v26  ;;  %2979 = vrcp.f32 %v4340_v61  ;;  %vm2130_vm10 = vweird.f32 %v4340_v61 }
 0x210   : > { %2548 = vst.msk [vmem:[%s4296_s8 + $0x10] sm:$0xff] %vm2545_vm8, %v2109_v60  ;;  %v2113_v17 = vmul.f32 %v2976_v63, %v2112_v7  ;;  %2981 = vpow2.f32 %v1979_v12  ;;  %v1943_v19 = vsub.f32 0.0, %v4345_v44  ;;  %2937 = vmatmul.msk.f32.gmra.mxu0 %vm330_vm2, %v3969_v20  ;;  %v2134_v12 = vand.u32 2147483647, %v4340_v61 }
 0x211   : > { %v1511_v6 = vpop.f32.mrf.mxu2 }
 0x212   : > { %v1671_v2 = vpop.f32.mrf.mxu3  ;;  %v2114_v41 = vadd.f32 %v2976_v63, %v2113_v17  ;;  %v1981_v10 = vmul.f32 1.442695, %v1943_v19  ;;  %v1593_v57 = vadd.f32 %v1511_v6, %v1437_v39  ;;  %vm2135_vm12 = vcmp.eq.f32.partialorder %v2134_v12, 8.507059e+37 }
 0x213   : > { %v1358_v28 = vpop.f32.mrf.mxu1 }
 0x214   : > { %v2118_v18 = vsel %vm2117_vm6, %v2976_v63, %v2114_v41  ;;  %2983 = vpow2.f32 %v1981_v10  ;;  %v1753_v52 = vadd.f32 %v1671_v2, %v1593_v57  ;;  %v3110_v10 = vld [vmem:[%s3176_s24 + $0x158] sm:$0xff]  ;;  %v4961_v57 = vld [vmem:[#allocation24_spill] sm:$0xff] }
 0x215   : > { %v2980_v13 = vpop.eup %2979  ;;  %v2123_v21 = vsel %vm2120_vm7, %v2122_v45, %v2118_v18  ;;  %2836 = vmatmul.msk.f32.gmra.mxu1 %vm330_vm2, %v4956_v54  ;;  %v1833_v59 = vpop.f32.mrf.mxu0  ;;  %v4959_v54 = vld [vmem:[#allocation5_spill] sm:$0xff] }
 0x216   : > { %v2982_v29 = vpop.eup %2981  ;;  %v2124_v23 = vmul.f32 %v2123_v21, %v4279_v42  ;;  %v2126_v33 = vmul.f32 %v2980_v13, %v4340_v61  ;;  %v4365_v58 = vadd.f32 %v1830_v3, %v1753_v52  ;;  %2870 = vmatmul.msk.f32.gmra.mxu2 %vm330_vm2, %v3109_v22  ;;  %v1438_v0 = vadd.f32 %v1358_v28, %v4959_v54  ;;  %v4960_v42 = vld [vmem:[#allocation13_spill] sm:$0xff]  ;;  %v4962_v52 = vld [vmem:[#allocation10_spill] sm:$0xff] }
 0x217   : > { %2904 = vmatmul.msk.f32.gmra.mxu3 %vm330_vm2, %v4909_v50  ;;  %v4371_v63 = vadd.f32 1.0, %v2982_v29  ;;  %v2136_v3 = vand.u32 2147483648, %v4340_v61  ;;  %vm2131_vm9 = vweird.f32 %v2980_v13  ;;  %v4963_v21 = vld [vmem:[#allocation17_spill] sm:$0xff] }
 0x218   : > { %2549 = vst.msk [vmem:[%s4296_s8 + $0x18] sm:$0xff] %vm2545_vm8, %v2124_v23  ;;  %v2127_v43 = vsub.f32 1.0, %v2126_v33  ;;  %v1944_v36 = vsub.f32 0.0, %v4365_v58  ;;  %2938 = vmatmul.msk.f32.gmra.mxu0 %vm330_vm2, %v4960_v42  ;;  %vm2132_vm11 = vmor %vm2130_vm10, %vm2131_vm9 }
 0x219   : > { %2985 = vrcp.f32 %v4371_v63  ;;  %v1514_v60 = vpop.f32.mrf.mxu2  ;;  %v2137_v19 = vor.u32 1.1754944e-38, %v2136_v3  ;;  %vm2145_vm14 = vweird.f32 %v4371_v63 }
 0x21a   : > { %v1674_v50 = vpop.f32.mrf.mxu3  ;;  %v2984_v7 = vpop.eup %2983  ;;  %v2128_v48 = vmul.f32 %v2980_v13, %v2127_v43  ;;  %v1983_v26 = vmul.f32 1.442695, %v1944_v36  ;;  %v1594_v34 = vadd.f32 %v1514_v60, %v1438_v0  ;;  %v2149_v0 = vand.u32 2147483647, %v4371_v63 }
 0x21b   : > { %v1361_v16 = vpop.f32.mrf.mxu1  ;;  %v4382_v1 = vadd.f32 1.0, %v2984_v7  ;;  %v2151_v36 = vand.u32 2147483648, %v4371_v63 }
 0x21c   : > { %v2129_v39 = vadd.f32 %v2980_v13, %v2128_v48  ;;  %2987 = vpow2.f32 %v1983_v26  ;;  %v1754_v17 = vadd.f32 %v1674_v50, %v1594_v34  ;;  %v3111_v34 = vld [vmem:[%s3176_s24 + $0x168] sm:$0xff]  ;;  %vm2150_vm0 = vcmp.eq.f32.partialorder %v2149_v0, 8.507059e+37 }
 0x21d   : > { %2989 = vrcp.f32 %v4382_v1  ;;  %2837 = vmatmul.msk.f32.gmra.mxu1 %vm330_vm2, %v3969_v20  ;;  %v1836_v6 = vpop.f32.mrf.mxu0  ;;  %v1439_v20 = vadd.f32 %v1361_v16, %v4962_v52  ;;  %v4964_v16 = vld [vmem:[#allocation30_spill] sm:$0xff]  ;;  %vm2160_vm5 = vweird.f32 %v4382_v1 }
 0x21e   : > { %v2133_v2 = vsel %vm2132_vm11, %v2980_v13, %v2129_v39  ;;  %v4388_v41 = vadd.f32 %v1833_v59, %v1754_v17  ;;  %2871 = vmatmul.msk.f32.gmra.mxu2 %vm330_vm2, %v3110_v10  ;;  %v2152_v39 = vor.u32 1.1754944e-38, %v2151_v36  ;;  %v2164_v17 = vand.u32 2147483647, %v4382_v1 }
 0x21f   : > { %2905 = vmatmul.msk.f32.gmra.mxu3 %vm330_vm2, %v4961_v57  ;;  %v2986_v61 = vpop.eup %2985  ;;  %v2138_v28 = vsel %vm2135_vm12, %v2137_v19, %v2133_v2  ;;  %v2166_v19 = vand.u32 2147483648, %v4382_v1  ;;  %v4965_v57 = vld [vmem:[#allocation6_spill] sm:$0xff] }
 0x220   : > { %v2139_v45 = vmul.f32 %v2138_v28, %v4310_v51  ;;  %v2141_v18 = vmul.f32 %v2986_v61, %v4371_v63  ;;  %v1945_v13 = vsub.f32 0.0, %v4388_v41  ;;  %2939 = vmatmul.msk.f32.gmra.mxu0 %vm330_vm2, %v4963_v21  ;;  %vm2146_vm13 = vweird.f32 %v2986_v61 }
 0x221   : > { %v1517_v59 = vpop.f32.mrf.mxu2  ;;  %vm2147_vm15 = vmor %vm2145_vm14, %vm2146_vm13  ;;  %vm2165_vm7 = vcmp.eq.f32.partialorder %v2164_v17, 8.507059e+37 }
 0x222   : > { %v1677_v29 = vpop.f32.mrf.mxu3  ;;  %v2988_v23 = vpop.eup %2987  ;;  %2550 = vst.msk [vmem:[%s4296_s8 + $0x20] sm:$0xff] %vm2545_vm8, %v2139_v45  ;;  %v2142_v33 = vsub.f32 1.0, %v2141_v18  ;;  %v1985_v22 = vmul.f32 1.442695, %v1945_v13  ;;  %v1595_v43 = vadd.f32 %v1517_v59, %v1439_v20 }
 0x223   : > { %v1364_v54 = vpop.f32.mrf.mxu1  ;;  %v2990_v51 = vpop.eup %2989  ;;  %v4404_v12 = vadd.f32 1.0, %v2988_v23 }
 0x224   : > { %v2143_v3 = vmul.f32 %v2986_v61, %v2142_v33  ;;  %v2156_v60 = vmul.f32 %v2990_v51, %v4382_v1  ;;  %2991 = vpow2.f32 %v1985_v22  ;;  %v1755_v26 = vadd.f32 %v1677_v29, %v1595_v43 }
 0x225   : > { %2993 = vrcp.f32 %v4404_v12  ;;  %2838 = vmatmul.msk.f32.gmra.mxu1 %vm330_vm2, %v4960_v42  ;;  %v1839_v50 = vpop.f32.mrf.mxu0  ;;  %vm2161_vm4 = vweird.f32 %v2990_v51  ;;  %v1440_v28 = vadd.f32 %v1364_v54, %v4965_v57  ;;  %v2167_v29 = vor.u32 1.1754944e-38, %v2166_v19 }
 0x226   : > { %v2144_v7 = vadd.f32 %v2986_v61, %v2143_v3  ;;  %v2157_v48 = vsub.f32 1.0, %v2156_v60  ;;  %2872 = vmatmul.msk.f32.gmra.mxu2 %vm330_vm2, %v3111_v34  ;;  %v4417_v10 = vadd.f32 %v1836_v6, %v1755_v26  ;;  %vm2162_vm6 = vmor %vm2160_vm5, %vm2161_vm4  ;;  %v3112_v3 = vld [vmem:[%s3176_s24 + $0x170] sm:$0xff]  ;;  %v2181_v60 = vand.u32 2147483648, %v4404_v12  ;;  %v4967_v26 = vld [vmem:[#allocation11_spill] sm:$0xff] }
 0x227   : > { %2906 = vmatmul.msk.f32.gmra.mxu3 %vm330_vm2, %v4964_v16  ;;  %v3113_v34 = vld [vmem:[%s3176_s24 + $0x180] sm:$0xff]  ;;  %vm2175_vm10 = vweird.f32 %v4404_v12 }
 0x228   : > { %v2148_v42 = vsel %vm2147_vm15, %v2986_v61, %v2144_v7  ;;  %v2158_v2 = vmul.f32 %v2990_v51, %v2157_v48  ;;  %2940 = vmatmul.msk.f32.gmra.mxu0 %vm330_vm2, %v4018_v4  ;;  %v1946_v61 = vsub.f32 0.0, %v4417_v10  ;;  %v1303_v16 = vrot.slane %v3113_v34, 2 }
 0x229   : > { %v2153_v63 = vsel %vm2150_vm0, %v2152_v39, %v2148_v42  ;;  %v1520_v45 = vpop.f32.mrf.mxu2  ;;  %v4447_v39 = vld [vmem:[%s3176_s24 + $0x188] sm:$0xff] }
 0x22a   : > { %v1680_v18 = vpop.f32.mrf.mxu3  ;;  %v2992_v52 = vpop.eup %2991  ;;  %v2154_v20 = vmul.f32 %v2153_v63, %v4335_v49  ;;  %v2159_v13 = vadd.f32 %v2990_v51, %v2158_v2  ;;  %v1596_v33 = vadd.f32 %v1520_v45, %v1440_v28  ;;  %v1987_v43 = vmul.f32 1.442695, %v1946_v61 }
 0x22b   : > { %v1367_v59 = vpop.f32.mrf.mxu1  ;;  %v2994_v6 = vpop.eup %2993  ;;  %v4425_v23 = vadd.f32 1.0, %v2992_v52  ;;  %v1304_v17 = vrot.slane %v4447_v39, 2 }
 0x22c   : > { %2551 = vst.msk [vmem:[%s4296_s8 + $0x28] sm:$0xff] %vm2545_vm8, %v2154_v20  ;;  %v2163_v22 = vsel %vm2162_vm6, %v2990_v51, %v2159_v13  ;;  %v2171_v49 = vmul.f32 %v2994_v6, %v4404_v12  ;;  %v4966_v51 = vld [vmem:[#allocation33_spill] sm:$0xff]  ;;  %v1756_v7 = vadd.f32 %v1680_v18, %v1596_v33  ;;  %vm2176_vm9 = vweird.f32 %v2994_v6 }
 0x22d   : > { %v2168_v54 = vsel %vm2165_vm7, %v2167_v29, %v2163_v22  ;;  %2995 = vrcp.f32 %v4425_v23  ;;  %2839 = vmatmul.msk.f32.gmra.mxu1 %vm330_vm2, %v4963_v21  ;;  %v1842_v1 = vpop.f32.mrf.mxu0  ;;  %v2179_v21 = vand.u32 2147483647, %v4404_v12  ;;  %vm2177_vm11 = vmor %vm2175_vm10, %vm2176_vm9  ;;  %v2182_v18 = vor.u32 1.1754944e-38, %v2181_v60 }
 0x22e   : > { %v2169_v0 = vmul.f32 %v2168_v54, %v4345_v44  ;;  %v2172_v36 = vsub.f32 1.0, %v2171_v49  ;;  %2997 = vpow2.f32 %v1987_v43  ;;  %2873 = vmatmul.msk.f32.gmra.mxu2 %vm330_vm2, %v3112_v3  ;;  %v1441_v44 = vadd.f32 %v1367_v59, %v4967_v26 }
 0x22f   : > { %2907 = vmatmul.msk.f32.gmra.mxu3 %vm330_vm2, %v4966_v51  ;;  %v4450_v19 = vadd.f32 %v1839_v50, %v1756_v7  ;;  %vm2180_vm12 = vcmp.eq.f32.partialorder %v2179_v21, 8.507059e+37  ;;  %v4461_v22 = vsel %vm692_vm3, %v1303_v16, %v1304_v17  ;;  %v2194_v54 = vand.u32 2147483647, %v4425_v23  ;;  %v3115_v51 = vld [vmem:[%s3176_s24 + $0x190] sm:$0x3] }
 0x230   : > { %2552 = vst.msk [vmem:[%s4296_s8 + $0x30] sm:$0xff] %vm2545_vm8, %v2169_v0  ;;  %v2173_v48 = vmul.f32 %v2994_v6, %v2172_v36  ;;  %2941 = vmatmul.msk.f32.gmra.mxu0 %vm330_vm2, %v4036_v30  ;;  %v2196_v0 = vand.u32 2147483648, %v4425_v23  ;;  %v1306_v60 = vrot.slane %v3115_v51, 2  ;;  %vm2190_vm14 = vweird.f32 %v4425_v23 }
 0x231   : > { %v1523_v42 = vpop.f32.mrf.mxu2  ;;  %v1947_v52 = vsub.f32 0.0, %v4450_v19  ;;  %vm2195_vm0 = vcmp.eq.f32.partialorder %v2194_v54, 8.507059e+37 }
 0x232   : > { %v1683_v2 = vpop.f32.mrf.mxu3  ;;  %v2174_v63 = vadd.f32 %v2994_v6, %v2173_v48  ;;  %v1597_v57 = vadd.f32 %v1523_v42, %v1441_v44  ;;  %v2197_v44 = vor.u32 1.1754944e-38, %v2196_v0  ;;  %v195_v42 = vld [vmem:[%s3176_s24 + $0x198] sm:$0xff] }
 0x233   : > { %v1370_v28 = vpop.f32.mrf.mxu1  ;;  %v2996_v45 = vpop.eup %2995  ;;  %v1989_v33 = vmul.f32 1.442695, %v1947_v52 }
 0x234   : > { %v2998_v20 = vpop.eup %2997  ;;  %v2178_v13 = vsel %vm2177_vm11, %v2994_v6, %v2174_v63  ;;  %v2186_v61 = vmul.f32 %v2996_v45, %v4425_v23  ;;  %v1757_v50 = vadd.f32 %v1683_v2, %v1597_v57  ;;  %vm2191_vm13 = vweird.f32 %v2996_v45  ;;  %v4482_v2 = vld [vmem:[%s3176_s24 + $0x1a0] sm:$0xff] }
 0x235   : > { %v2183_v59 = vsel %vm2180_vm12, %v2182_v18, %v2178_v13  ;;  %v4456_v29 = vadd.f32 1.0, %v2998_v20  ;;  %2840 = vmatmul.msk.f32.gmra.mxu1 %vm330_vm2, %v4018_v4  ;;  %v1845_v12 = vpop.f32.mrf.mxu0  ;;  %v4968_v4 = vld [vmem:[#allocation14_spill] sm:$0xff]  ;;  %vm2192_vm15 = vmor %vm2190_vm14, %vm2191_vm13  ;;  %v4487_v23 = vsel %vm692_vm3, %v1304_v17, %v1306_v60 }
 0x236   : > { %v2184_v49 = vmul.f32 %v2183_v59, %v4365_v58  ;;  %v2187_v43 = vsub.f32 1.0, %v2186_v61  ;;  %v4464_v6 = vadd.f32 %v1842_v1, %v1757_v50  ;;  %2874 = vmatmul.msk.f32.gmra.mxu2 %vm330_vm2, %v3113_v34  ;;  %v1442_v36 = vadd.f32 %v1370_v28, %v4968_v4 }
 0x237   : > { %2908 = vmatmul.msk.f32.gmra.mxu3 %vm330_vm2, %v4023_v53  ;;  %2999 = vrcp.f32 %v4456_v29  ;;  %v1620_v61 = vrot.slane %v4482_v2, 1  ;;  %v1778_v59 = vrot.slane %v195_v42, 2  ;;  %vm2205_vm5 = vweird.f32 %v4456_v29 }
 0x238   : > { %2553 = vst.msk [vmem:[%s4296_s8 + $0x38] sm:$0xff] %vm2545_vm8, %v2184_v49  ;;  %v2188_v58 = vmul.f32 %v2996_v45, %v2187_v43  ;;  %3001 = vpow2.f32 %v1989_v33  ;;  %v1948_v1 = vsub.f32 0.0, %v4464_v6  ;;  %2942 = vmatmul.msk.f32.gmra.mxu0 %vm330_vm2, %v4461_v22  ;;  %v1779_v49 = vrot.slane %v4482_v2, 2 }
 0x239   : > { %v1526_v53 = vpop.f32.mrf.mxu2 }
 0x23a   : > { %v1686_v3 = vpop.f32.mrf.mxu3  ;;  %v2189_v7 = vadd.f32 %v2996_v45, %v2188_v58  ;;  %v1991_v48 = vmul.f32 1.442695, %v1948_v1  ;;  %v1598_v21 = vadd.f32 %v1526_v53, %v1442_v36 }
 0x23b   : > { %v1373_v26 = vpop.f32.mrf.mxu1 }
 0x23c   : > { %v2193_v34 = vsel %vm2192_vm15, %v2996_v45, %v2189_v7  ;;  %3003 = vpow2.f32 %v1991_v48  ;;  %v1758_v16 = vadd.f32 %v1686_v3, %v1598_v21  ;;  %v197_v3 = vld [vmem:[%s3176_s24 + $0x1a8] sm:$0x3]  ;;  %v1780_v7 = vsel %vm692_vm3, %v1778_v59, %v1779_v49 }
 0x23d   : > { %v3000_v63 = vpop.eup %2999  ;;  %v2198_v57 = vsel %vm2195_vm0, %v2197_v44, %v2193_v34  ;;  %2841 = vmatmul.msk.f32.gmra.mxu1 %vm330_vm2, %v4036_v30  ;;  %v1848_v28 = vpop.f32.mrf.mxu0  ;;  %v1619_v30 = vrot.slane %v195_v42, 1  ;;  %v1622_v44 = vrot.slane %v197_v3, 1 }
 0x23e   : > { %v3002_v18 = vpop.eup %3001  ;;  %v2199_v52 = vmul.f32 %v2198_v57, %v4388_v41  ;;  %v2201_v45 = vmul.f32 %v3000_v63, %v4456_v29  ;;  %v4491_v20 = vadd.f32 %v1845_v12, %v1758_v16  ;;  %2875 = vmatmul.msk.f32.gmra.mxu2 %vm330_vm2, %v4447_v39  ;;  %v1443_v41 = vadd.f32 %v1373_v26, %v4025_v11 }
 0x23f   : > { %2909 = vmatmul.msk.f32.gmra.mxu3 %vm330_vm2, %v4041_v15  ;;  %v4497_v13 = vadd.f32 1.0, %v3002_v18  ;;  %v2209_v39 = vand.u32 2147483647, %v4456_v29  ;;  %v2211_v15 = vand.u32 2147483648, %v4456_v29  ;;  %vm2206_vm4 = vweird.f32 %v3000_v63 }
 0x240   : > { %2554 = vst.msk [vmem:[%s4296_s8 + $0x40] sm:$0xff] %vm2545_vm8, %v2199_v52  ;;  %v2202_v17 = vsub.f32 1.0, %v2201_v45  ;;  %v1949_v50 = vsub.f32 0.0, %v4491_v20  ;;  %2943 = vmatmul.msk.f32.gmra.mxu0 %vm330_vm2, %v4487_v23  ;;  %v1621_v58 = vsel %vm247_vm1, %v1619_v30, %v1620_v61  ;;  %vm2207_vm6 = vmor %vm2205_vm5, %vm2206_vm4  ;;  %v1781_v18 = vrot.slane %v197_v3, 2 }
 0x241   : > { %3005 = vrcp.f32 %v4497_v13  ;;  %v1529_v33 = vpop.f32.mrf.mxu2  ;;  %v2212_v51 = vor.u32 1.1754944e-38, %v2211_v15  ;;  %vm2210_vm7 = vcmp.eq.f32.partialorder %v2209_v39, 8.507059e+37  ;;  %v1623_v59 = vsel %vm247_vm1, %v1620_v61, %v1622_v44 }
 0x242   : > { %v1689_v12 = vpop.f32.mrf.mxu3  ;;  %v3004_v43 = vpop.eup %3003  ;;  %v2203_v54 = vmul.f32 %v3000_v63, %v2202_v17  ;;  %v1993_v11 = vmul.f32 1.442695, %v1949_v50  ;;  %v1599_v0 = vadd.f32 %v1529_v33, %v1443_v41  ;;  %v2226_v50 = vand.u32 2147483648, %v4497_v13 }
 0x243   : > { %v1376_v4 = vpop.f32.mrf.mxu1  ;;  %v4510_v36 = vadd.f32 1.0, %v3004_v43  ;;  %vm2220_vm10 = vweird.f32 %v4497_v13 }
 0x244   : > { %v2204_v1 = vadd.f32 %v3000_v63, %v2203_v54  ;;  %3007 = vpow2.f32 %v1993_v11  ;;  %v1759_v53 = vadd.f32 %v1689_v12, %v1599_v0  ;;  %v1782_v12 = vsel %vm692_vm3, %v1779_v49, %v1781_v18 }
 0x245   : > { %3009 = vrcp.f32 %v4510_v36  ;;  %2842 = vmatmul.msk.f32.gmra.mxu1 %vm330_vm2, %v4461_v22  ;;  %v1851_v60 = vpop.f32.mrf.mxu0  ;;  %v1444_v22 = vadd.f32 %v1376_v4, %v4043_v8  ;;  %v2227_v61 = vor.u32 1.1754944e-38, %v2226_v50  ;;  %v2239_v0 = vand.u32 2147483647, %v4510_v36 }
 0x246   : > { %v2208_v48 = vsel %vm2207_vm6, %v3000_v63, %v2204_v1  ;;  %v4519_v21 = vadd.f32 %v1848_v28, %v1759_v53  ;;  %2876 = vmatmul.msk.f32.gmra.mxu2 %vm330_vm2, %v195_v42  ;;  %vm2235_vm12 = vweird.f32 %v4510_v36 }
 0x247   : > { %2910 = vmatmul.msk.f32.gmra.mxu3 %vm330_vm2, %v1621_v58  ;;  %v3006_v29 = vpop.eup %3005  ;;  %v2213_v26 = vsel %vm2210_vm7, %v2212_v51, %v2208_v48 }
 0x248   : > { %v2214_v34 = vmul.f32 %v2213_v26, %v4417_v10  ;;  %v2216_v16 = vmul.f32 %v3006_v29, %v4497_v13  ;;  %v1950_v57 = vsub.f32 0.0, %v4519_v21  ;;  %2944 = vmatmul.msk.f32.gmra.mxu0 %vm330_vm2, %v1780_v7  ;;  %v2224_v10 = vand.u32 2147483647, %v4497_v13 }
 0x249   : > { %v1532_v63 = vpop.f32.mrf.mxu2  ;;  %vm2221_vm9 = vweird.f32 %v3006_v29 }
 0x24a   : > { %v1692_v28 = vpop.f32.mrf.mxu3  ;;  %v3008_v52 = vpop.eup %3007  ;;  %2555 = vst.msk [vmem:[%s4296_s8 + $0x48] sm:$0xff] %vm2545_vm8, %v2214_v34  ;;  %v2217_v42 = vsub.f32 1.0, %v2216_v16  ;;  %v1995_v45 = vmul.f32 1.442695, %v1950_v57  ;;  %v1600_v30 = vadd.f32 %v1532_v63, %v1444_v22  ;;  %vm2222_vm1 = vmor %vm2220_vm10, %vm2221_vm9  ;;  %vm2225_vm11 = vcmp.eq.f32.partialorder %v2224_v10, 8.507059e+37 }
 0x24b   : > { %v1379_v17 = vpop.f32.mrf.mxu1  ;;  %v3010_v41 = vpop.eup %3009  ;;  %v4532_v8 = vadd.f32 1.0, %v3008_v52 }
 0x24c   : > { %v2218_v39 = vmul.f32 %v3006_v29, %v2217_v42  ;;  %v2231_v15 = vmul.f32 %v3010_v41, %v4510_v36  ;;  %3011 = vpow2.f32 %v1995_v45  ;;  %v1760_v11 = vadd.f32 %v1692_v28, %v1600_v30 }
 0x24d   : > { %3013 = vrcp.f32 %v4532_v8  ;;  %2843 = vmatmul.msk.f32.gmra.mxu1 %vm330_vm2, %v4487_v23  ;;  %v1854_v33 = vpop.f32.mrf.mxu0  ;;  %v2241_v23 = vand.u32 2147483648, %v4510_v36  ;;  %vm2236_vm3 = vweird.f32 %v3010_v41  ;;  %v2256_v28 = vand.u32 2147483648, %v4532_v8 }
 0x24e   : > { %v2219_v43 = vadd.f32 %v3006_v29, %v2218_v39  ;;  %v2232_v54 = vsub.f32 1.0, %v2231_v15  ;;  %2877 = vmatmul.msk.f32.gmra.mxu2 %vm330_vm2, %v4482_v2  ;;  %v4546_v49 = vadd.f32 %v1851_v60, %v1760_v11  ;;  %v1445_v2 = vadd.f32 %v1379_v17, %v4053_v31  ;;  %vm2237_vm13 = vmor %vm2235_vm12, %vm2236_vm3 }
 0x24f   : > { %2911 = vmatmul.msk.f32.gmra.mxu3 %vm330_vm2, %v1623_v59  ;;  %v2242_v60 = vor.u32 1.1754944e-38, %v2241_v23  ;;  %v2254_v42 = vand.u32 2147483647, %v4532_v8  ;;  %vm2250_vm15 = vweird.f32 %v4532_v8  ;;  %v2257_v39 = vor.u32 1.1754944e-38, %v2256_v28 }
 0x250   : > { %v2223_v4 = vsel %vm2222_vm1, %v3006_v29, %v2219_v43  ;;  %v2233_v58 = vmul.f32 %v3010_v41, %v2232_v54  ;;  %2945 = vmatmul.msk.f32.gmra.mxu0 %vm330_vm2, %v1782_v12  ;;  %v1951_v48 = vsub.f32 0.0, %v4546_v49  ;;  %vm2240_vm2 = vcmp.eq.f32.partialorder %v2239_v0, 8.507059e+37 }
 0x251   : > { %v2228_v13 = vsel %vm2225_vm11, %v2227_v61, %v2223_v4  ;;  %v1535_v1 = vpop.f32.mrf.mxu2  ;;  %vm2255_vm4 = vcmp.eq.f32.partialorder %v2254_v42, 8.507059e+37 }
 0x252   : > { %v1695_v53 = vpop.f32.mrf.mxu3  ;;  %v3012_v3 = vpop.eup %3011  ;;  %v2229_v51 = vmul.f32 %v2228_v13, %v4450_v19  ;;  %v2234_v7 = vadd.f32 %v3010_v41, %v2233_v58  ;;  %v1601_v34 = vadd.f32 %v1535_v1, %v1445_v2  ;;  %v1997_v19 = vmul.f32 1.442695, %v1951_v48 }
 0x253   : > { %v1382_v29 = vpop.f32.mrf.mxu1  ;;  %v3014_v26 = vpop.eup %3013  ;;  %v4553_v44 = vadd.f32 1.0, %v3012_v3 }
 0x254   : > { %2556 = vst.msk [vmem:[%s4296_s8 + $0x50] sm:$0xff] %vm2545_vm8, %v2229_v51  ;;  %v2238_v31 = vsel %vm2237_vm13, %v3010_v41, %v2234_v7  ;;  %v2246_v16 = vmul.f32 %v3014_v26, %v4532_v8  ;;  %v1761_v18 = vadd.f32 %v1695_v53, %v1601_v34  ;;  %vm2251_vm14 = vweird.f32 %v3014_v26 }
 0x255   : > { %v2243_v22 = vsel %vm2240_vm2, %v2242_v60, %v2238_v31  ;;  %3015 = vrcp.f32 %v4553_v44  ;;  %v1857_v36 = vpop.f32.mrf.mxu0  ;;  %v1446_v45 = vadd.f32 %v1382_v29, %v4064_v56  ;;  %vm2252_vm0 = vmor %vm2250_vm15, %vm2251_vm14  ;;  %v2269_v58 = vand.u32 2147483647, %v4553_v44 }
 0x256   : > { %v2244_v57 = vmul.f32 %v2243_v22, %v4464_v6  ;;  %v2247_v63 = vsub.f32 1.0, %v2246_v16  ;;  %3017 = vpow2.f32 %v1997_v19  ;;  %v4565_v30 = vadd.f32 %v1854_v33, %v1761_v18 }
 0x257   : > { %v2271_v13 = vand.u32 2147483648, %v4553_v44  ;;  %vm2265_vm6 = vweird.f32 %v4553_v44  ;;  %vm2270_vm9 = vcmp.eq.f32.partialorder %v2269_v58, 8.507059e+37 }
 0x258   : > { %2557 = vst.msk [vmem:[%s4296_s8 + $0x58] sm:$0xff] %vm2545_vm8, %v2244_v57  ;;  %v2248_v52 = vmul.f32 %v3014_v26, %v2247_v63  ;;  %v1952_v15 = vsub.f32 0.0, %v4565_v30 }
 0x259   : > { %v1538_v17 = vpop.f32.mrf.mxu2 }
 0x25a   : > { %v1698_v41 = vpop.f32.mrf.mxu3  ;;  %v2249_v10 = vadd.f32 %v3014_v26, %v2248_v52  ;;  %v1602_v6 = vadd.f32 %v1538_v17, %v1446_v45  ;;  %v1999_v61 = vmul.f32 1.442695, %v1952_v15 }
 0x25b   : > { %v1385_v50 = vpop.f32.mrf.mxu1  ;;  %v3016_v59 = vpop.eup %3015 }
 0x25c   : > { %v3018_v12 = vpop.eup %3017  ;;  %v2253_v43 = vsel %vm2252_vm0, %v3014_v26, %v2249_v10  ;;  %v2261_v56 = vmul.f32 %v3016_v59, %v4553_v44  ;;  %v1762_v33 = vadd.f32 %v1698_v41, %v1602_v6  ;;  %v1447_v2 = vadd.f32 %v1385_v50, %v4075_v9 }
 0x25d   : > { %v2258_v54 = vsel %vm2255_vm4, %v2257_v39, %v2253_v43  ;;  %v2047_v11 = vadd.f32 1.0, %v3018_v12  ;;  %v1860_v0 = vpop.f32.mrf.mxu0  ;;  %vm2266_vm5 = vweird.f32 %v3016_v59  ;;  %v2272_v26 = vor.u32 1.1754944e-38, %v2271_v13 }
 0x25e   : > { %v2259_v8 = vmul.f32 %v2258_v54, %v4491_v20  ;;  %v2262_v23 = vsub.f32 1.0, %v2261_v56  ;;  %v4571_v4 = vadd.f32 %v1857_v36, %v1762_v33  ;;  %vm2267_vm7 = vmor %vm2265_vm6, %vm2266_vm5 }
 0x25f   : > { %3019 = vrcp.f32 %v2047_v11  ;;  %v2284_v52 = vand.u32 2147483647, %v2047_v11  ;;  %v2286_v42 = vand.u32 2147483648, %v2047_v11  ;;  %vm2280_vm1 = vweird.f32 %v2047_v11 }
 0x260   : > { %2558 = vst.msk [vmem:[%s4296_s8 + $0x60] sm:$0xff] %vm2545_vm8, %v2259_v8  ;;  %v2263_v1 = vmul.f32 %v3016_v59, %v2262_v23  ;;  %3021 = vpow2.f32 %v1999_v61  ;;  %v1953_v53 = vsub.f32 0.0, %v4571_v4 }
 0x261   : > { %v1541_v3 = vpop.f32.mrf.mxu2  ;;  %vm2285_vm3 = vcmp.eq.f32.partialorder %v2284_v52, 8.507059e+37 }
 0x262   : > { %v1701_v51 = vpop.f32.mrf.mxu3  ;;  %v2264_v20 = vadd.f32 %v3016_v59, %v2263_v1  ;;  %v2001_v7 = vmul.f32 1.442695, %v1953_v53  ;;  %v1603_v48 = vadd.f32 %v1541_v3, %v1447_v2 }
 0x263   : > { %v1388_v29 = vpop.f32.mrf.mxu1 }
 0x264   : > { %v2268_v60 = vsel %vm2267_vm7, %v3016_v59, %v2264_v20  ;;  %3023 = vpow2.f32 %v2001_v7  ;;  %v1763_v9 = vadd.f32 %v1701_v51, %v1603_v48  ;;  %v1448_v28 = vadd.f32 %v1388_v29, %v4086_v35 }
 0x265   : > { %v3020_v34 = vpop.eup %3019  ;;  %v2273_v31 = vsel %vm2270_vm9, %v2272_v26, %v2268_v60  ;;  %v1863_v16 = vpop.f32.mrf.mxu0  ;;  %v2287_v35 = vor.u32 1.1754944e-38, %v2286_v42 }
 0x266   : > { %v3022_v19 = vpop.eup %3021  ;;  %v2274_v22 = vmul.f32 %v2273_v31, %v4519_v21  ;;  %v2276_v36 = vmul.f32 %v3020_v34, %v2047_v11  ;;  %v4581_v57 = vadd.f32 %v1860_v0, %v1763_v9  ;;  %vm2281_vm10 = vweird.f32 %v3020_v34 }
 0x267   : > { %v2048_v44 = vadd.f32 1.0, %v3022_v19  ;;  %vm2282_vm11 = vmor %vm2280_vm1, %vm2281_vm10 }
 0x268   : > { %2559 = vst.msk [vmem:[%s4296_s8 + $0x68] sm:$0xff] %vm2545_vm8, %v2274_v22  ;;  %v2277_v63 = vsub.f32 1.0, %v2276_v36  ;;  %v1954_v18 = vsub.f32 0.0, %v4581_v57 }
 0x269   : > { %3025 = vrcp.f32 %v2048_v44  ;;  %v1544_v45 = vpop.f32.mrf.mxu2  ;;  %v2299_v20 = vand.u32 2147483647, %v2048_v44  ;;  %v2301_v7 = vand.u32 2147483648, %v2048_v44  ;;  %vm2295_vm13 = vweird.f32 %v2048_v44 }
 0x26a   : > { %v1704_v17 = vpop.f32.mrf.mxu3  ;;  %v3024_v41 = vpop.eup %3023  ;;  %v2278_v10 = vmul.f32 %v3020_v34, %v2277_v63  ;;  %v2003_v21 = vmul.f32 1.442695, %v1954_v18  ;;  %v1604_v6 = vadd.f32 %v1544_v45, %v1448_v28 }
 0x26b   : > { %v1391_v50 = vpop.f32.mrf.mxu1  ;;  %v4587_v59 = vadd.f32 1.0, %v3024_v41  ;;  %vm2300_vm14 = vcmp.eq.f32.partialorder %v2299_v20, 8.507059e+37 }
 0x26c   : > { %v2279_v39 = vadd.f32 %v3020_v34, %v2278_v10  ;;  %3027 = vpow2.f32 %v2003_v21  ;;  %v1764_v15 = vadd.f32 %v1704_v17, %v1604_v6  ;;  %v1449_v8 = vadd.f32 %v1391_v50, %v4097_v38 }
 0x26d   : > { %3029 = vrcp.f32 %v4587_v59  ;;  %v1866_v12 = vpop.f32.mrf.mxu0  ;;  %v2314_v31 = vand.u32 2147483647, %v4587_v59  ;;  %vm2310_vm0 = vweird.f32 %v4587_v59 }
 0x26e   : > { %v2283_v43 = vsel %vm2282_vm11, %v3020_v34, %v2279_v39  ;;  %v4590_v56 = vadd.f32 %v1863_v16, %v1764_v15  ;;  %v2302_v34 = vor.u32 1.1754944e-38, %v2301_v7  ;;  %v2316_v16 = vand.u32 2147483648, %v4587_v59 }
 0x26f   : > { %v3026_v33 = vpop.eup %3025  ;;  %v2288_v54 = vsel %vm2285_vm3, %v2287_v35, %v2283_v43  ;;  %vm2315_vm5 = vcmp.eq.f32.partialorder %v2314_v31, 8.507059e+37 }
 0x270   : > { %v2289_v61 = vmul.f32 %v2288_v54, %v4546_v49  ;;  %v2291_v0 = vmul.f32 %v3026_v33, %v2048_v44  ;;  %v1955_v11 = vsub.f32 0.0, %v4590_v56  ;;  %vm2296_vm12 = vweird.f32 %v3026_v33 }
 0x271   : > { %v1547_v23 = vpop.f32.mrf.mxu2  ;;  %vm2297_vm2 = vmor %vm2295_vm13, %vm2296_vm12  ;;  %v2317_v21 = vor.u32 1.1754944e-38, %v2316_v16 }
 0x272   : > { %v1707_v58 = vpop.f32.mrf.mxu3  ;;  %v3028_v13 = vpop.eup %3027  ;;  %2560 = vst.msk [vmem:[%s4296_s8 + $0x70] sm:$0xff] %vm2545_vm8, %v2289_v61  ;;  %v2292_v2 = vsub.f32 1.0, %v2291_v0  ;;  %v2005_v1 = vmul.f32 1.442695, %v1955_v11  ;;  %v1605_v53 = vadd.f32 %v1547_v23, %v1449_v8 }
 0x273   : > { %v1394_v3 = vpop.f32.mrf.mxu1  ;;  %v3030_v51 = vpop.eup %3029  ;;  %v4597_v48 = vadd.f32 1.0, %v3028_v13 }
 0x274   : > { %v2293_v49 = vmul.f32 %v3026_v33, %v2292_v2  ;;  %v2306_v38 = vmul.f32 %v3030_v51, %v4587_v59  ;;  %3031 = vpow2.f32 %v2005_v1  ;;  %v1765_v9 = vadd.f32 %v1707_v58, %v1605_v53 }
 0x275   : > { %3033 = vrcp.f32 %v4597_v48  ;;  %v1869_v29 = vpop.f32.mrf.mxu0  ;;  %vm2311_vm15 = vweird.f32 %v3030_v51  ;;  %v1450_v28 = vadd.f32 %v1394_v3, %v4108_v62  ;;  %v2331_v43 = vand.u32 2147483648, %v4597_v48 }
 0x276   : > { %v2294_v26 = vadd.f32 %v3026_v33, %v2293_v49  ;;  %v2307_v60 = vsub.f32 1.0, %v2306_v38  ;;  %v4603_v36 = vadd.f32 %v1866_v12, %v1765_v9  ;;  %vm2312_vm4 = vmor %vm2310_vm0, %vm2311_vm15  ;;  %v2329_v61 = vand.u32 2147483647, %v4597_v48 }
 0x277   : > { %vm2325_vm7 = vweird.f32 %v4597_v48  ;;  %v2332_v1 = vor.u32 1.1754944e-38, %v2331_v43 }
 0x278   : > { %v2298_v19 = vsel %vm2297_vm2, %v3026_v33, %v2294_v26  ;;  %v2308_v22 = vmul.f32 %v3030_v51, %v2307_v60  ;;  %v1956_v17 = vsub.f32 0.0, %v4603_v36  ;;  %vm2330_vm10 = vcmp.eq.f32.partialorder %v2329_v61, 8.507059e+37 }
 0x279   : > { %v2303_v63 = vsel %vm2300_vm14, %v2302_v34, %v2298_v19  ;;  %v1550_v18 = vpop.f32.mrf.mxu2 }
 0x27a   : > { %v1710_v44 = vpop.f32.mrf.mxu3  ;;  %v3032_v52 = vpop.eup %3031  ;;  %v2304_v42 = vmul.f32 %v2303_v63, %v4565_v30  ;;  %v2309_v45 = vadd.f32 %v3030_v51, %v2308_v22  ;;  %v1606_v50 = vadd.f32 %v1550_v18, %v1450_v28  ;;  %v2007_v30 = vmul.f32 1.442695, %v1956_v17 }
 0x27b   : > { %v1397_v41 = vpop.f32.mrf.mxu1  ;;  %v3034_v10 = vpop.eup %3033  ;;  %v4609_v6 = vadd.f32 1.0, %v3032_v52 }
 0x27c   : > { %2561 = vst.msk [vmem:[%s4296_s8 + $0x78] sm:$0xff] %vm2545_vm8, %v2304_v42  ;;  %v2313_v62 = vsel %vm2312_vm4, %v3030_v51, %v2309_v45  ;;  %v2321_v39 = vmul.f32 %v3034_v10, %v4597_v48  ;;  %v1766_v33 = vadd.f32 %v1710_v44, %v1606_v50  ;;  %vm2326_vm6 = vweird.f32 %v3034_v10 }
 0x27d   : > { %v2318_v15 = vsel %vm2315_vm5, %v2317_v21, %v2313_v62  ;;  %3035 = vrcp.f32 %v4609_v6  ;;  %v1872_v59 = vpop.f32.mrf.mxu0  ;;  %v1451_v0 = vadd.f32 %v1397_v41, %v4119_v47  ;;  %vm2327_vm9 = vmor %vm2325_vm7, %vm2326_vm6  ;;  %v2344_v9 = vand.u32 2147483647, %v4609_v6 }
 0x27e   : > { %v2319_v35 = vmul.f32 %v2318_v15, %v4571_v4  ;;  %v2322_v12 = vsub.f32 1.0, %v2321_v39  ;;  %3037 = vpow2.f32 %v2007_v30  ;;  %v4621_v8 = vadd.f32 %v1869_v29, %v1766_v33 }
 0x27f   : > { %v2346_v34 = vand.u32 2147483648, %v4609_v6  ;;  %vm2340_vm11 = vweird.f32 %v4609_v6  ;;  %vm2345_vm12 = vcmp.eq.f32.partialorder %v2344_v9, 8.507059e+37 }
 0x280   : > { %2562 = vst.msk [vmem:[%s4296_s8 + $0x80] sm:$0xff] %vm2545_vm8, %v2319_v35  ;;  %v2323_v54 = vmul.f32 %v3034_v10, %v2322_v12  ;;  %v1957_v53 = vsub.f32 0.0, %v4621_v8 }
 0x281   : > { %v1553_v11 = vpop.f32.mrf.mxu2  ;;  %v2347_v52 = vor.u32 1.1754944e-38, %v2346_v34 }
 0x282   : > { %v1713_v23 = vpop.f32.mrf.mxu3  ;;  %v2324_v58 = vadd.f32 %v3034_v10, %v2323_v54  ;;  %v1607_v4 = vadd.f32 %v1553_v11, %v1451_v0  ;;  %v2009_v38 = vmul.f32 1.442695, %v1957_v53 }
 0x283   : > { %v1400_v13 = vpop.f32.mrf.mxu1  ;;  %v3036_v2 = vpop.eup %3035 }
 0x284   : > { %v3038_v3 = vpop.eup %3037  ;;  %v2328_v51 = vsel %vm2327_vm9, %v3034_v10, %v2324_v58  ;;  %v2336_v47 = vmul.f32 %v3036_v2, %v4609_v6  ;;  %v1767_v20 = vadd.f32 %v1713_v23, %v1607_v4  ;;  %v1452_v31 = vadd.f32 %v1400_v13, %v4130_v24 }
 0x285   : > { %v2333_v7 = vsel %vm2330_vm10, %v2332_v1, %v2328_v51  ;;  %v2052_v49 = vadd.f32 1.0, %v3038_v3  ;;  %v1875_v29 = vpop.f32.mrf.mxu0  ;;  %vm2341_vm1 = vweird.f32 %v3036_v2 }
 0x286   : > { %v2334_v48 = vmul.f32 %v2333_v7, %v4581_v57  ;;  %v2337_v26 = vsub.f32 1.0, %v2336_v47  ;;  %v4627_v60 = vadd.f32 %v1872_v59, %v1767_v20  ;;  %vm2342_vm3 = vmor %vm2340_vm11, %vm2341_vm1 }
 0x287   : > { %3039 = vrcp.f32 %v2052_v49  ;;  %v2359_v59 = vand.u32 2147483647, %v2052_v49  ;;  %v2361_v35 = vand.u32 2147483648, %v2052_v49  ;;  %vm2355_vm2 = vweird.f32 %v2052_v49 }
 0x288   : > { %2563 = vst.msk [vmem:[%s4296_s8 + $0x88] sm:$0xff] %vm2545_vm8, %v2334_v48  ;;  %v2338_v16 = vmul.f32 %v3036_v2, %v2337_v26  ;;  %3041 = vpow2.f32 %v2009_v38  ;;  %v1958_v19 = vsub.f32 0.0, %v4627_v60 }
 0x289   : > { %v1556_v22 = vpop.f32.mrf.mxu2  ;;  %vm2360_vm15 = vcmp.eq.f32.partialorder %v2359_v59, 8.507059e+37 }
 0x28a   : > { %v1716_v63 = vpop.f32.mrf.mxu3  ;;  %v2339_v57 = vadd.f32 %v3036_v2, %v2338_v16  ;;  %v2011_v28 = vmul.f32 1.442695, %v1958_v19  ;;  %v1608_v18 = vadd.f32 %v1556_v22, %v1452_v31 }
 0x28b   : > { %v1403_v44 = vpop.f32.mrf.mxu1 }
 0x28c   : > { %v2343_v42 = vsel %vm2342_vm3, %v3036_v2, %v2339_v57  ;;  %3043 = vpow2.f32 %v2011_v28  ;;  %v1768_v24 = vadd.f32 %v1716_v63, %v1608_v18  ;;  %v1453_v30 = vadd.f32 %v1403_v44, %v4141_v14 }
 0x28d   : > { %v3040_v45 = vpop.eup %3039  ;;  %v2348_v17 = vsel %vm2345_vm12, %v2347_v52, %v2343_v42  ;;  %v1878_v41 = vpop.f32.mrf.mxu0  ;;  %v2362_v14 = vor.u32 1.1754944e-38, %v2361_v35 }
 0x28e   : > { %v3042_v10 = vpop.eup %3041  ;;  %v2349_v21 = vmul.f32 %v2348_v17, %v4590_v56  ;;  %v2351_v50 = vmul.f32 %v3040_v45, %v2052_v49  ;;  %v4637_v62 = vadd.f32 %v1875_v29, %v1768_v24  ;;  %vm2356_vm13 = vweird.f32 %v3040_v45 }
 0x28f   : > { %v2053_v6 = vadd.f32 1.0, %v3042_v10  ;;  %vm2357_vm14 = vmor %vm2355_vm2, %vm2356_vm13 }
 0x290   : > { %2564 = vst.msk [vmem:[%s4296_s8 + $0x90] sm:$0xff] %vm2545_vm8, %v2349_v21  ;;  %v2352_v39 = vsub.f32 1.0, %v2351_v50  ;;  %v1959_v15 = vsub.f32 0.0, %v4637_v62 }
 0x291   : > { %3045 = vrcp.f32 %v2053_v6  ;;  %v1559_v12 = vpop.f32.mrf.mxu2  ;;  %v2374_v31 = vand.u32 2147483647, %v2053_v6  ;;  %v2376_v16 = vand.u32 2147483648, %v2053_v6  ;;  %vm2370_vm4 = vweird.f32 %v2053_v6 }
 0x292   : > { %v1719_v43 = vpop.f32.mrf.mxu3  ;;  %v3044_v33 = vpop.eup %3043  ;;  %v2353_v54 = vmul.f32 %v3040_v45, %v2352_v39  ;;  %v2013_v56 = vmul.f32 1.442695, %v1959_v15  ;;  %v1609_v61 = vadd.f32 %v1559_v12, %v1453_v30 }
 0x293   : > { %v1406_v0 = vpop.f32.mrf.mxu1  ;;  %v4643_v11 = vadd.f32 1.0, %v3044_v33  ;;  %vm2375_vm6 = vcmp.eq.f32.partialorder %v2374_v31, 8.507059e+37  ;;  %v2377_v18 = vor.u32 1.1754944e-38, %v2376_v16 }
 0x294   : > { %v2354_v23 = vadd.f32 %v3040_v45, %v2353_v54  ;;  %3047 = vpow2.f32 %v2013_v56  ;;  %v1769_v58 = vadd.f32 %v1719_v43, %v1609_v61  ;;  %v1454_v47 = vadd.f32 %v1406_v0, %v4152_v40 }
 0x295   : > { %3049 = vrcp.f32 %v4643_v11  ;;  %v1881_v4 = vpop.f32.mrf.mxu0  ;;  %v2389_v44 = vand.u32 2147483647, %v4643_v11  ;;  %v2391_v52 = vand.u32 2147483648, %v4643_v11  ;;  %vm2385_vm9 = vweird.f32 %v4643_v11 }
 0x296   : > { %v2358_v13 = vsel %vm2357_vm14, %v3040_v45, %v2354_v23  ;;  %v4646_v2 = vadd.f32 %v1878_v41, %v1769_v58 }
 0x297   : > { %v3046_v1 = vpop.eup %3045  ;;  %v2363_v53 = vsel %vm2360_vm15, %v2362_v14, %v2358_v13  ;;  %v2392_v35 = vor.u32 1.1754944e-38, %v2391_v52  ;;  %vm2390_vm1 = vcmp.eq.f32.partialorder %v2389_v44, 8.507059e+37 }
 0x298   : > { %v2364_v3 = vmul.f32 %v2363_v53, %v4603_v36  ;;  %v2366_v51 = vmul.f32 %v3046_v1, %v2053_v6  ;;  %v1960_v20 = vsub.f32 0.0, %v4646_v2  ;;  %vm2371_vm0 = vweird.f32 %v3046_v1 }
 0x299   : > { %v1562_v7 = vpop.f32.mrf.mxu2  ;;  %vm2372_vm5 = vmor %vm2370_vm4, %vm2371_vm0 }
 0x29a   : > { %v1722_v49 = vpop.f32.mrf.mxu3  ;;  %v3048_v38 = vpop.eup %3047  ;;  %2565 = vst.msk [vmem:[%s4296_s8 + $0x98] sm:$0xff] %vm2545_vm8, %v2364_v3  ;;  %v2367_v29 = vsub.f32 1.0, %v2366_v51  ;;  %v2015_v48 = vmul.f32 1.442695, %v1960_v20  ;;  %v1610_v26 = vadd.f32 %v1562_v7, %v1454_v47 }
 0x29b   : > { %v1409_v9 = vpop.f32.mrf.mxu1  ;;  %v3050_v34 = vpop.eup %3049  ;;  %v4653_v19 = vadd.f32 1.0, %v3048_v38 }
 0x29c   : > { %v2368_v36 = vmul.f32 %v3046_v1, %v2367_v29  ;;  %v2381_v40 = vmul.f32 %v3050_v34, %v4643_v11  ;;  %3051 = vpow2.f32 %v2015_v48  ;;  %v1770_v28 = vadd.f32 %v1722_v49, %v1610_v26 }
 0x29d   : > { %3053 = vrcp.f32 %v4653_v19  ;;  %v1884_v22 = vpop.f32.mrf.mxu0  ;;  %vm2386_vm7 = vweird.f32 %v3050_v34  ;;  %v1455_v41 = vadd.f32 %v1409_v9, %v4163_v27  ;;  %v2406_v11 = vand.u32 2147483648, %v4653_v19 }
 0x29e   : > { %v2369_v63 = vadd.f32 %v3046_v1, %v2368_v36  ;;  %v2382_v57 = vsub.f32 1.0, %v2381_v40  ;;  %v4659_v45 = vadd.f32 %v1881_v4, %v1770_v28  ;;  %vm2387_vm10 = vmor %vm2385_vm9, %vm2386_vm7  ;;  %v2404_v14 = vand.u32 2147483647, %v4653_v19 }
 0x29f   : > { %vm2400_vm3 = vweird.f32 %v4653_v19  ;;  %v2407_v20 = vor.u32 1.1754944e-38, %v2406_v11 }
 0x2a0   : > { %v2373_v42 = vsel %vm2372_vm5, %v3046_v1, %v2369_v63  ;;  %v2383_v24 = vmul.f32 %v3050_v34, %v2382_v57  ;;  %v1961_v30 = vsub.f32 0.0, %v4659_v45  ;;  %vm2405_vm13 = vcmp.eq.f32.partialorder %v2404_v14, 8.507059e+37 }
 0x2a1   : > { %v2378_v17 = vsel %vm2375_vm6, %v2377_v18, %v2373_v42  ;;  %v1565_v10 = vpop.f32.mrf.mxu2 }
 0x2a2   : > { %v1725_v21 = vpop.f32.mrf.mxu3  ;;  %v3052_v50 = vpop.eup %3051  ;;  %v2379_v6 = vmul.f32 %v2378_v17, %v4621_v8  ;;  %v2384_v39 = vadd.f32 %v3050_v34, %v2383_v24  ;;  %v1611_v43 = vadd.f32 %v1565_v10, %v1455_v41  ;;  %v2017_v8 = vmul.f32 1.442695, %v1961_v30 }
 0x2a3   : > { %v1412_v15 = vpop.f32.mrf.mxu1  ;;  %v3054_v59 = vpop.eup %3053  ;;  %v4665_v12 = vadd.f32 1.0, %v3052_v50 }
 0x2a4   : > { %2566 = vst.msk [vmem:[%s4296_s8 + $0xa0] sm:$0xff] %vm2545_vm8, %v2379_v6  ;;  %v2388_v27 = vsel %vm2387_vm10, %v3050_v34, %v2384_v39  ;;  %v2396_v33 = vmul.f32 %v3054_v59, %v4653_v19  ;;  %v1771_v23 = vadd.f32 %v1725_v21, %v1611_v43  ;;  %vm2401_vm11 = vweird.f32 %v3054_v59 }
 0x2a5   : > { %v2393_v54 = vsel %vm2390_vm1, %v2392_v35, %v2388_v27  ;;  %3055 = vrcp.f32 %v4665_v12  ;;  %v1887_v56 = vpop.f32.mrf.mxu0  ;;  %v1456_v4 = vadd.f32 %v1412_v15, %v4174_v37  ;;  %vm2402_vm12 = vmor %vm2400_vm3, %vm2401_vm11  ;;  %v2419_v36 = vand.u32 2147483647, %v4665_v12 }
 0x2a6   : > { %v2394_v61 = vmul.f32 %v2393_v54, %v4627_v60  ;;  %v2397_v0 = vsub.f32 1.0, %v2396_v33  ;;  %3057 = vpow2.f32 %v2017_v8  ;;  %v4677_v13 = vadd.f32 %v1884_v22, %v1771_v23 }
 0x2a7   : > { %v2421_v40 = vand.u32 2147483648, %v4665_v12  ;;  %vm2415_vm14 = vweird.f32 %v4665_v12  ;;  %vm2420_vm0 = vcmp.eq.f32.partialorder %v2419_v36, 8.507059e+37 }
 0x2a8   : > { %2567 = vst.msk [vmem:[%s4296_s8 + $0xa8] sm:$0xff] %vm2545_vm8, %v2394_v61  ;;  %v2398_v58 = vmul.f32 %v3054_v59, %v2397_v0  ;;  %v1962_v7 = vsub.f32 0.0, %v4677_v13 }
 0x2a9   : > { %v1568_v1 = vpop.f32.mrf.mxu2  ;;  %v2422_v24 = vor.u32 1.1754944e-38, %v2421_v40 }
 0x2aa   : > { %v1728_v53 = vpop.f32.mrf.mxu3  ;;  %v2399_v3 = vadd.f32 %v3054_v59, %v2398_v58  ;;  %v1612_v60 = vadd.f32 %v1568_v1, %v1456_v4  ;;  %v2019_v9 = vmul.f32 1.442695, %v1962_v7 }
 0x2ab   : > { %v1415_v51 = vpop.f32.mrf.mxu1  ;;  %v3056_v47 = vpop.eup %3055 }
 0x2ac   : > { %v3058_v49 = vpop.eup %3057  ;;  %v2403_v38 = vsel %vm2402_vm12, %v3054_v59, %v2399_v3  ;;  %v2411_v37 = vmul.f32 %v3056_v47, %v4665_v12  ;;  %v1772_v29 = vadd.f32 %v1728_v53, %v1612_v60  ;;  %v1457_v22 = vadd.f32 %v1415_v51, %v4185_v46 }
 0x2ad   : > { %v2408_v48 = vsel %vm2405_vm13, %v2407_v20, %v2403_v38  ;;  %v2057_v26 = vadd.f32 1.0, %v3058_v49  ;;  %v1890_v34 = vpop.f32.mrf.mxu0  ;;  %vm2416_vm2 = vweird.f32 %v3056_v47 }
 0x2ae   : > { %v2409_v31 = vmul.f32 %v2408_v48, %v4637_v62  ;;  %v2412_v16 = vsub.f32 1.0, %v2411_v37  ;;  %v4683_v19 = vadd.f32 %v1887_v56, %v1772_v29  ;;  %vm2417_vm15 = vmor %vm2415_vm14, %vm2416_vm2 }
 0x2af   : > { %3059 = vrcp.f32 %v2057_v26  ;;  %v2434_v43 = vand.u32 2147483647, %v2057_v26  ;;  %v2436_v27 = vand.u32 2147483648, %v2057_v26  ;;  %vm2430_vm5 = vweird.f32 %v2057_v26 }
 0x2b0   : > { %2568 = vst.msk [vmem:[%s4296_s8 + $0xb0] sm:$0xff] %vm2545_vm8, %v2409_v31  ;;  %v2413_v63 = vmul.f32 %v3056_v47, %v2412_v16  ;;  %3061 = vpow2.f32 %v2019_v9  ;;  %v1963_v57 = vsub.f32 0.0, %v4683_v19 }
 0x2b1   : > { %v1571_v28 = vpop.f32.mrf.mxu2  ;;  %vm2435_vm7 = vcmp.eq.f32.partialorder %v2434_v43, 8.507059e+37 }
 0x2b2   : > { %v1731_v18 = vpop.f32.mrf.mxu3  ;;  %v2414_v62 = vadd.f32 %v3056_v47, %v2413_v63  ;;  %v2021_v44 = vmul.f32 1.442695, %v1963_v57  ;;  %v1613_v52 = vadd.f32 %v1571_v28, %v1457_v22 }
 0x2b3   : > { %v1418_v42 = vpop.f32.mrf.mxu1 }
 0x2b4   : > { %v2418_v17 = vsel %vm2417_vm15, %v3056_v47, %v2414_v62  ;;  %3063 = vpow2.f32 %v2021_v44  ;;  %v1773_v46 = vadd.f32 %v1731_v18, %v1613_v52  ;;  %v1458_v35 = vadd.f32 %v1418_v42, %v4196_v55 }
 0x2b5   : > { %v3060_v41 = vpop.eup %3059  ;;  %v2423_v10 = vsel %vm2420_vm0, %v2422_v24, %v2418_v17  ;;  %v1893_v21 = vpop.f32.mrf.mxu0  ;;  %v2437_v55 = vor.u32 1.1754944e-38, %v2436_v27 }
 0x2b6   : > { %v3062_v50 = vpop.eup %3061  ;;  %v2424_v6 = vmul.f32 %v2423_v10, %v4646_v2  ;;  %v2426_v39 = vmul.f32 %v3060_v41, %v2057_v26  ;;  %v4693_v30 = vadd.f32 %v1890_v34, %v1773_v46  ;;  %vm2431_vm4 = vweird.f32 %v3060_v41 }
 0x2b7   : > { %v2058_v15 = vadd.f32 1.0, %v3062_v50  ;;  %vm2432_vm6 = vmor %vm2430_vm5, %vm2431_vm4 }
 0x2b8   : > { %2569 = vst.msk [vmem:[%s4296_s8 + $0xb8] sm:$0xff] %vm2545_vm8, %v2424_v6  ;;  %v2427_v59 = vsub.f32 1.0, %v2426_v39  ;;  %v1964_v12 = vsub.f32 0.0, %v4693_v30 }
 0x2b9   : > { %3065 = vrcp.f32 %v2058_v15  ;;  %v1574_v33 = vpop.f32.mrf.mxu2  ;;  %v2449_v9 = vand.u32 2147483647, %v2058_v15  ;;  %v2451_v34 = vand.u32 2147483648, %v2058_v15  ;;  %vm2445_vm10 = vweird.f32 %v2058_v15 }
 0x2ba   : > { %v1734_v8 = vpop.f32.mrf.mxu3  ;;  %v3064_v54 = vpop.eup %3063  ;;  %v2428_v56 = vmul.f32 %v3060_v41, %v2427_v59  ;;  %v2023_v2 = vmul.f32 1.442695, %v1964_v12  ;;  %v1614_v61 = vadd.f32 %v1574_v33, %v1458_v35 }
 0x2bb   : > { %v1421_v0 = vpop.f32.mrf.mxu1  ;;  %v4699_v11 = vadd.f32 1.0, %v3064_v54  ;;  %vm2450_vm11 = vcmp.eq.f32.partialorder %v2449_v9, 8.507059e+37  ;;  %v2452_v63 = vor.u32 1.1754944e-38, %v2451_v34 }
 0x2bc   : > { %v2429_v23 = vadd.f32 %v3060_v41, %v2428_v56  ;;  %3067 = vpow2.f32 %v2023_v2  ;;  %v1774_v58 = vadd.f32 %v1734_v8, %v1614_v61  ;;  %v1459_v47 = vadd.f32 %v1421_v0, %v4207_v32 }
 0x2bd   : > { %3069 = vrcp.f32 %v4699_v11  ;;  %v1896_v1 = vpop.f32.mrf.mxu0  ;;  %v2464_v57 = vand.u32 2147483647, %v4699_v11  ;;  %v2466_v28 = vand.u32 2147483648, %v4699_v11  ;;  %vm2460_vm12 = vweird.f32 %v4699_v11 }
 0x2be   : > { %v2433_v14 = vsel %vm2432_vm6, %v3060_v41, %v2429_v23  ;;  %v4702_v4 = vadd.f32 %v1893_v21, %v1774_v58 }
 0x2bf   : > { %v3066_v53 = vpop.eup %3065  ;;  %v2438_v3 = vsel %vm2435_vm7, %v2437_v55, %v2433_v14  ;;  %v2467_v39 = vor.u32 1.1754944e-38, %v2466_v28  ;;  %vm2465_vm2 = vcmp.eq.f32.partialorder %v2464_v57, 8.507059e+37 }
 0x2c0   : > { %v2439_v60 = vmul.f32 %v2438_v3, %v4659_v45  ;;  %v2441_v51 = vmul.f32 %v3066_v53, %v2058_v15  ;;  %v1965_v20 = vsub.f32 0.0, %v4702_v4  ;;  %vm2446_vm9 = vweird.f32 %v3066_v53 }
 0x2c1   : > { %v1577_v7 = vpop.f32.mrf.mxu2  ;;  %vm2447_vm1 = vmor %vm2445_vm10, %vm2446_vm9 }
 0x2c2   : > { %v1737_v49 = vpop.f32.mrf.mxu3  ;;  %v3068_v38 = vpop.eup %3067  ;;  %2570 = vst.msk [vmem:[%s4296_s8 + $0xc0] sm:$0xff] %vm2545_vm8, %v2439_v60  ;;  %v2442_v37 = vsub.f32 1.0, %v2441_v51  ;;  %v2025_v29 = vmul.f32 1.442695, %v1965_v20  ;;  %v1615_v48 = vadd.f32 %v1577_v7, %v1459_v47 }
 0x2c3   : > { %v3070_v26 = vpop.eup %3069  ;;  %v4709_v31 = vadd.f32 1.0, %v3068_v38  ;;  %v1424_v16 = vpop.f32.mrf.mxu1 }
 0x2c4   : > { %v2443_v45 = vmul.f32 %v3066_v53, %v2442_v37  ;;  %v2456_v32 = vmul.f32 %v3070_v26, %v4699_v11  ;;  %3071 = vpow2.f32 %v2025_v29  ;;  %v1775_v22 = vadd.f32 %v1737_v49, %v1615_v48 }
 0x2c5   : > { %3073 = vrcp.f32 %v4709_v31  ;;  %vm2461_vm3 = vweird.f32 %v3070_v26  ;;  %v1899_v52 = vpop.f32.mrf.mxu0  ;;  %v1460_v24 = vadd.f32 %v1424_v16, %v4218_v25  ;;  %v2481_v8 = vand.u32 2147483648, %v4709_v31 }
 0x2c6   : > { %v2444_v36 = vadd.f32 %v3066_v53, %v2443_v45  ;;  %v2457_v40 = vsub.f32 1.0, %v2456_v32  ;;  %v4715_v44 = vadd.f32 %v1896_v1, %v1775_v22  ;;  %vm2462_vm13 = vmor %vm2460_vm12, %vm2461_vm3  ;;  %v2479_v2 = vand.u32 2147483647, %v4709_v31 }
 0x2c7   : > { %vm2475_vm15 = vweird.f32 %v4709_v31  ;;  %v2482_v14 = vor.u32 1.1754944e-38, %v2481_v8 }
 0x2c8   : > { %v2448_v18 = vsel %vm2447_vm1, %v3066_v53, %v2444_v36  ;;  %v2458_v62 = vmul.f32 %v3070_v26, %v2457_v40  ;;  %v1966_v50 = vsub.f32 0.0, %v4715_v44  ;;  %vm2480_vm4 = vcmp.eq.f32.partialorder %v2479_v2, 8.507059e+37 }
 0x2c9   : > { %v2453_v42 = vsel %vm2450_vm11, %v2452_v63, %v2448_v18  ;;  %v1580_v17 = vpop.f32.mrf.mxu2 }
 0x2ca   : > { %v1740_v46 = vpop.f32.mrf.mxu3  ;;  %v3072_v41 = vpop.eup %3071  ;;  %v2454_v10 = vmul.f32 %v2453_v42, %v4677_v13  ;;  %v2459_v21 = vadd.f32 %v3070_v26, %v2458_v62  ;;  %v1616_v59 = vadd.f32 %v1580_v17, %v1460_v24  ;;  %v2027_v12 = vmul.f32 1.442695, %v1966_v50 }
 0x2cb   : > { %v3074_v6 = vpop.eup %3073  ;;  %v2061_v15 = vadd.f32 1.0, %v3072_v41  ;;  %v1427_v13 = vpop.f32.mrf.mxu1 }
 0x2cc   : > { %2571 = vst.msk [vmem:[%s4296_s8 + $0xc8] sm:$0xff] %vm2545_vm8, %v2454_v10  ;;  %v2463_v35 = vsel %vm2462_vm13, %v3070_v26, %v2459_v21  ;;  %v2471_v25 = vmul.f32 %v3074_v6, %v4709_v31  ;;  %v1776_v54 = vadd.f32 %v1740_v46, %v1616_v59  ;;  %vm2476_vm14 = vweird.f32 %v3074_v6 }
 0x2cd   : > { %v2468_v43 = vsel %vm2465_vm2, %v2467_v39, %v2463_v35  ;;  %3075 = vrcp.f32 %v2061_v15  ;;  %v1461_v61 = vadd.f32 %v1427_v13, %v4229_v5  ;;  %vm2477_vm0 = vmor %vm2475_vm15, %vm2476_vm14  ;;  %v1902_v53 = vpop.f32.mrf.mxu0  ;;  %v2494_v29 = vand.u32 2147483647, %v2061_v15 }
 0x2ce   : > { %v2469_v27 = vmul.f32 %v2468_v43, %v4683_v19  ;;  %v2472_v33 = vsub.f32 1.0, %v2471_v25  ;;  %3077 = vpow2.f32 %v2027_v12  ;;  %v4730_v0 = vadd.f32 %v1899_v52, %v1776_v54 }
 0x2cf   : > { %v2496_v48 = vand.u32 2147483648, %v2061_v15  ;;  %vm2490_vm6 = vweird.f32 %v2061_v15  ;;  %vm2495_vm9 = vcmp.eq.f32.partialorder %v2494_v29, 8.507059e+37 }
 0x2d0   : > { %2572 = vst.msk [vmem:[%s4296_s8 + $0xd0] sm:$0xff] %vm2545_vm8, %v2469_v27  ;;  %v2473_v56 = vmul.f32 %v3074_v6, %v2472_v33  ;;  %v1967_v1 = vsub.f32 0.0, %v4730_v0 }
 0x2d1   : > { %v1583_v11 = vpop.f32.mrf.mxu2  ;;  %v2497_v16 = vor.u32 1.1754944e-38, %v2496_v48 }
 0x2d2   : > { %v1743_v23 = vpop.f32.mrf.mxu3  ;;  %v2474_v58 = vadd.f32 %v3074_v6, %v2473_v56  ;;  %v1617_v19 = vadd.f32 %v1583_v11, %v1461_v61  ;;  %v2029_v7 = vmul.f32 1.442695, %v1967_v1 }
 0x2d3   : > { %v3076_v55 = vpop.eup %3075 }
 0x2d4   : > { %v3078_v3 = vpop.eup %3077  ;;  %v2478_v60 = vsel %vm2477_vm0, %v3074_v6, %v2474_v58  ;;  %v2486_v51 = vmul.f32 %v3076_v55, %v2061_v15  ;;  %v1777_v5 = vadd.f32 %v1743_v23, %v1617_v19  ;;  %vm2491_vm5 = vweird.f32 %v3076_v55 }
 0x2d5   : > { %v2483_v47 = vsel %vm2480_vm4, %v2482_v14, %v2478_v60  ;;  %v2062_v20 = vadd.f32 1.0, %v3078_v3  ;;  %vm2492_vm7 = vmor %vm2490_vm6, %vm2491_vm5 }
 0x2d6   : > { %v2484_v49 = vmul.f32 %v2483_v47, %v4693_v30  ;;  %v2487_v38 = vsub.f32 1.0, %v2486_v51  ;;  %v4735_v37 = vadd.f32 %v1902_v53, %v1777_v5 }
 0x2d7   : > { %3079 = vrcp.f32 %v2062_v20  ;;  %v2511_v28 = vand.u32 2147483648, %v2062_v20  ;;  %v2509_v52 = vand.u32 2147483647, %v2062_v20  ;;  %vm2505_vm1 = vweird.f32 %v2062_v20 }
 0x2d8   : > { %2573 = vst.msk [vmem:[%s4296_s8 + $0xd8] sm:$0xff] %vm2545_vm8, %v2484_v49  ;;  %v2488_v26 = vmul.f32 %v3076_v55, %v2487_v38  ;;  %3081 = vpow2.f32 %v2029_v7  ;;  %v1968_v9 = vsub.f32 0.0, %v4735_v37 }
 0x2d9   : > { %v2512_v17 = vor.u32 1.1754944e-38, %v2511_v28  ;;  %vm2510_vm3 = vcmp.eq.f32.partialorder %v2509_v52, 8.507059e+37 }
 0x2da   : > { %v2489_v34 = vadd.f32 %v3076_v55, %v2488_v26  ;;  %v2031_v31 = vmul.f32 1.442695, %v1968_v9 }
 0x2dc   : > { %v2493_v30 = vsel %vm2492_vm7, %v3076_v55, %v2489_v34  ;;  %3083 = vpow2.f32 %v2031_v31 }
 0x2dd   : > { %v3080_v45 = vpop.eup %3079  ;;  %v2498_v32 = vsel %vm2495_vm9, %v2497_v16, %v2493_v30 }
 0x2de   : > { %v3082_v36 = vpop.eup %3081  ;;  %v2499_v40 = vmul.f32 %v2498_v32, %v4702_v4  ;;  %v2501_v22 = vmul.f32 %v3080_v45, %v2062_v20  ;;  %vm2506_vm10 = vweird.f32 %v3080_v45 }
 0x2df   : > { %v2063_v63 = vadd.f32 1.0, %v3082_v36  ;;  %vm2507_vm11 = vmor %vm2505_vm1, %vm2506_vm10 }
 0x2e0   : > { %2574 = vst.msk [vmem:[%s4296_s8 + $0xe0] sm:$0xff] %vm2545_vm8, %v2499_v40  ;;  %v2502_v57 = vsub.f32 1.0, %v2501_v22 }
 0x2e1   : > { %3085 = vrcp.f32 %v2063_v63  ;;  %v2524_v39 = vand.u32 2147483647, %v2063_v63  ;;  %v2526_v15 = vand.u32 2147483648, %v2063_v63  ;;  %vm2520_vm13 = vweird.f32 %v2063_v63 }
 0x2e2   : > { %v3084_v18 = vpop.eup %3083  ;;  %v2503_v62 = vmul.f32 %v3080_v45, %v2502_v57 }
 0x2e3   : > { %v2064_v42 = vadd.f32 1.0, %v3084_v18  ;;  %vm2525_vm14 = vcmp.eq.f32.partialorder %v2524_v39, 8.507059e+37  ;;  %v2527_v43 = vor.u32 1.1754944e-38, %v2526_v15 }
 0x2e4   : > { %v2504_v24 = vadd.f32 %v3080_v45, %v2503_v62 }
 0x2e5   : > { %3087 = vrcp.f32 %v2064_v42  ;;  %v2541_v13 = vand.u32 2147483648, %v2064_v42  ;;  %v2539_v33 = vand.u32 2147483647, %v2064_v42  ;;  %vm2535_vm0 = vweird.f32 %v2064_v42 }
 0x2e6   : > { %v2508_v46 = vsel %vm2507_vm11, %v3080_v45, %v2504_v24 }
 0x2e7   : > { %v3086_v4 = vpop.eup %3085  ;;  %v2513_v41 = vsel %vm2510_vm3, %v2512_v17, %v2508_v46  ;;  %v2542_v2 = vor.u32 1.1754944e-38, %v2541_v13  ;;  %vm2540_vm5 = vcmp.eq.f32.partialorder %v2539_v33, 8.507059e+37 }
 0x2e8   : > { %v2514_v10 = vmul.f32 %v2513_v41, %v4715_v44  ;;  %v2516_v21 = vmul.f32 %v3086_v4, %v2063_v63  ;;  %vm2521_vm12 = vweird.f32 %v3086_v4 }
 0x2e9   : > { %vm2522_vm2 = vmor %vm2520_vm13, %vm2521_vm12 }
 0x2ea   : > { %2575 = vst.msk [vmem:[%s4296_s8 + $0xe8] sm:$0xff] %vm2545_vm8, %v2514_v10  ;;  %v2517_v50 = vsub.f32 1.0, %v2516_v21 }
 0x2eb   : > { %v3088_v6 = vpop.eup %3087 }
 0x2ec   : > { %v2518_v59 = vmul.f32 %v3086_v4, %v2517_v50  ;;  %v2531_v35 = vmul.f32 %v3088_v6, %v2064_v42  ;;  %vm2536_vm15 = vweird.f32 %v3088_v6 }
 0x2ed   : > { %vm2537_vm4 = vmor %vm2535_vm0, %vm2536_vm15 }
 0x2ee   : > { %v2519_v25 = vadd.f32 %v3086_v4, %v2518_v59  ;;  %v2532_v12 = vsub.f32 1.0, %v2531_v35 }
 0x2f0   : > { %v2523_v44 = vsel %vm2522_vm2, %v3086_v4, %v2519_v25  ;;  %v2533_v27 = vmul.f32 %v3088_v6, %v2532_v12 }
 0x2f1   : > { %v2528_v8 = vsel %vm2525_vm14, %v2527_v43, %v2523_v44 }
 0x2f2   : > { %v2529_v54 = vmul.f32 %v2528_v8, %v4730_v0  ;;  %v2534_v56 = vadd.f32 %v3088_v6, %v2533_v27 }
 0x2f4   : > { %2576 = vst.msk [vmem:[%s4296_s8 + $0xf0] sm:$0xff] %vm2545_vm8, %v2529_v54  ;;  %v2538_v61 = vsel %vm2537_vm4, %v3088_v6, %v2534_v56 }
 0x2f5   : > { %v2543_v11 = vsel %vm2540_vm5, %v2542_v2, %v2538_v61 }
 0x2f6   : > { %v2544_v23 = vmul.f32 %v2543_v11, %v4735_v37 }
 0x2f8   : > { %2577 = vst.msk [vmem:[%s4296_s8 + $0xf8] sm:$0xff] %vm2545_vm8, %v2544_v23 }
 0x2f9 PF: > { %s12_s9 = sadd.s32 1, %s3122_s9  }
 0x2fa   : > { %p9_p4 = scmp.ge.s32.totalorder %s12_s9, 4  }
 0x2fc   :  { %11 = sbr.rel (!%p9_p4) target bundleno = 1 (0x1), region = 66 }

</bundles_post_ra>
